<compile_context>
chip_gen: v7x
topology: tpu7x:2x2x1
jax: 0.10.0
libtpu: 0.0.40
codegen_flags: <defaults>
</compile_context>

<pallas_src>
import functools

import jax
import jax.numpy as jnp
from jax.experimental import pallas as pl
from jax.experimental.pallas import tpu as pltpu

BN_EPS = 1e-5
TM_MAX = 1024                      # rows per tile (multiple of 256 for the MXU)
VMEM_LIMIT = 48 * 1024 * 1024      # explicit scoped-VMEM budget (fits v7x's 64 MiB)
# Flip to jnp.bfloat16 on v6e/v7x to hit the native MXU path (f32 accumulate);
# kept f32 by default for numerical parity with the PyTorch reference.
MXU_DTYPE = jnp.float32


def _compiler_params():
    return pltpu.CompilerParams(
        dimension_semantics=("parallel",),   # row tiles shard across v7x's 2 TCs
        vmem_limit_bytes=VMEM_LIMIT,
    )


# ---------------------------------------------------------------------------
# Pallas kernels
# ---------------------------------------------------------------------------

def _partial_stats(y, tile_idx, tm, m_valid):
    """Per-tile (sum, sum-of-squares) over valid rows only -> (2, Cout)."""
    row = tile_idx * tm + jax.lax.broadcasted_iota(jnp.int32, (tm, 1), 0)
    ym = jnp.where(row < m_valid, y, 0.0)                  # mask padded rows
    psum = jnp.sum(ym, axis=0, keepdims=True)              # (1, Cout)
    psq = jnp.sum(ym * y, axis=0, keepdims=True)           # == sum(y*y) on valid rows
    return jnp.concatenate([psum, psq], axis=0)            # (2, Cout)


def _matmul_stats_kernel(x_ref, w_ref, y_ref, stats_ref, *, m_valid):
    """First layer: y = x @ W plus partial BN statistics."""
    tm = y_ref.shape[0]
    y = jnp.dot(x_ref[...].astype(MXU_DTYPE), w_ref[...].astype(MXU_DTYPE),
                preferred_element_type=jnp.float32)
    y_ref[...] = y
    stats_ref[0] = _partial_stats(y, pl.program_id(0), tm, m_valid)


def _bn_relu_matmul_stats_kernel(z_ref, scale_ref, shift_ref, w_ref,
                                 y_ref, stats_ref, *, m_valid):
    """Middle layers: previous layer's BN+ReLU fused as prologue, then matmul
    plus partial BN statistics of this layer's pre-activation output."""
    tm = y_ref.shape[0]
    h = jnp.maximum(z_ref[...] * scale_ref[...] + shift_ref[...], 0.0)
    y = jnp.dot(h.astype(MXU_DTYPE), w_ref[...].astype(MXU_DTYPE),
                preferred_element_type=jnp.float32)
    y_ref[...] = y
    stats_ref[0] = _partial_stats(y, pl.program_id(0), tm, m_valid)


def _bn_relu_kernel(z_ref, scale_ref, shift_ref, o_ref):
    """Final layer's BN + ReLU (no following matmul to fuse into)."""
    o_ref[...] = jnp.maximum(z_ref[...] * scale_ref[...] + shift_ref[...], 0.0)


# ---------------------------------------------------------------------------
# pallas_call wrappers (M-tiled grids, weight kept VMEM-resident)
# ---------------------------------------------------------------------------

def matmul_stats(x, w, *, m_valid, tm):
    M_pad, Cin = x.shape
    Cout = w.shape[1]
    n_tiles = M_pad // tm
    return pl.pallas_call(
        functools.partial(_matmul_stats_kernel, m_valid=m_valid),
        out_shape=(jax.ShapeDtypeStruct((M_pad, Cout), jnp.float32),
                   jax.ShapeDtypeStruct((n_tiles, 2, Cout), jnp.float32)),
        grid=(n_tiles,),
        in_specs=[pl.BlockSpec((tm, Cin), lambda i: (i, 0)),
                  pl.BlockSpec((Cin, Cout), lambda i: (0, 0))],   # W resident
        out_specs=(pl.BlockSpec((tm, Cout), lambda i: (i, 0)),
                   pl.BlockSpec((1, 2, Cout), lambda i: (i, 0, 0))),
        compiler_params=_compiler_params(),
    )(x, w)


def bn_relu_matmul_stats(z, scale, shift, w, *, m_valid, tm):
    M_pad, Cin = z.shape
    Cout = w.shape[1]
    n_tiles = M_pad // tm
    return pl.pallas_call(
        functools.partial(_bn_relu_matmul_stats_kernel, m_valid=m_valid),
        out_shape=(jax.ShapeDtypeStruct((M_pad, Cout), jnp.float32),
                   jax.ShapeDtypeStruct((n_tiles, 2, Cout), jnp.float32)),
        grid=(n_tiles,),
        in_specs=[pl.BlockSpec((tm, Cin), lambda i: (i, 0)),
                  pl.BlockSpec((1, Cin), lambda i: (0, 0)),
                  pl.BlockSpec((1, Cin), lambda i: (0, 0)),
                  pl.BlockSpec((Cin, Cout), lambda i: (0, 0))],   # W resident
        out_specs=(pl.BlockSpec((tm, Cout), lambda i: (i, 0)),
                   pl.BlockSpec((1, 2, Cout), lambda i: (i, 0, 0))),
        compiler_params=_compiler_params(),
    )(z, scale, shift, w)


def bn_relu(z, scale, shift, *, tm):
    M_pad, C = z.shape
    n_tiles = M_pad // tm
    return pl.pallas_call(
        _bn_relu_kernel,
        out_shape=jax.ShapeDtypeStruct((M_pad, C), jnp.float32),
        grid=(n_tiles,),
        in_specs=[pl.BlockSpec((tm, C), lambda i: (i, 0)),
                  pl.BlockSpec((1, C), lambda i: (0, 0)),
                  pl.BlockSpec((1, C), lambda i: (0, 0))],
        out_specs=pl.BlockSpec((tm, C), lambda i: (i, 0)),
        compiler_params=_compiler_params(),
    )(z, scale, shift)


# ---------------------------------------------------------------------------
# Per-channel BN folding (O(C) work -> plain XLA, not worth a kernel launch)
# ---------------------------------------------------------------------------

def _fold_bn(stats_partial, gamma, beta, m_valid):
    s = jnp.sum(stats_partial, axis=0)                       # (2, C)
    mean = s[0] / m_valid
    var = jnp.maximum(s[1] / m_valid - mean * mean, 0.0)     # biased var (BN fwd)
    rstd = jax.lax.rsqrt(var + BN_EPS)
    scale = gamma * rstd
    shift = beta - mean * scale
    return scale.reshape(1, -1), shift.reshape(1, -1)


# ---------------------------------------------------------------------------
# Parameters (shapes from the PyTorch module __init__), deterministic init
# ---------------------------------------------------------------------------

_LAYER_NAMES = ["mlp_1_1", "mlp_1_2", "mlp_1_3", "mlp_2_1", "mlp_2_2"]


def _init_layer(key, cin, cout):
    # Conv bias omitted: cancelled exactly by training-mode BN mean subtraction.
    return {
        "w": jax.random.normal(key, (cin, cout), jnp.float32) * 0.1,
        "gamma": jnp.ones((cout,), jnp.float32),
        "beta": jnp.zeros((cout,), jnp.float32),
    }


def init_params(key, input_dim=1088, num_classes=4):
    dims = [(input_dim, 512), (512, 256), (256, 128), (128, 128),
            (128, num_classes)]
    keys = jax.random.split(key, len(dims))
    return {n: _init_layer(k, ci, co)
            for n, k, (ci, co) in zip(_LAYER_NAMES, keys, dims)}


# ---------------------------------------------------------------------------
# Forward pass
# ---------------------------------------------------------------------------

def _round_up(x, m):
    return ((x + m - 1) // m) * m


def _pick_tile(m):
    return min(TM_MAX, _round_up(m, 8))


def segmentation_network(x, params):
    """x: (B, N, input_dim) -> (B, N, num_classes).

    Matches SegmentationNetwork.forward: the PyTorch transposes are layout
    no-ops in this channels-last formulation."""
    B, N, Cin = x.shape
    M = B * N
    tm = _pick_tile(M)
    M_pad = _round_up(M, tm)

    h = x.reshape(M, Cin).astype(jnp.float32)
    if M_pad != M:
        h = jnp.pad(h, ((0, M_pad - M), (0, 0)))   # padded rows masked out of stats

    # Layer 1: matmul + partial BN stats.
    p = params[_LAYER_NAMES[0]]
    z, stats = matmul_stats(h, p["w"], m_valid=M, tm=tm)
    scale, shift = _fold_bn(stats, p["gamma"], p["beta"], M)

    # Layers 2..5: previous layer's BN+ReLU fused as prologue of this matmul.
    for name in _LAYER_NAMES[1:]:
        p = params[name]
        z, stats = bn_relu_matmul_stats(z, scale, shift, p["w"], m_valid=M, tm=tm)
        scale, shift = _fold_bn(stats, p["gamma"], p["beta"], M)

    # Final BN + ReLU (mlp_2_2's batch norm / relu).
    out = bn_relu(z, scale, shift, tm=tm)
    return out[:M].reshape(B, N, -1)


if __name__ == "__main__":
    B, N, C_IN, NUM_CLASSES = 2, 16, 1088, 4
    key = jax.random.PRNGKey(0)
    k_x, k_p = jax.random.split(key)
    x = jax.random.normal(k_x, (B, N, C_IN), jnp.float32)
    params = init_params(k_p, input_dim=C_IN, num_classes=NUM_CLASSES)

    out = jax.jit(segmentation_network)(x, params)
    jax.block_until_ready(out)

    assert out.shape == (B, N, NUM_CLASSES), out.shape
    assert bool(jnp.all(jnp.isfinite(out)))
    assert bool(jnp.all(out >= 0.0))   # final ReLU
    print("KERNEL_OK")
</pallas_src>

<mosaic_0001>
module attributes {stable_mosaic.version = 11 : i64} {
  func.func @_matmul_stats_kernel(%arg0: i32, %arg1: memref<32x1088xf32, #tpu.memory_space<vmem>>, %arg2: memref<1088x512xf32, #tpu.memory_space<vmem>>, %arg3: memref<32x512xf32, #tpu.memory_space<vmem>>, %arg4: memref<1x2x512xf32, #tpu.memory_space<vmem>>) attributes {dimension_semantics = [#tpu.dimension_semantics<parallel>], iteration_bounds = array<i64: 1>, scalar_prefetch = 0 : i64, scratch_operands = 0 : i64, tpu.core_type = #tpu.core_type<tc>, window_params = [{transform_indices = @transform_0, window_bounds = array<i64: 32, 1088>}, {pipeline_mode = #tpu.pipeline_mode<synchronous>, transform_indices = @transform_1, window_bounds = array<i64: 1088, 512>}, {transform_indices = @transform_2, window_bounds = array<i64: 32, 512>}, {transform_indices = @transform_3, window_bounds = array<i64: 1, 2, 512>}]} {
    %c0 = arith.constant 0 : index
    %c0_0 = arith.constant 0 : index
    %0 = vector.load %arg1[%c0, %c0_0] : memref<32x1088xf32, #tpu.memory_space<vmem>>, vector<32x1088xf32>
    %c0_1 = arith.constant 0 : index
    %c0_2 = arith.constant 0 : index
    %1 = vector.load %arg2[%c0_1, %c0_2] : memref<1088x512xf32, #tpu.memory_space<vmem>>, vector<1088x512xf32>
    %cst = arith.constant dense<0.000000e+00> : vector<32x512xf32>
    %2 = tpu.matmul %0, %1, %cst {dimension_numbers = #tpu.dot_dimension_numbers<[1], [0], [0], [1], [0, 0, 1, 1], [], []>} : vector<32x1088xf32>, vector<1088x512xf32>, vector<32x512xf32> -> vector<32x512xf32>
    %c0_3 = arith.constant 0 : index
    %c0_4 = arith.constant 0 : index
    %3 = vector.load %arg3[%c0_3, %c0_4] : memref<32x512xf32, #tpu.memory_space<vmem>>, vector<32x512xf32>
    tpu.vector_store %arg3[%c0_3, %c0_4], %2 {strides = array<i32>} : memref<32x512xf32, #tpu.memory_space<vmem>>, vector<32x512xf32>,
    %c32_i32 = arith.constant 32 : i32
    %4 = arith.muli %arg0, %c32_i32 : i32
    %5 = tpu.iota {dimensions = array<i32: 0>} : vector<32x1xi32>
    %6 = vector.broadcast %4 : i32 to vector<32x1xi32>
    %7 = arith.addi %6, %5 : vector<32x1xi32>
    %c32_i32_5 = arith.constant 32 : i32
    %8 = vector.broadcast %c32_i32_5 : i32 to vector<32x1xi32>
    %9 = arith.cmpi slt, %7, %8 : vector<32x1xi32>
    %cst_6 = arith.constant 0.000000e+00 : f32
    %10 = vector.shape_cast %9 : vector<32x1xi1> to vector<32x1xi1>
    %11 = vector.broadcast %10 : vector<32x1xi1> to vector<32x512xi1>
    %12 = vector.broadcast %cst_6 : f32 to vector<32x512xf32>
    %13 = arith.select %11, %2, %12 : vector<32x512xi1>, vector<32x512xf32>
    %cst_7 = arith.constant dense<0.000000e+00> : vector<512xf32>
    %14 = vector.multi_reduction <add>, %13, %cst_7 [0] : vector<32x512xf32> to vector<512xf32>
    %15 = vector.shape_cast %14 : vector<512xf32> to vector<1x512xf32>
    %16 = arith.mulf %13, %2 : vector<32x512xf32>
    %cst_8 = arith.constant dense<0.000000e+00> : vector<512xf32>
    %17 = vector.multi_reduction <add>, %16, %cst_8 [0] : vector<32x512xf32> to vector<512xf32>
    %18 = vector.shape_cast %17 : vector<512xf32> to vector<1x512xf32>
    %19 = tpu.concatenate %15, %18 in 0 : vector<1x512xf32>, vector<1x512xf32> -> vector<2x512xf32>
    %c0_9 = arith.constant 0 : index
    %c0_10 = arith.constant 0 : index
    %c0_11 = arith.constant 0 : index
    %20 = vector.load %arg4[%c0_9, %c0_10, %c0_11] : memref<1x2x512xf32, #tpu.memory_space<vmem>>, vector<1x2x512xf32>
    %21 = vector.shape_cast %20 : vector<1x2x512xf32> to vector<2x512xf32>
    %22 = vector.shape_cast %19 : vector<2x512xf32> to vector<1x2x512xf32>
    tpu.vector_store %arg4[%c0_9, %c0_10, %c0_11], %22 {strides = array<i32>} : memref<1x2x512xf32, #tpu.memory_space<vmem>>, vector<1x2x512xf32>,
    return
  }
  func.func @transform_0(%arg0: i32) -> (i32, i32) {
    %c0_i32 = arith.constant 0 : i32
    %c0_i32_0 = arith.constant 0 : i32
    return %arg0, %c0_i32 : i32, i32
  }
  func.func @transform_1(%arg0: i32) -> (i32, i32) {
    %c0_i32 = arith.constant 0 : i32
    %c0_i32_0 = arith.constant 0 : i32
    %c0_i32_1 = arith.constant 0 : i32
    return %c0_i32, %c0_i32_0 : i32, i32
  }
  func.func @transform_2(%arg0: i32) -> (i32, i32) {
    %c0_i32 = arith.constant 0 : i32
    %c0_i32_0 = arith.constant 0 : i32
    return %arg0, %c0_i32 : i32, i32
  }
  func.func @transform_3(%arg0: i32) -> (i32, i32, i32) {
    %c0_i32 = arith.constant 0 : i32
    %c0_i32_0 = arith.constant 0 : i32
    %c0_i32_1 = arith.constant 0 : i32
    return %arg0, %c0_i32, %c0_i32_0 : i32, i32, i32
  }
}

module attributes {stable_mosaic.version = 11 : i64} {
  func.func @_bn_relu_matmul_stats_kernel(%arg0: i32, %arg1: memref<32x512xf32, #tpu.memory_space<vmem>>, %arg2: memref<1x512xf32, #tpu.memory_space<vmem>>, %arg3: memref<1x512xf32, #tpu.memory_space<vmem>>, %arg4: memref<512x256xf32, #tpu.memory_space<vmem>>, %arg5: memref<32x256xf32, #tpu.memory_space<vmem>>, %arg6: memref<1x2x256xf32, #tpu.memory_space<vmem>>) attributes {dimension_semantics = [#tpu.dimension_semantics<parallel>], iteration_bounds = array<i64: 1>, scalar_prefetch = 0 : i64, scratch_operands = 0 : i64, tpu.core_type = #tpu.core_type<tc>, window_params = [{transform_indices = @transform_0, window_bounds = array<i64: 32, 512>}, {pipeline_mode = #tpu.pipeline_mode<synchronous>, transform_indices = @transform_1, window_bounds = array<i64: 1, 512>}, {pipeline_mode = #tpu.pipeline_mode<synchronous>, transform_indices = @transform_2, window_bounds = array<i64: 1, 512>}, {pipeline_mode = #tpu.pipeline_mode<synchronous>, transform_indices = @transform_3, window_bounds = array<i64: 512, 256>}, {transform_indices = @transform_4, window_bounds = array<i64: 32, 256>}, {transform_indices = @transform_5, window_bounds = array<i64: 1, 2, 256>}]} {
    %c0 = arith.constant 0 : index
    %c0_0 = arith.constant 0 : index
    %0 = vector.load %arg1[%c0, %c0_0] : memref<32x512xf32, #tpu.memory_space<vmem>>, vector<32x512xf32>
    %c0_1 = arith.constant 0 : index
    %c0_2 = arith.constant 0 : index
    %1 = vector.load %arg2[%c0_1, %c0_2] : memref<1x512xf32, #tpu.memory_space<vmem>>, vector<1x512xf32>
    %2 = vector.broadcast %1 : vector<1x512xf32> to vector<32x512xf32>
    %3 = arith.mulf %0, %2 : vector<32x512xf32>
    %c0_3 = arith.constant 0 : index
    %c0_4 = arith.constant 0 : index
    %4 = vector.load %arg3[%c0_3, %c0_4] : memref<1x512xf32, #tpu.memory_space<vmem>>, vector<1x512xf32>
    %5 = vector.broadcast %4 : vector<1x512xf32> to vector<32x512xf32>
    %6 = arith.addf %3, %5 : vector<32x512xf32>
    %cst = arith.constant 0.000000e+00 : f32
    %7 = vector.broadcast %cst : f32 to vector<32x512xf32>
    %8 = arith.maximumf %6, %7 : vector<32x512xf32>
    %c0_5 = arith.constant 0 : index
    %c0_6 = arith.constant 0 : index
    %9 = vector.load %arg4[%c0_5, %c0_6] : memref<512x256xf32, #tpu.memory_space<vmem>>, vector<512x256xf32>
    %cst_7 = arith.constant dense<0.000000e+00> : vector<32x256xf32>
    %10 = tpu.matmul %8, %9, %cst_7 {dimension_numbers = #tpu.dot_dimension_numbers<[1], [0], [0], [1], [0, 0, 1, 1], [], []>} : vector<32x512xf32>, vector<512x256xf32>, vector<32x256xf32> -> vector<32x256xf32>
    %c0_8 = arith.constant 0 : index
    %c0_9 = arith.constant 0 : index
    %11 = vector.load %arg5[%c0_8, %c0_9] : memref<32x256xf32, #tpu.memory_space<vmem>>, vector<32x256xf32>
    tpu.vector_store %arg5[%c0_8, %c0_9], %10 {strides = array<i32>} : memref<32x256xf32, #tpu.memory_space<vmem>>, vector<32x256xf32>,
    %c32_i32 = arith.constant 32 : i32
    %12 = arith.muli %arg0, %c32_i32 : i32
    %13 = tpu.iota {dimensions = array<i32: 0>} : vector<32x1xi32>
    %14 = vector.broadcast %12 : i32 to vector<32x1xi32>
    %15 = arith.addi %14, %13 : vector<32x1xi32>
    %c32_i32_10 = arith.constant 32 : i32
    %16 = vector.broadcast %c32_i32_10 : i32 to vector<32x1xi32>
    %17 = arith.cmpi slt, %15, %16 : vector<32x1xi32>
    %cst_11 = arith.constant 0.000000e+00 : f32
    %18 = vector.shape_cast %17 : vector<32x1xi1> to vector<32x1xi1>
    %19 = vector.broadcast %18 : vector<32x1xi1> to vector<32x256xi1>
    %20 = vector.broadcast %cst_11 : f32 to vector<32x256xf32>
    %21 = arith.select %19, %10, %20 : vector<32x256xi1>, vector<32x256xf32>
    %cst_12 = arith.constant dense<0.000000e+00> : vector<256xf32>
    %22 = vector.multi_reduction <add>, %21, %cst_12 [0] : vector<32x256xf32> to vector<256xf32>
    %23 = vector.shape_cast %22 : vector<256xf32> to vector<1x256xf32>
    %24 = arith.mulf %21, %10 : vector<32x256xf32>
    %cst_13 = arith.constant dense<0.000000e+00> : vector<256xf32>
    %25 = vector.multi_reduction <add>, %24, %cst_13 [0] : vector<32x256xf32> to vector<256xf32>
    %26 = vector.shape_cast %25 : vector<256xf32> to vector<1x256xf32>
    %27 = tpu.concatenate %23, %26 in 0 : vector<1x256xf32>, vector<1x256xf32> -> vector<2x256xf32>
    %c0_14 = arith.constant 0 : index
    %c0_15 = arith.constant 0 : index
    %c0_16 = arith.constant 0 : index
    %28 = vector.load %arg6[%c0_14, %c0_15, %c0_16] : memref<1x2x256xf32, #tpu.memory_space<vmem>>, vector<1x2x256xf32>
    %29 = vector.shape_cast %28 : vector<1x2x256xf32> to vector<2x256xf32>
    %30 = vector.shape_cast %27 : vector<2x256xf32> to vector<1x2x256xf32>
    tpu.vector_store %arg6[%c0_14, %c0_15, %c0_16], %30 {strides = array<i32>} : memref<1x2x256xf32, #tpu.memory_space<vmem>>, vector<1x2x256xf32>,
    return
  }
  func.func @transform_0(%arg0: i32) -> (i32, i32) {
    %c0_i32 = arith.constant 0 : i32
    %c0_i32_0 = arith.constant 0 : i32
    return %arg0, %c0_i32 : i32, i32
  }
  func.func @transform_1(%arg0: i32) -> (i32, i32) {
    %c0_i32 = arith.constant 0 : i32
    %c0_i32_0 = arith.constant 0 : i32
    %c0_i32_1 = arith.constant 0 : i32
    return %c0_i32, %c0_i32_0 : i32, i32
  }
  func.func @transform_2(%arg0: i32) -> (i32, i32) {
    %c0_i32 = arith.constant 0 : i32
    %c0_i32_0 = arith.constant 0 : i32
    %c0_i32_1 = arith.constant 0 : i32
    return %c0_i32, %c0_i32_0 : i32, i32
  }
  func.func @transform_3(%arg0: i32) -> (i32, i32) {
    %c0_i32 = arith.constant 0 : i32
    %c0_i32_0 = arith.constant 0 : i32
    %c0_i32_1 = arith.constant 0 : i32
    return %c0_i32, %c0_i32_0 : i32, i32
  }
  func.func @transform_4(%arg0: i32) -> (i32, i32) {
    %c0_i32 = arith.constant 0 : i32
    %c0_i32_0 = arith.constant 0 : i32
    return %arg0, %c0_i32 : i32, i32
  }
  func.func @transform_5(%arg0: i32) -> (i32, i32, i32) {
    %c0_i32 = arith.constant 0 : i32
    %c0_i32_0 = arith.constant 0 : i32
    %c0_i32_1 = arith.constant 0 : i32
    return %arg0, %c0_i32, %c0_i32_0 : i32, i32, i32
  }
}

module attributes {stable_mosaic.version = 11 : i64} {
  func.func @_bn_relu_matmul_stats_kernel(%arg0: i32, %arg1: memref<32x256xf32, #tpu.memory_space<vmem>>, %arg2: memref<1x256xf32, #tpu.memory_space<vmem>>, %arg3: memref<1x256xf32, #tpu.memory_space<vmem>>, %arg4: memref<256x128xf32, #tpu.memory_space<vmem>>, %arg5: memref<32x128xf32, #tpu.memory_space<vmem>>, %arg6: memref<1x2x128xf32, #tpu.memory_space<vmem>>) attributes {dimension_semantics = [#tpu.dimension_semantics<parallel>], iteration_bounds = array<i64: 1>, scalar_prefetch = 0 : i64, scratch_operands = 0 : i64, tpu.core_type = #tpu.core_type<tc>, window_params = [{transform_indices = @transform_0, window_bounds = array<i64: 32, 256>}, {pipeline_mode = #tpu.pipeline_mode<synchronous>, transform_indices = @transform_1, window_bounds = array<i64: 1, 256>}, {pipeline_mode = #tpu.pipeline_mode<synchronous>, transform_indices = @transform_2, window_bounds = array<i64: 1, 256>}, {pipeline_mode = #tpu.pipeline_mode<synchronous>, transform_indices = @transform_3, window_bounds = array<i64: 256, 128>}, {transform_indices = @transform_4, window_bounds = array<i64: 32, 128>}, {transform_indices = @transform_5, window_bounds = array<i64: 1, 2, 128>}]} {
    %c0 = arith.constant 0 : index
    %c0_0 = arith.constant 0 : index
    %0 = vector.load %arg1[%c0, %c0_0] : memref<32x256xf32, #tpu.memory_space<vmem>>, vector<32x256xf32>
    %c0_1 = arith.constant 0 : index
    %c0_2 = arith.constant 0 : index
    %1 = vector.load %arg2[%c0_1, %c0_2] : memref<1x256xf32, #tpu.memory_space<vmem>>, vector<1x256xf32>
    %2 = vector.broadcast %1 : vector<1x256xf32> to vector<32x256xf32>
    %3 = arith.mulf %0, %2 : vector<32x256xf32>
    %c0_3 = arith.constant 0 : index
    %c0_4 = arith.constant 0 : index
    %4 = vector.load %arg3[%c0_3, %c0_4] : memref<1x256xf32, #tpu.memory_space<vmem>>, vector<1x256xf32>
    %5 = vector.broadcast %4 : vector<1x256xf32> to vector<32x256xf32>
    %6 = arith.addf %3, %5 : vector<32x256xf32>
    %cst = arith.constant 0.000000e+00 : f32
    %7 = vector.broadcast %cst : f32 to vector<32x256xf32>
    %8 = arith.maximumf %6, %7 : vector<32x256xf32>
    %c0_5 = arith.constant 0 : index
    %c0_6 = arith.constant 0 : index
    %9 = vector.load %arg4[%c0_5, %c0_6] : memref<256x128xf32, #tpu.memory_space<vmem>>, vector<256x128xf32>
    %cst_7 = arith.constant dense<0.000000e+00> : vector<32x128xf32>
    %10 = tpu.matmul %8, %9, %cst_7 {dimension_numbers = #tpu.dot_dimension_numbers<[1], [0], [0], [1], [0, 0, 1, 1], [], []>} : vector<32x256xf32>, vector<256x128xf32>, vector<32x128xf32> -> vector<32x128xf32>
    %c0_8 = arith.constant 0 : index
    %c0_9 = arith.constant 0 : index
    %11 = vector.load %arg5[%c0_8, %c0_9] : memref<32x128xf32, #tpu.memory_space<vmem>>, vector<32x128xf32>
    tpu.vector_store %arg5[%c0_8, %c0_9], %10 {strides = array<i32>} : memref<32x128xf32, #tpu.memory_space<vmem>>, vector<32x128xf32>,
    %c32_i32 = arith.constant 32 : i32
    %12 = arith.muli %arg0, %c32_i32 : i32
    %13 = tpu.iota {dimensions = array<i32: 0>} : vector<32x1xi32>
    %14 = vector.broadcast %12 : i32 to vector<32x1xi32>
    %15 = arith.addi %14, %13 : vector<32x1xi32>
    %c32_i32_10 = arith.constant 32 : i32
    %16 = vector.broadcast %c32_i32_10 : i32 to vector<32x1xi32>
    %17 = arith.cmpi slt, %15, %16 : vector<32x1xi32>
    %cst_11 = arith.constant 0.000000e+00 : f32
    %18 = vector.shape_cast %17 : vector<32x1xi1> to vector<32x1xi1>
    %19 = vector.broadcast %18 : vector<32x1xi1> to vector<32x128xi1>
    %20 = vector.broadcast %cst_11 : f32 to vector<32x128xf32>
    %21 = arith.select %19, %10, %20 : vector<32x128xi1>, vector<32x128xf32>
    %cst_12 = arith.constant dense<0.000000e+00> : vector<128xf32>
    %22 = vector.multi_reduction <add>, %21, %cst_12 [0] : vector<32x128xf32> to vector<128xf32>
    %23 = vector.shape_cast %22 : vector<128xf32> to vector<1x128xf32>
    %24 = arith.mulf %21, %10 : vector<32x128xf32>
    %cst_13 = arith.constant dense<0.000000e+00> : vector<128xf32>
    %25 = vector.multi_reduction <add>, %24, %cst_13 [0] : vector<32x128xf32> to vector<128xf32>
    %26 = vector.shape_cast %25 : vector<128xf32> to vector<1x128xf32>
    %27 = tpu.concatenate %23, %26 in 0 : vector<1x128xf32>, vector<1x128xf32> -> vector<2x128xf32>
    %c0_14 = arith.constant 0 : index
    %c0_15 = arith.constant 0 : index
    %c0_16 = arith.constant 0 : index
    %28 = vector.load %arg6[%c0_14, %c0_15, %c0_16] : memref<1x2x128xf32, #tpu.memory_space<vmem>>, vector<1x2x128xf32>
    %29 = vector.shape_cast %28 : vector<1x2x128xf32> to vector<2x128xf32>
    %30 = vector.shape_cast %27 : vector<2x128xf32> to vector<1x2x128xf32>
    tpu.vector_store %arg6[%c0_14, %c0_15, %c0_16], %30 {strides = array<i32>} : memref<1x2x128xf32, #tpu.memory_space<vmem>>, vector<1x2x128xf32>,
    return
  }
  func.func @transform_0(%arg0: i32) -> (i32, i32) {
    %c0_i32 = arith.constant 0 : i32
    %c0_i32_0 = arith.constant 0 : i32
    return %arg0, %c0_i32 : i32, i32
  }
  func.func @transform_1(%arg0: i32) -> (i32, i32) {
    %c0_i32 = arith.constant 0 : i32
    %c0_i32_0 = arith.constant 0 : i32
    %c0_i32_1 = arith.constant 0 : i32
    return %c0_i32, %c0_i32_0 : i32, i32
  }
  func.func @transform_2(%arg0: i32) -> (i32, i32) {
    %c0_i32 = arith.constant 0 : i32
    %c0_i32_0 = arith.constant 0 : i32
    %c0_i32_1 = arith.constant 0 : i32
    return %c0_i32, %c0_i32_0 : i32, i32
  }
  func.func @transform_3(%arg0: i32) -> (i32, i32) {
    %c0_i32 = arith.constant 0 : i32
    %c0_i32_0 = arith.constant 0 : i32
    %c0_i32_1 = arith.constant 0 : i32
    return %c0_i32, %c0_i32_0 : i32, i32
  }
  func.func @transform_4(%arg0: i32) -> (i32, i32) {
    %c0_i32 = arith.constant 0 : i32
    %c0_i32_0 = arith.constant 0 : i32
    return %arg0, %c0_i32 : i32, i32
  }
  func.func @transform_5(%arg0: i32) -> (i32, i32, i32) {
    %c0_i32 = arith.constant 0 : i32
    %c0_i32_0 = arith.constant 0 : i32
    %c0_i32_1 = arith.constant 0 : i32
    return %arg0, %c0_i32, %c0_i32_0 : i32, i32, i32
  }
}

module attributes {stable_mosaic.version = 11 : i64} {
  func.func @_bn_relu_matmul_stats_kernel(%arg0: i32, %arg1: memref<32x128xf32, #tpu.memory_space<vmem>>, %arg2: memref<1x128xf32, #tpu.memory_space<vmem>>, %arg3: memref<1x128xf32, #tpu.memory_space<vmem>>, %arg4: memref<128x128xf32, #tpu.memory_space<vmem>>, %arg5: memref<32x128xf32, #tpu.memory_space<vmem>>, %arg6: memref<1x2x128xf32, #tpu.memory_space<vmem>>) attributes {dimension_semantics = [#tpu.dimension_semantics<parallel>], iteration_bounds = array<i64: 1>, scalar_prefetch = 0 : i64, scratch_operands = 0 : i64, tpu.core_type = #tpu.core_type<tc>, window_params = [{transform_indices = @transform_0, window_bounds = array<i64: 32, 128>}, {pipeline_mode = #tpu.pipeline_mode<synchronous>, transform_indices = @transform_1, window_bounds = array<i64: 1, 128>}, {pipeline_mode = #tpu.pipeline_mode<synchronous>, transform_indices = @transform_2, window_bounds = array<i64: 1, 128>}, {pipeline_mode = #tpu.pipeline_mode<synchronous>, transform_indices = @transform_3, window_bounds = array<i64: 128, 128>}, {transform_indices = @transform_4, window_bounds = array<i64: 32, 128>}, {transform_indices = @transform_5, window_bounds = array<i64: 1, 2, 128>}]} {
    %c0 = arith.constant 0 : index
    %c0_0 = arith.constant 0 : index
    %0 = vector.load %arg1[%c0, %c0_0] : memref<32x128xf32, #tpu.memory_space<vmem>>, vector<32x128xf32>
    %c0_1 = arith.constant 0 : index
    %c0_2 = arith.constant 0 : index
    %1 = vector.load %arg2[%c0_1, %c0_2] : memref<1x128xf32, #tpu.memory_space<vmem>>, vector<1x128xf32>
    %2 = vector.broadcast %1 : vector<1x128xf32> to vector<32x128xf32>
    %3 = arith.mulf %0, %2 : vector<32x128xf32>
    %c0_3 = arith.constant 0 : index
    %c0_4 = arith.constant 0 : index
    %4 = vector.load %arg3[%c0_3, %c0_4] : memref<1x128xf32, #tpu.memory_space<vmem>>, vector<1x128xf32>
    %5 = vector.broadcast %4 : vector<1x128xf32> to vector<32x128xf32>
    %6 = arith.addf %3, %5 : vector<32x128xf32>
    %cst = arith.constant 0.000000e+00 : f32
    %7 = vector.broadcast %cst : f32 to vector<32x128xf32>
    %8 = arith.maximumf %6, %7 : vector<32x128xf32>
    %c0_5 = arith.constant 0 : index
    %c0_6 = arith.constant 0 : index
    %9 = vector.load %arg4[%c0_5, %c0_6] : memref<128x128xf32, #tpu.memory_space<vmem>>, vector<128x128xf32>
    %cst_7 = arith.constant dense<0.000000e+00> : vector<32x128xf32>
    %10 = tpu.matmul %8, %9, %cst_7 {dimension_numbers = #tpu.dot_dimension_numbers<[1], [0], [0], [1], [0, 0, 1, 1], [], []>} : vector<32x128xf32>, vector<128x128xf32>, vector<32x128xf32> -> vector<32x128xf32>
    %c0_8 = arith.constant 0 : index
    %c0_9 = arith.constant 0 : index
    %11 = vector.load %arg5[%c0_8, %c0_9] : memref<32x128xf32, #tpu.memory_space<vmem>>, vector<32x128xf32>
    tpu.vector_store %arg5[%c0_8, %c0_9], %10 {strides = array<i32>} : memref<32x128xf32, #tpu.memory_space<vmem>>, vector<32x128xf32>,
    %c32_i32 = arith.constant 32 : i32
    %12 = arith.muli %arg0, %c32_i32 : i32
    %13 = tpu.iota {dimensions = array<i32: 0>} : vector<32x1xi32>
    %14 = vector.broadcast %12 : i32 to vector<32x1xi32>
    %15 = arith.addi %14, %13 : vector<32x1xi32>
    %c32_i32_10 = arith.constant 32 : i32
    %16 = vector.broadcast %c32_i32_10 : i32 to vector<32x1xi32>
    %17 = arith.cmpi slt, %15, %16 : vector<32x1xi32>
    %cst_11 = arith.constant 0.000000e+00 : f32
    %18 = vector.shape_cast %17 : vector<32x1xi1> to vector<32x1xi1>
    %19 = vector.broadcast %18 : vector<32x1xi1> to vector<32x128xi1>
    %20 = vector.broadcast %cst_11 : f32 to vector<32x128xf32>
    %21 = arith.select %19, %10, %20 : vector<32x128xi1>, vector<32x128xf32>
    %cst_12 = arith.constant dense<0.000000e+00> : vector<128xf32>
    %22 = vector.multi_reduction <add>, %21, %cst_12 [0] : vector<32x128xf32> to vector<128xf32>
    %23 = vector.shape_cast %22 : vector<128xf32> to vector<1x128xf32>
    %24 = arith.mulf %21, %10 : vector<32x128xf32>
    %cst_13 = arith.constant dense<0.000000e+00> : vector<128xf32>
    %25 = vector.multi_reduction <add>, %24, %cst_13 [0] : vector<32x128xf32> to vector<128xf32>
    %26 = vector.shape_cast %25 : vector<128xf32> to vector<1x128xf32>
    %27 = tpu.concatenate %23, %26 in 0 : vector<1x128xf32>, vector<1x128xf32> -> vector<2x128xf32>
    %c0_14 = arith.constant 0 : index
    %c0_15 = arith.constant 0 : index
    %c0_16 = arith.constant 0 : index
    %28 = vector.load %arg6[%c0_14, %c0_15, %c0_16] : memref<1x2x128xf32, #tpu.memory_space<vmem>>, vector<1x2x128xf32>
    %29 = vector.shape_cast %28 : vector<1x2x128xf32> to vector<2x128xf32>
    %30 = vector.shape_cast %27 : vector<2x128xf32> to vector<1x2x128xf32>
    tpu.vector_store %arg6[%c0_14, %c0_15, %c0_16], %30 {strides = array<i32>} : memref<1x2x128xf32, #tpu.memory_space<vmem>>, vector<1x2x128xf32>,
    return
  }
  func.func @transform_0(%arg0: i32) -> (i32, i32) {
    %c0_i32 = arith.constant 0 : i32
    %c0_i32_0 = arith.constant 0 : i32
    return %arg0, %c0_i32 : i32, i32
  }
  func.func @transform_1(%arg0: i32) -> (i32, i32) {
    %c0_i32 = arith.constant 0 : i32
    %c0_i32_0 = arith.constant 0 : i32
    %c0_i32_1 = arith.constant 0 : i32
    return %c0_i32, %c0_i32_0 : i32, i32
  }
  func.func @transform_2(%arg0: i32) -> (i32, i32) {
    %c0_i32 = arith.constant 0 : i32
    %c0_i32_0 = arith.constant 0 : i32
    %c0_i32_1 = arith.constant 0 : i32
    return %c0_i32, %c0_i32_0 : i32, i32
  }
  func.func @transform_3(%arg0: i32) -> (i32, i32) {
    %c0_i32 = arith.constant 0 : i32
    %c0_i32_0 = arith.constant 0 : i32
    %c0_i32_1 = arith.constant 0 : i32
    return %c0_i32, %c0_i32_0 : i32, i32
  }
  func.func @transform_4(%arg0: i32) -> (i32, i32) {
    %c0_i32 = arith.constant 0 : i32
    %c0_i32_0 = arith.constant 0 : i32
    return %arg0, %c0_i32 : i32, i32
  }
  func.func @transform_5(%arg0: i32) -> (i32, i32, i32) {
    %c0_i32 = arith.constant 0 : i32
    %c0_i32_0 = arith.constant 0 : i32
    %c0_i32_1 = arith.constant 0 : i32
    return %arg0, %c0_i32, %c0_i32_0 : i32, i32, i32
  }
}

module attributes {stable_mosaic.version = 11 : i64} {
  func.func @_bn_relu_matmul_stats_kernel(%arg0: i32, %arg1: memref<32x128xf32, #tpu.memory_space<vmem>>, %arg2: memref<1x128xf32, #tpu.memory_space<vmem>>, %arg3: memref<1x128xf32, #tpu.memory_space<vmem>>, %arg4: memref<128x4xf32, #tpu.memory_space<vmem>>, %arg5: memref<32x4xf32, #tpu.memory_space<vmem>>, %arg6: memref<1x2x4xf32, #tpu.memory_space<vmem>>) attributes {dimension_semantics = [#tpu.dimension_semantics<parallel>], iteration_bounds = array<i64: 1>, scalar_prefetch = 0 : i64, scratch_operands = 0 : i64, tpu.core_type = #tpu.core_type<tc>, window_params = [{transform_indices = @transform_0, window_bounds = array<i64: 32, 128>}, {pipeline_mode = #tpu.pipeline_mode<synchronous>, transform_indices = @transform_1, window_bounds = array<i64: 1, 128>}, {pipeline_mode = #tpu.pipeline_mode<synchronous>, transform_indices = @transform_2, window_bounds = array<i64: 1, 128>}, {pipeline_mode = #tpu.pipeline_mode<synchronous>, transform_indices = @transform_3, window_bounds = array<i64: 128, 4>}, {transform_indices = @transform_4, window_bounds = array<i64: 32, 4>}, {transform_indices = @transform_5, window_bounds = array<i64: 1, 2, 4>}]} {
    %c0 = arith.constant 0 : index
    %c0_0 = arith.constant 0 : index
    %0 = vector.load %arg1[%c0, %c0_0] : memref<32x128xf32, #tpu.memory_space<vmem>>, vector<32x128xf32>
    %c0_1 = arith.constant 0 : index
    %c0_2 = arith.constant 0 : index
    %1 = vector.load %arg2[%c0_1, %c0_2] : memref<1x128xf32, #tpu.memory_space<vmem>>, vector<1x128xf32>
    %2 = vector.broadcast %1 : vector<1x128xf32> to vector<32x128xf32>
    %3 = arith.mulf %0, %2 : vector<32x128xf32>
    %c0_3 = arith.constant 0 : index
    %c0_4 = arith.constant 0 : index
    %4 = vector.load %arg3[%c0_3, %c0_4] : memref<1x128xf32, #tpu.memory_space<vmem>>, vector<1x128xf32>
    %5 = vector.broadcast %4 : vector<1x128xf32> to vector<32x128xf32>
    %6 = arith.addf %3, %5 : vector<32x128xf32>
    %cst = arith.constant 0.000000e+00 : f32
    %7 = vector.broadcast %cst : f32 to vector<32x128xf32>
    %8 = arith.maximumf %6, %7 : vector<32x128xf32>
    %c0_5 = arith.constant 0 : index
    %c0_6 = arith.constant 0 : index
    %9 = vector.load %arg4[%c0_5, %c0_6] : memref<128x4xf32, #tpu.memory_space<vmem>>, vector<128x4xf32>
    %cst_7 = arith.constant dense<0.000000e+00> : vector<32x4xf32>
    %10 = tpu.matmul %8, %9, %cst_7 {dimension_numbers = #tpu.dot_dimension_numbers<[1], [0], [0], [1], [0, 0, 1, 1], [], []>} : vector<32x128xf32>, vector<128x4xf32>, vector<32x4xf32> -> vector<32x4xf32>
    %c0_8 = arith.constant 0 : index
    %c0_9 = arith.constant 0 : index
    %11 = vector.load %arg5[%c0_8, %c0_9] : memref<32x4xf32, #tpu.memory_space<vmem>>, vector<32x4xf32>
    tpu.vector_store %arg5[%c0_8, %c0_9], %10 {strides = array<i32>} : memref<32x4xf32, #tpu.memory_space<vmem>>, vector<32x4xf32>,
    %c32_i32 = arith.constant 32 : i32
    %12 = arith.muli %arg0, %c32_i32 : i32
    %13 = tpu.iota {dimensions = array<i32: 0>} : vector<32x1xi32>
    %14 = vector.broadcast %12 : i32 to vector<32x1xi32>
    %15 = arith.addi %14, %13 : vector<32x1xi32>
    %c32_i32_10 = arith.constant 32 : i32
    %16 = vector.broadcast %c32_i32_10 : i32 to vector<32x1xi32>
    %17 = arith.cmpi slt, %15, %16 : vector<32x1xi32>
    %cst_11 = arith.constant 0.000000e+00 : f32
    %18 = vector.shape_cast %17 : vector<32x1xi1> to vector<32x1xi1>
    %19 = vector.broadcast %18 : vector<32x1xi1> to vector<32x4xi1>
    %20 = vector.broadcast %cst_11 : f32 to vector<32x4xf32>
    %21 = arith.select %19, %10, %20 : vector<32x4xi1>, vector<32x4xf32>
    %cst_12 = arith.constant dense<0.000000e+00> : vector<4xf32>
    %22 = vector.multi_reduction <add>, %21, %cst_12 [0] : vector<32x4xf32> to vector<4xf32>
    %23 = vector.shape_cast %22 : vector<4xf32> to vector<1x4xf32>
    %24 = arith.mulf %21, %10 : vector<32x4xf32>
    %cst_13 = arith.constant dense<0.000000e+00> : vector<4xf32>
    %25 = vector.multi_reduction <add>, %24, %cst_13 [0] : vector<32x4xf32> to vector<4xf32>
    %26 = vector.shape_cast %25 : vector<4xf32> to vector<1x4xf32>
    %27 = tpu.concatenate %23, %26 in 0 : vector<1x4xf32>, vector<1x4xf32> -> vector<2x4xf32>
    %c0_14 = arith.constant 0 : index
    %c0_15 = arith.constant 0 : index
    %c0_16 = arith.constant 0 : index
    %28 = vector.load %arg6[%c0_14, %c0_15, %c0_16] : memref<1x2x4xf32, #tpu.memory_space<vmem>>, vector<1x2x4xf32>
    %29 = vector.shape_cast %28 : vector<1x2x4xf32> to vector<2x4xf32>
    %30 = vector.shape_cast %27 : vector<2x4xf32> to vector<1x2x4xf32>
    tpu.vector_store %arg6[%c0_14, %c0_15, %c0_16], %30 {strides = array<i32>} : memref<1x2x4xf32, #tpu.memory_space<vmem>>, vector<1x2x4xf32>,
    return
  }
  func.func @transform_0(%arg0: i32) -> (i32, i32) {
    %c0_i32 = arith.constant 0 : i32
    %c0_i32_0 = arith.constant 0 : i32
    return %arg0, %c0_i32 : i32, i32
  }
  func.func @transform_1(%arg0: i32) -> (i32, i32) {
    %c0_i32 = arith.constant 0 : i32
    %c0_i32_0 = arith.constant 0 : i32
    %c0_i32_1 = arith.constant 0 : i32
    return %c0_i32, %c0_i32_0 : i32, i32
  }
  func.func @transform_2(%arg0: i32) -> (i32, i32) {
    %c0_i32 = arith.constant 0 : i32
    %c0_i32_0 = arith.constant 0 : i32
    %c0_i32_1 = arith.constant 0 : i32
    return %c0_i32, %c0_i32_0 : i32, i32
  }
  func.func @transform_3(%arg0: i32) -> (i32, i32) {
    %c0_i32 = arith.constant 0 : i32
    %c0_i32_0 = arith.constant 0 : i32
    %c0_i32_1 = arith.constant 0 : i32
    return %c0_i32, %c0_i32_0 : i32, i32
  }
  func.func @transform_4(%arg0: i32) -> (i32, i32) {
    %c0_i32 = arith.constant 0 : i32
    %c0_i32_0 = arith.constant 0 : i32
    return %arg0, %c0_i32 : i32, i32
  }
  func.func @transform_5(%arg0: i32) -> (i32, i32, i32) {
    %c0_i32 = arith.constant 0 : i32
    %c0_i32_0 = arith.constant 0 : i32
    %c0_i32_1 = arith.constant 0 : i32
    return %arg0, %c0_i32, %c0_i32_0 : i32, i32, i32
  }
}

module attributes {stable_mosaic.version = 11 : i64} {
  func.func @_bn_relu_kernel(%arg0: i32, %arg1: memref<32x4xf32, #tpu.memory_space<vmem>>, %arg2: memref<1x4xf32, #tpu.memory_space<vmem>>, %arg3: memref<1x4xf32, #tpu.memory_space<vmem>>, %arg4: memref<32x4xf32, #tpu.memory_space<vmem>>) attributes {dimension_semantics = [#tpu.dimension_semantics<parallel>], iteration_bounds = array<i64: 1>, scalar_prefetch = 0 : i64, scratch_operands = 0 : i64, tpu.core_type = #tpu.core_type<tc>, window_params = [{transform_indices = @transform_0, window_bounds = array<i64: 32, 4>}, {pipeline_mode = #tpu.pipeline_mode<synchronous>, transform_indices = @transform_1, window_bounds = array<i64: 1, 4>}, {pipeline_mode = #tpu.pipeline_mode<synchronous>, transform_indices = @transform_2, window_bounds = array<i64: 1, 4>}, {transform_indices = @transform_3, window_bounds = array<i64: 32, 4>}]} {
    %c0 = arith.constant 0 : index
    %c0_0 = arith.constant 0 : index
    %0 = vector.load %arg1[%c0, %c0_0] : memref<32x4xf32, #tpu.memory_space<vmem>>, vector<32x4xf32>
    %c0_1 = arith.constant 0 : index
    %c0_2 = arith.constant 0 : index
    %1 = vector.load %arg2[%c0_1, %c0_2] : memref<1x4xf32, #tpu.memory_space<vmem>>, vector<1x4xf32>
    %2 = vector.broadcast %1 : vector<1x4xf32> to vector<32x4xf32>
    %3 = arith.mulf %0, %2 : vector<32x4xf32>
    %c0_3 = arith.constant 0 : index
    %c0_4 = arith.constant 0 : index
    %4 = vector.load %arg3[%c0_3, %c0_4] : memref<1x4xf32, #tpu.memory_space<vmem>>, vector<1x4xf32>
    %5 = vector.broadcast %4 : vector<1x4xf32> to vector<32x4xf32>
    %6 = arith.addf %3, %5 : vector<32x4xf32>
    %cst = arith.constant 0.000000e+00 : f32
    %7 = vector.broadcast %cst : f32 to vector<32x4xf32>
    %8 = arith.maximumf %6, %7 : vector<32x4xf32>
    %c0_5 = arith.constant 0 : index
    %c0_6 = arith.constant 0 : index
    %9 = vector.load %arg4[%c0_5, %c0_6] : memref<32x4xf32, #tpu.memory_space<vmem>>, vector<32x4xf32>
    tpu.vector_store %arg4[%c0_5, %c0_6], %8 {strides = array<i32>} : memref<32x4xf32, #tpu.memory_space<vmem>>, vector<32x4xf32>,
    return
  }
  func.func @transform_0(%arg0: i32) -> (i32, i32) {
    %c0_i32 = arith.constant 0 : i32
    %c0_i32_0 = arith.constant 0 : i32
    return %arg0, %c0_i32 : i32, i32
  }
  func.func @transform_1(%arg0: i32) -> (i32, i32) {
    %c0_i32 = arith.constant 0 : i32
    %c0_i32_0 = arith.constant 0 : i32
    %c0_i32_1 = arith.constant 0 : i32
    return %c0_i32, %c0_i32_0 : i32, i32
  }
  func.func @transform_2(%arg0: i32) -> (i32, i32) {
    %c0_i32 = arith.constant 0 : i32
    %c0_i32_0 = arith.constant 0 : i32
    %c0_i32_1 = arith.constant 0 : i32
    return %c0_i32, %c0_i32_0 : i32, i32
  }
  func.func @transform_3(%arg0: i32) -> (i32, i32) {
    %c0_i32 = arith.constant 0 : i32
    %c0_i32_0 = arith.constant 0 : i32
    return %arg0, %c0_i32 : i32, i32
  }
}

</mosaic_0001>

<bundles_post_ra>
// kernel: segmentation_network.8
= control target key start
LH: loop header
LB: loop body
LE: loop exit
PB: predicated region body
PF: predicated region fallthrough
CT: control target
= control target key end

     0   :  { %v29_v3 = vlaneseq  ;;  %vm245_vm0 = vcmask 1040384   ;;  %s523_s3 = inlined_call_operand.vmem [shape: f32[256,128], index: 3, kind: input, shape index: {}]   ;;  %s524_s0 = inlined_call_operand.vmem [shape: f32[32,256], index: 0, kind: input, shape index: {}]   ;;  %s525_s1 = inlined_call_operand.vmem [shape: f32[1,256], index: 1, kind: input, shape index: {}]   ;;  %s526_s2 = inlined_call_operand.vmem [shape: f32[1,256], index: 2, kind: input, shape index: {}]   ;;  %s527_s4 = inlined_call_operand.vmem [shape: f32[32,128], index: 4, kind: output, shape index: {0}]   ;;  %s528_s5 = inlined_call_operand.vmem [shape: f32[1,2,128], index: 5, kind: output, shape index: {1}]  }
   0x1   :  { %v91_v0 = vld [vmem:[%s523_s3 + $0x80] sm:$0xff]  ;;  %v92_v1 = vld [vmem:[%s523_s3 + $0x88] sm:$0xff]  ;;  %v93_v6 = vld [vmem:[%s523_s3 + $0x90] sm:$0xff] }
   0x2   :  { %v75_v2 = vld [vmem:[%s523_s3] sm:$0xff]  ;;  %v300_v4 = vpack.c.bf16 %v92_v1, %v91_v0  ;;  %v76_v5 = vld [vmem:[%s523_s3 + $0x8] sm:$0xff]  ;;  %v94_v7 = vld [vmem:[%s523_s3 + $0x98] sm:$0xff]  ;;  %v408_v15 = vshrl.u32 %v29_v3, 7 }
   0x3   :  { %v302_v8 = vpack.c.bf16 %v76_v5, %v75_v2  ;;  %v304_v9 = vpack.c.bf16 %v94_v7, %v93_v6  ;;  %v77_v10 = vld [vmem:[%s523_s3 + $0x10] sm:$0xff]  ;;  %v78_v11 = vld [vmem:[%s523_s3 + $0x18] sm:$0xff]  ;;  %v95_v12 = vld [vmem:[%s523_s3 + $0xa0] sm:$0xff] }
   0x4   :  { %301 = vmatprep.subr.bf16.mxu0 %v300_v4  ;;  %332 = vmatprep.subr.bf16.mxu1 %v300_v4  ;;  %v96_v13 = vld [vmem:[%s523_s3 + $0xa8] sm:$0xff]  ;;  %v306_v14 = vpack.c.bf16 %v78_v11, %v77_v10  ;;  %v79_v17 = vld [vmem:[%s523_s3 + $0x20] sm:$0xff]  ;;  %v97_v19 = vld [vmem:[%s523_s3 + $0xb0] sm:$0xff]  ;;  %v35_v22 = vsub.s32 1, %v408_v15  ;;  %v31_v42 = vsub.s32 0, %v408_v15 }
   0x5   :  { %303 = vmatpush3.bf16.msra.mxu0 %v302_v8  ;;  %340 = vmatpush3.bf16.msra.mxu1 %v302_v8  ;;  %v308_v16 = vpack.c.bf16 %v96_v13, %v95_v12  ;;  %v80_v18 = vld [vmem:[%s523_s3 + $0x28] sm:$0xff]  ;;  %v98_v20 = vld [vmem:[%s523_s3 + $0xb8] sm:$0xff]  ;;  %v81_v24 = vld [vmem:[%s523_s3 + $0x30] sm:$0xff] }
   0x6   :  { %305 = vmatprep.subr.bf16.mxu0 %v304_v9  ;;  %333 = vmatprep.subr.bf16.mxu1 %v304_v9  ;;  %v310_v21 = vpack.c.bf16 %v80_v18, %v79_v17  ;;  %v312_v23 = vpack.c.bf16 %v98_v20, %v97_v19  ;;  %v82_v25 = vld [vmem:[%s523_s3 + $0x38] sm:$0xff]  ;;  %v99_v26 = vld [vmem:[%s523_s3 + $0xc0] sm:$0xff]  ;;  %v100_v27 = vld [vmem:[%s523_s3 + $0xc8] sm:$0xff] }
   0x7   :  { %v20_v28 = vld [vmem:[%s524_s0 + $0x8] sm:$0xff]  ;;  %v27_v29 = vld [vmem:[%s525_s1] sm:$0x3]  ;;  %v314_v31 = vpack.c.bf16 %v82_v25, %v81_v24  ;;  %v316_v34 = vpack.c.bf16 %v100_v27, %v99_v26  ;;  %v101_v38 = vld [vmem:[%s523_s3 + $0xd0] sm:$0xff] }
   0x8   :  { %v47_v30 = vld [vmem:[%s526_s2] sm:$0x3]  ;;  %v36_v32 = vrot.slane %v27_v29, %v35_v22  ;;  %v24_v33 = vld [vmem:[%s524_s0 + $0x28] sm:$0xff]  ;;  %v102_v39 = vld [vmem:[%s523_s3 + $0xd8] sm:$0xff]  ;;  %v32_v53 = vrot.slane %v27_v29, %v31_v42 }
   0x9   :  { %307 = vmatpush3.bf16.msra.mxu0 %v306_v14  ;;  %341 = vmatpush3.bf16.msra.mxu1 %v306_v14  ;;  %v83_v35 = vld [vmem:[%s523_s3 + $0x40] sm:$0xff]  ;;  %v84_v36 = vld [vmem:[%s523_s3 + $0x48] sm:$0xff]  ;;  %v56_v37 = vrot.slane %v47_v30, %v35_v22  ;;  %v320_v46 = vpack.c.bf16 %v102_v39, %v101_v38  ;;  %v85_v47 = vld [vmem:[%s523_s3 + $0x50] sm:$0xff]  ;;  %v52_v0 = vrot.slane %v47_v30, %v31_v42 }
   0xa   :  { %309 = vmatprep.subr.bf16.mxu0 %v308_v16  ;;  %334 = vmatprep.subr.bf16.mxu1 %v308_v16  ;;  %v40_v40 = vmul.f32 %v36_v32, %v20_v28  ;;  %v44_v41 = vmul.f32 %v36_v32, %v24_v33  ;;  %v318_v43 = vpack.c.bf16 %v84_v36, %v83_v35  ;;  %v86_v48 = vld [vmem:[%s523_s3 + $0x58] sm:$0xff]  ;;  %v103_v49 = vld [vmem:[%s523_s3 + $0xe0] sm:$0xff]  ;;  %v104_v50 = vld [vmem:[%s523_s3 + $0xe8] sm:$0xff] }
   0xb   :  { %v322_v54 = vpack.c.bf16 %v86_v48, %v85_v47  ;;  %v87_v55 = vld [vmem:[%s523_s3 + $0x60] sm:$0xff]  ;;  %v324_v58 = vpack.c.bf16 %v104_v50, %v103_v49  ;;  %v88_v59 = vld [vmem:[%s523_s3 + $0x68] sm:$0xff]  ;;  %v22_v60 = vld [vmem:[%s524_s0 + $0x18] sm:$0xff] }
   0xc   :  { %v60_v44 = vadd.f32 %v56_v37, %v40_v40  ;;  %v64_v45 = vadd.f32 %v56_v37, %v44_v41  ;;  %v19_v56 = vld [vmem:[%s524_s0] sm:$0xff]  ;;  %v26_v61 = vld [vmem:[%s524_s0 + $0x38] sm:$0xff]  ;;  %v105_v62 = vld [vmem:[%s523_s3 + $0xf0] sm:$0xff]  ;;  %v326_v3 = vpack.c.bf16 %v88_v59, %v87_v55  ;;  %v42_v4 = vmul.f32 %v36_v32, %v22_v60 }
   0xd   :  { %311 = vmatpush3.bf16.msra.mxu0 %v310_v21  ;;  %342 = vmatpush3.bf16.msra.mxu1 %v310_v21  ;;  %v23_v57 = vld [vmem:[%s524_s0 + $0x20] sm:$0xff]  ;;  %v106_v63 = vld [vmem:[%s523_s3 + $0xf8] sm:$0xff]  ;;  %v39_v1 = vmul.f32 %v32_v53, %v19_v56  ;;  %v21_v5 = vld [vmem:[%s524_s0 + $0x10] sm:$0xff]  ;;  %v46_v6 = vmul.f32 %v36_v32, %v26_v61 }
   0xe   :  { %313 = vmatprep.subr.bf16.mxu0 %v312_v23  ;;  %335 = vmatprep.subr.bf16.mxu1 %v312_v23  ;;  %v68_v51 = vmax.f32 %v60_v44, 0.0  ;;  %v72_v52 = vmax.f32 %v64_v45, 0.0  ;;  %v43_v2 = vmul.f32 %v32_v53, %v23_v57  ;;  %v25_v7 = vld [vmem:[%s524_s0 + $0x30] sm:$0xff]  ;;  %v328_v8 = vpack.c.bf16 %v106_v63, %v105_v62  ;;  %v90_v10 = vld [vmem:[%s523_s3 + $0x78] sm:$0xff] }
   0xf   :  { %v89_v9 = vld [vmem:[%s523_s3 + $0x70] sm:$0xff]  ;;  %v59_v11 = vadd.f32 %v52_v0, %v39_v1  ;;  %v41_v13 = vmul.f32 %v32_v53, %v21_v5  ;;  %v45_v14 = vmul.f32 %v32_v53, %v25_v7  ;;  %v62_v16 = vadd.f32 %v56_v37, %v42_v4 }
  0x10   :  { %171 = vmatprep.mubr.f32.mxu0 %v68_v51  ;;  %181 = vmatprep.mubr.f32.mxu1 %v72_v52  ;;  %v63_v12 = vadd.f32 %v52_v0, %v43_v2  ;;  %v330_v15 = vpack.c.bf16 %v90_v10, %v89_v9  ;;  %v66_v17 = vadd.f32 %v56_v37, %v46_v6 }
  0x11   :  { %315 = vmatpush3.bf16.msra.mxu0 %v314_v31  ;;  %343 = vmatpush3.bf16.msra.mxu1 %v314_v31  ;;  %v67_v18 = vmax.f32 %v59_v11, 0.0  ;;  %v61_v20 = vadd.f32 %v52_v0, %v41_v13  ;;  %v65_v21 = vadd.f32 %v52_v0, %v45_v14  ;;  %v70_v22 = vmax.f32 %v62_v16, 0.0 }
  0x12   :  { %317 = vmatprep.subr.bf16.mxu0 %v316_v34  ;;  %336 = vmatprep.subr.bf16.mxu1 %v316_v34  ;;  %v71_v19 = vmax.f32 %v63_v12, 0.0  ;;  %v74_v23 = vmax.f32 %v66_v17, 0.0 }
  0x13   :  { %v69_v24 = vmax.f32 %v61_v20, 0.0  ;;  %v73_v25 = vmax.f32 %v65_v21, 0.0 }
  0x15   :  { %319 = vmatpush3.bf16.msra.mxu0 %v318_v43  ;;  %344 = vmatpush3.bf16.msra.mxu1 %v318_v43 }
  0x16   :  { %321 = vmatprep.subr.bf16.mxu0 %v320_v46  ;;  %337 = vmatprep.subr.bf16.mxu1 %v320_v46 }
  0x19   :  { %323 = vmatpush3.bf16.msra.mxu0 %v322_v54  ;;  %345 = vmatpush3.bf16.msra.mxu1 %v322_v54 }
  0x1a   :  { %325 = vmatprep.subr.bf16.mxu0 %v324_v58  ;;  %338 = vmatprep.subr.bf16.mxu1 %v324_v58 }
  0x1d   :  { %327 = vmatpush3.bf16.msra.mxu0 %v326_v3  ;;  %346 = vmatpush3.bf16.msra.mxu1 %v326_v3 }
  0x1e   :  { %329 = vmatprep.subr.bf16.mxu0 %v328_v8  ;;  %339 = vmatprep.subr.bf16.mxu1 %v328_v8 }
  0x21   :  { %331 = vmatpush3.bf16.msra.mxu0 %v330_v15  ;;  %347 = vmatpush3.bf16.msra.mxu1 %v330_v15 }
  0x24   :  { %172 = vmatmul.mubr.f32.vlgmr.msra.gmra.mrb[0].mxu0 %v67_v18  ;;  %182 = vmatmul.mubr.f32.vlgmr.msra.gmra.mrb[0].mxu1 %v71_v19 }
  0x25   :  { %176 = vmatprep.mubr.f32.mxu0 %v70_v22  ;;  %186 = vmatprep.mubr.f32.mxu1 %v74_v23 }
  0x28   :  { %177 = vmatmul.mubr.f32.gmra.mrb[2].mxu0 %v69_v24  ;;  %187 = vmatmul.mubr.f32.gmra.mrb[2].mxu1 %v73_v25 }
  0xf7   :  { %v288_v26 = vpop.f32.mrb[0].mxu0  ;;  %v294_v27 = vpop.f32.mrb[0].mxu1 }
  0xf8   :  { %v289_v28 = vpop.f32.mrb[1].mxu0  ;;  %v295_v29 = vpop.f32.mrb[1].mxu1 }
  0xf9   :  { %v290_v30 = vadd.f32 %v289_v28, %v288_v26  ;;  %v296_v31 = vadd.f32 %v295_v29, %v294_v27 }
  0xfb   :  { %192 = vst [vmem:[%s527_s4] sm:$0xff] %v290_v30  ;;  %v291_v32 = vpop.f32.mrb[2].mxu0  ;;  %194 = vst [vmem:[%s527_s4 + $0x10] sm:$0xff] %v296_v31  ;;  %v297_v33 = vpop.f32.mrb[2].mxu1  ;;  %v232_v38 = vmul.f32 %v290_v30, %v290_v30  ;;  %v234_v41 = vmul.f32 %v296_v31, %v296_v31 }
  0xfc   :  { %v292_v34 = vpop.f32.mrb[3].mxu0  ;;  %v298_v35 = vpop.f32.mrb[3].mxu1 }
  0xfd   :  { %v293_v36 = vadd.f32 %v292_v34, %v291_v32  ;;  %v299_v37 = vadd.f32 %v298_v35, %v297_v33 }
  0xff   :  { %193 = vst [vmem:[%s527_s4 + $0x8] sm:$0xff] %v293_v36  ;;  %v223_v39 = vadd.f32 %v293_v36, %v290_v30  ;;  %v233_v40 = vmul.f32 %v293_v36, %v293_v36  ;;  %195 = vst [vmem:[%s527_s4 + $0x18] sm:$0xff] %v299_v37  ;;  %v235_v44 = vmul.f32 %v299_v37, %v299_v37 }
 0x101   :  { %v236_v42 = vadd.f32 %v233_v40, %v232_v38  ;;  %v224_v43 = vadd.f32 %v296_v31, %v223_v39 }
 0x103   :  { %v225_v45 = vadd.f32 %v299_v37, %v224_v43  ;;  %v237_v46 = vadd.f32 %v236_v42, %v234_v41 }
 0x105   :  { %v226_v47 = vrot.slane %v225_v45, 4  ;;  %v238_v48 = vadd.f32 %v237_v46, %v235_v44 }
 0x107   :  { %v227_v49 = vadd.f32 %v226_v47, %v225_v45  ;;  %v239_v50 = vrot.slane %v238_v48, 4 }
 0x109   :  { %v228_v51 = vrot.slane %v227_v49, 2  ;;  %v240_v52 = vadd.f32 %v239_v50, %v238_v48 }
 0x10b   :  { %v229_v53 = vadd.f32 %v228_v51, %v227_v49  ;;  %v241_v54 = vrot.slane %v240_v52, 2 }
 0x10d   :  { %v230_v55 = vrot.slane %v229_v53, 1  ;;  %v242_v56 = vadd.f32 %v241_v54, %v240_v52 }
 0x10f   :  { %v243_v57 = vrot.slane %v242_v56, 1  ;;  %v231_v58 = vadd.f32 %v230_v55, %v229_v53 }
 0x111   :  { %v244_v59 = vadd.f32 %v243_v57, %v242_v56 }
 0x113   :  { %v246_v60 = vsel %vm245_vm0, %v231_v58, %v244_v59 }
 0x114   :  { %247 = vst [vmem:[%s528_s5] sm:$0x3] %v246_v60 }

// kernel: segmentation_network.9
= control target key start
LH: loop header
LB: loop body
LE: loop exit
PB: predicated region body
PF: predicated region fallthrough
CT: control target
= control target key end

     0   :  { %vm203_vm0 = vcmask 1040384   ;;  %s433_s3 = inlined_call_operand.vmem [shape: f32[128,128], index: 3, kind: input, shape index: {}]   ;;  %s434_s0 = inlined_call_operand.vmem [shape: f32[32,128], index: 0, kind: input, shape index: {}]   ;;  %s435_s1 = inlined_call_operand.vmem [shape: f32[1,128], index: 1, kind: input, shape index: {}]   ;;  %s436_s2 = inlined_call_operand.vmem [shape: f32[1,128], index: 2, kind: input, shape index: {}]   ;;  %s437_s4 = inlined_call_operand.vmem [shape: f32[32,128], index: 4, kind: output, shape index: {0}]   ;;  %s438_s5 = inlined_call_operand.vmem [shape: f32[1,2,128], index: 5, kind: output, shape index: {1}]  }
   0x1   :  { %v49_v0 = vld [vmem:[%s433_s3] sm:$0xff]  ;;  %v50_v1 = vld [vmem:[%s433_s3 + $0x8] sm:$0xff]  ;;  %v51_v2 = vld [vmem:[%s433_s3 + $0x10] sm:$0xff] }
   0x2   :  { %v274_v3 = vpack.c.bf16 %v50_v1, %v49_v0  ;;  %v52_v4 = vld [vmem:[%s433_s3 + $0x18] sm:$0xff]  ;;  %v53_v6 = vld [vmem:[%s433_s3 + $0x20] sm:$0xff]  ;;  %v54_v7 = vld [vmem:[%s433_s3 + $0x28] sm:$0xff] }
   0x3   :  { %v278_v5 = vpack.c.bf16 %v52_v4, %v51_v2  ;;  %v282_v8 = vpack.c.bf16 %v54_v7, %v53_v6  ;;  %v55_v9 = vld [vmem:[%s433_s3 + $0x30] sm:$0xff]  ;;  %v19_v10 = vld [vmem:[%s434_s0] sm:$0xff]  ;;  %v56_v12 = vld [vmem:[%s433_s3 + $0x38] sm:$0xff] }
   0x4   :  { %275 = vmatprep.subr.bf16.mxu0 %v274_v3  ;;  %306 = vmatprep.subr.bf16.mxu1 %v274_v3  ;;  %v214_v11 = vld [vmem:[%s435_s1] ss:$0 sm:$0xff]  ;;  %v21_v15 = vld [vmem:[%s434_s0 + $0x10] sm:$0xff]  ;;  %v286_v18 = vpack.c.bf16 %v56_v12, %v55_v9  ;;  %v58_v21 = vld [vmem:[%s433_s3 + $0x48] sm:$0xff] }
   0x5   :  { %277 = vmatpush3.bf16.msra.mxu0 %v274_v3  ;;  %314 = vmatpush3.bf16.msra.mxu1 %v274_v3  ;;  %v30_v13 = vmul.f32 %v214_v11, %v19_v10  ;;  %v215_v14 = vld [vmem:[%s436_s2] ss:$0 sm:$0xff]  ;;  %v32_v16 = vmul.f32 %v214_v11, %v21_v15  ;;  %v59_v25 = vld [vmem:[%s433_s3 + $0x50] sm:$0xff]  ;;  %v60_v26 = vld [vmem:[%s433_s3 + $0x58] sm:$0xff] }
   0x6   :  { %279 = vmatprep.subr.bf16.mxu0 %v278_v5  ;;  %307 = vmatprep.subr.bf16.mxu1 %v278_v5  ;;  %v57_v20 = vld [vmem:[%s433_s3 + $0x40] sm:$0xff]  ;;  %v294_v27 = vpack.c.bf16 %v60_v26, %v59_v25  ;;  %v62_v29 = vld [vmem:[%s433_s3 + $0x68] sm:$0xff]  ;;  %v22_v31 = vld [vmem:[%s434_s0 + $0x18] sm:$0xff] }
   0x7   :  { %v41_v17 = vadd.f32 %v215_v14, %v30_v13  ;;  %v43_v19 = vadd.f32 %v215_v14, %v32_v16  ;;  %v290_v24 = vpack.c.bf16 %v58_v21, %v57_v20  ;;  %v61_v28 = vld [vmem:[%s433_s3 + $0x60] sm:$0xff]  ;;  %v20_v30 = vld [vmem:[%s434_s0 + $0x8] sm:$0xff]  ;;  %v63_v33 = vld [vmem:[%s433_s3 + $0x70] sm:$0xff]  ;;  %v33_v36 = vmul.f32 %v214_v11, %v22_v31 }
   0x8   :  { %v298_v32 = vpack.c.bf16 %v62_v29, %v61_v28  ;;  %v64_v34 = vld [vmem:[%s433_s3 + $0x78] sm:$0xff]  ;;  %v31_v35 = vmul.f32 %v214_v11, %v20_v30 }
   0x9   :  { %281 = vmatpush3.bf16.msra.mxu0 %v278_v5  ;;  %315 = vmatpush3.bf16.msra.mxu1 %v278_v5  ;;  %v45_v22 = vmax.f32 %v41_v17, 0.0  ;;  %v47_v23 = vmax.f32 %v43_v19, 0.0  ;;  %v302_v37 = vpack.c.bf16 %v64_v34, %v63_v33  ;;  %v44_v39 = vadd.f32 %v215_v14, %v33_v36 }
   0xa   :  { %283 = vmatprep.subr.bf16.mxu0 %v282_v8  ;;  %308 = vmatprep.subr.bf16.mxu1 %v282_v8  ;;  %v42_v38 = vadd.f32 %v215_v14, %v31_v35 }
   0xb   :  { %268 = vmatprep.mubr.f32.mxu0 %v45_v22  ;;  %271 = vmatprep.mubr.f32.mxu1 %v47_v23  ;;  %v48_v41 = vmax.f32 %v44_v39, 0.0 }
   0xc   :  { %v46_v40 = vmax.f32 %v42_v38, 0.0 }
   0xd   :  { %285 = vmatpush3.bf16.msra.mxu0 %v282_v8  ;;  %316 = vmatpush3.bf16.msra.mxu1 %v282_v8 }
   0xe   :  { %287 = vmatprep.subr.bf16.mxu0 %v286_v18  ;;  %309 = vmatprep.subr.bf16.mxu1 %v286_v18 }
  0x11   :  { %289 = vmatpush3.bf16.msra.mxu0 %v286_v18  ;;  %317 = vmatpush3.bf16.msra.mxu1 %v286_v18 }
  0x12   :  { %291 = vmatprep.subr.bf16.mxu0 %v290_v24  ;;  %310 = vmatprep.subr.bf16.mxu1 %v290_v24 }
  0x15   :  { %293 = vmatpush3.bf16.msra.mxu0 %v290_v24  ;;  %318 = vmatpush3.bf16.msra.mxu1 %v290_v24 }
  0x16   :  { %295 = vmatprep.subr.bf16.mxu0 %v294_v27  ;;  %311 = vmatprep.subr.bf16.mxu1 %v294_v27 }
  0x19   :  { %297 = vmatpush3.bf16.msra.mxu0 %v294_v27  ;;  %319 = vmatpush3.bf16.msra.mxu1 %v294_v27 }
  0x1a   :  { %299 = vmatprep.subr.bf16.mxu0 %v298_v32  ;;  %312 = vmatprep.subr.bf16.mxu1 %v298_v32 }
  0x1d   :  { %301 = vmatpush3.bf16.msra.mxu0 %v298_v32  ;;  %320 = vmatpush3.bf16.msra.mxu1 %v298_v32 }
  0x1e   :  { %303 = vmatprep.subr.bf16.mxu0 %v302_v37  ;;  %313 = vmatprep.subr.bf16.mxu1 %v302_v37 }
  0x21   :  { %305 = vmatpush3.bf16.msra.mxu0 %v302_v37  ;;  %321 = vmatpush3.bf16.msra.mxu1 %v302_v37 }
  0x24   :  { %269 = vmatmul.mubr.f32.vlgmr.msra.gmra.mrb[0].mxu0 %v46_v40  ;;  %272 = vmatmul.mubr.f32.vlgmr.msra.gmra.mrb[0].mxu1 %v48_v41 }
  0xf7   :  { %v270_v42 = vpop.f32.mrb[0].mxu0  ;;  %v273_v43 = vpop.f32.mrb[0].mxu1 }
  0xf8   :  { %151 = vst [vmem:[%s437_s4 + $0x8] sm:$0xff] %v270_v42  ;;  %v191_v44 = vmul.f32 %v270_v42, %v270_v42  ;;  %v131_v45 = vpop.f32.mrb[1].mxu0  ;;  %153 = vst [vmem:[%s437_s4 + $0x18] sm:$0xff] %v273_v43  ;;  %v141_v46 = vpop.f32.mrb[1].mxu1  ;;  %v193_v52 = vmul.f32 %v273_v43, %v273_v43 }
  0xf9   :  { %150 = vst [vmem:[%s437_s4] sm:$0xff] %v131_v45  ;;  %v181_v47 = vadd.f32 %v270_v42, %v131_v45  ;;  %v190_v48 = vmul.f32 %v131_v45, %v131_v45  ;;  %152 = vst [vmem:[%s437_s4 + $0x10] sm:$0xff] %v141_v46  ;;  %v192_v49 = vmul.f32 %v141_v46, %v141_v46 }
  0xfb   :  { %v194_v50 = vadd.f32 %v191_v44, %v190_v48  ;;  %v182_v51 = vadd.f32 %v181_v47, %v141_v46 }
  0xfd   :  { %v183_v53 = vadd.f32 %v273_v43, %v182_v51  ;;  %v195_v54 = vadd.f32 %v194_v50, %v192_v49 }
  0xff   :  { %v184_v55 = vrot.slane %v183_v53, 4  ;;  %v196_v56 = vadd.f32 %v195_v54, %v193_v52 }
 0x101   :  { %v185_v57 = vadd.f32 %v184_v55, %v183_v53  ;;  %v197_v58 = vrot.slane %v196_v56, 4 }
 0x103   :  { %v186_v59 = vrot.slane %v185_v57, 2  ;;  %v198_v60 = vadd.f32 %v197_v58, %v196_v56 }
 0x105   :  { %v187_v61 = vadd.f32 %v186_v59, %v185_v57  ;;  %v199_v62 = vrot.slane %v198_v60, 2 }
 0x107   :  { %v188_v63 = vrot.slane %v187_v61, 1  ;;  %v200_v0 = vadd.f32 %v199_v62, %v198_v60 }
 0x109   :  { %v201_v1 = vrot.slane %v200_v0, 1  ;;  %v189_v2 = vadd.f32 %v188_v63, %v187_v61 }
 0x10b   :  { %v202_v3 = vadd.f32 %v201_v1, %v200_v0 }
 0x10d   :  { %v204_v4 = vsel %vm203_vm0, %v189_v2, %v202_v3 }
 0x10e   :  { %205 = vst [vmem:[%s438_s5] sm:$0x3] %v204_v4 }

// kernel: segmentation_network.7
= control target key start
LH: loop header
LB: loop body
LE: loop exit
PB: predicated region body
PF: predicated region fallthrough
CT: control target
= control target key end

     0   :  { %vm516_vm0 = vcmask 1040384   ;;  %s1231_s3 = inlined_call_operand.vmem [shape: f32[512,256], index: 3, kind: input, shape index: {}]   ;;  %s1232_s0 = inlined_call_operand.vmem [shape: f32[32,512], index: 0, kind: input, shape index: {}]   ;;  %s1233_s1 = inlined_call_operand.vmem [shape: f32[1,512], index: 1, kind: input, shape index: {}]   ;;  %s1234_s2 = inlined_call_operand.vmem [shape: f32[1,512], index: 2, kind: input, shape index: {}]   ;;  %s1235_s4 = inlined_call_operand.vmem [shape: f32[32,256], index: 4, kind: output, shape index: {0}]   ;;  %s1236_s5 = inlined_call_operand.vmem [shape: f32[1,2,256], index: 5, kind: output, shape index: {1}]  }
   0x1   :  { %v128_v0 = vld [vmem:[%s1231_s3 + $0x8] sm:$0xff]  ;;  %v130_v1 = vld [vmem:[%s1231_s3 + $0x18] sm:$0xff]  ;;  %v127_v5 = vld [vmem:[%s1231_s3] sm:$0xff] }
   0x2   :  { %v192_v2 = vld [vmem:[%s1231_s3 + $0x208] sm:$0xff]  ;;  %v540_v3 = vpack.c.bf16 %v130_v1, %v128_v0  ;;  %v194_v4 = vld [vmem:[%s1231_s3 + $0x218] sm:$0xff]  ;;  %v129_v6 = vld [vmem:[%s1231_s3 + $0x10] sm:$0xff] }
   0x3   :  { %v604_v7 = vpack.c.bf16 %v194_v4, %v192_v2  ;;  %v542_v8 = vpack.c.bf16 %v129_v6, %v127_v5  ;;  %v191_v9 = vld [vmem:[%s1231_s3 + $0x200] sm:$0xff]  ;;  %v193_v10 = vld [vmem:[%s1231_s3 + $0x210] sm:$0xff]  ;;  %v132_v11 = vld [vmem:[%s1231_s3 + $0x28] sm:$0xff] }
   0x4   :  { %541 = vmatprep.subr.bf16.mxu1 %v540_v3  ;;  %v606_v12 = vpack.c.bf16 %v193_v10, %v191_v9  ;;  %v134_v13 = vld [vmem:[%s1231_s3 + $0x38] sm:$0xff]  ;;  %v196_v14 = vld [vmem:[%s1231_s3 + $0x228] sm:$0xff]  ;;  %v131_v18 = vld [vmem:[%s1231_s3 + $0x20] sm:$0xff] }
   0x5   :  { %v198_v15 = vld [vmem:[%s1231_s3 + $0x238] sm:$0xff]  ;;  %605 = vmatprep.subr.bf16.mxu0 %v604_v7  ;;  %543 = vmatpush1.bf16.msra.mxu1 %v542_v8  ;;  %v544_v16 = vpack.c.bf16 %v134_v13, %v132_v11  ;;  %v133_v19 = vld [vmem:[%s1231_s3 + $0x30] sm:$0xff]  ;;  %v195_v20 = vld [vmem:[%s1231_s3 + $0x220] sm:$0xff] }
   0x6   :  { %v608_v17 = vpack.c.bf16 %v198_v15, %v196_v14  ;;  %607 = vmatpush1.bf16.msra.mxu0 %v606_v12  ;;  %v546_v21 = vpack.c.bf16 %v133_v19, %v131_v18  ;;  %v197_v22 = vld [vmem:[%s1231_s3 + $0x230] sm:$0xff]  ;;  %v136_v23 = vld [vmem:[%s1231_s3 + $0x48] sm:$0xff]  ;;  %v138_v24 = vld [vmem:[%s1231_s3 + $0x58] sm:$0xff] }
   0x7   :  { %545 = vmatprep.subr.bf16.mxu1 %v544_v16  ;;  %v610_v25 = vpack.c.bf16 %v197_v22, %v195_v20  ;;  %v548_v26 = vpack.c.bf16 %v138_v24, %v136_v23  ;;  %v200_v27 = vld [vmem:[%s1231_s3 + $0x248] sm:$0xff]  ;;  %v202_v28 = vld [vmem:[%s1231_s3 + $0x258] sm:$0xff]  ;;  %v135_v29 = vld [vmem:[%s1231_s3 + $0x40] sm:$0xff] }
   0x8   :  { %609 = vmatprep.subr.bf16.mxu0 %v608_v17  ;;  %v612_v30 = vpack.c.bf16 %v202_v28, %v200_v27  ;;  %v137_v31 = vld [vmem:[%s1231_s3 + $0x50] sm:$0xff]  ;;  %v199_v32 = vld [vmem:[%s1231_s3 + $0x240] sm:$0xff]  ;;  %v140_v35 = vld [vmem:[%s1231_s3 + $0x68] sm:$0xff] }
   0x9   :  { %v201_v33 = vld [vmem:[%s1231_s3 + $0x250] sm:$0xff]  ;;  %547 = vmatpush1.bf16.msra.mxu1 %v546_v21  ;;  %v550_v34 = vpack.c.bf16 %v137_v31, %v135_v29  ;;  %v142_v36 = vld [vmem:[%s1231_s3 + $0x78] sm:$0xff]  ;;  %v204_v37 = vld [vmem:[%s1231_s3 + $0x268] sm:$0xff] }
   0xa   :  { %611 = vmatpush1.bf16.msra.mxu0 %v610_v25  ;;  %549 = vmatprep.subr.bf16.mxu1 %v548_v26  ;;  %v614_v38 = vpack.c.bf16 %v201_v33, %v199_v32  ;;  %v552_v39 = vpack.c.bf16 %v142_v36, %v140_v35  ;;  %v206_v40 = vld [vmem:[%s1231_s3 + $0x278] sm:$0xff]  ;;  %v139_v41 = vld [vmem:[%s1231_s3 + $0x60] sm:$0xff]  ;;  %v141_v42 = vld [vmem:[%s1231_s3 + $0x70] sm:$0xff] }
   0xb   :  { %613 = vmatprep.subr.bf16.mxu0 %v612_v30  ;;  %v616_v43 = vpack.c.bf16 %v206_v40, %v204_v37  ;;  %v203_v44 = vld [vmem:[%s1231_s3 + $0x260] sm:$0xff]  ;;  %v205_v45 = vld [vmem:[%s1231_s3 + $0x270] sm:$0xff]  ;;  %v144_v46 = vld [vmem:[%s1231_s3 + $0x88] sm:$0xff]  ;;  %v554_v50 = vpack.c.bf16 %v141_v42, %v139_v41 }
   0xc   :  { %v146_v47 = vld [vmem:[%s1231_s3 + $0x98] sm:$0xff]  ;;  %v208_v48 = vld [vmem:[%s1231_s3 + $0x288] sm:$0xff]  ;;  %v618_v51 = vpack.c.bf16 %v205_v45, %v203_v44  ;;  %v143_v53 = vld [vmem:[%s1231_s3 + $0x80] sm:$0xff] }
   0xd   :  { %v210_v49 = vld [vmem:[%s1231_s3 + $0x298] sm:$0xff]  ;;  %551 = vmatpush1.bf16.msra.mxu1 %v550_v34  ;;  %v556_v52 = vpack.c.bf16 %v146_v47, %v144_v46  ;;  %v145_v54 = vld [vmem:[%s1231_s3 + $0x90] sm:$0xff]  ;;  %v207_v55 = vld [vmem:[%s1231_s3 + $0x280] sm:$0xff]  ;;  %v37_v47 = vlaneseq }
   0xe   :  { %615 = vmatpush1.bf16.msra.mxu0 %v614_v38  ;;  %553 = vmatprep.subr.bf16.mxu1 %v552_v39  ;;  %v620_v56 = vpack.c.bf16 %v210_v49, %v208_v48  ;;  %v209_v57 = vld [vmem:[%s1231_s3 + $0x290] sm:$0xff]  ;;  %v148_v58 = vld [vmem:[%s1231_s3 + $0xa8] sm:$0xff]  ;;  %v150_v59 = vld [vmem:[%s1231_s3 + $0xb8] sm:$0xff]  ;;  %v558_v62 = vpack.c.bf16 %v145_v54, %v143_v53 }
   0xf   :  { %617 = vmatprep.subr.bf16.mxu0 %v616_v43  ;;  %v212_v60 = vld [vmem:[%s1231_s3 + $0x2a8] sm:$0xff]  ;;  %v214_v61 = vld [vmem:[%s1231_s3 + $0x2b8] sm:$0xff]  ;;  %v622_v63 = vpack.c.bf16 %v209_v57, %v207_v55  ;;  %v560_v0 = vpack.c.bf16 %v150_v59, %v148_v58  ;;  %v147_v1 = vld [vmem:[%s1231_s3 + $0xa0] sm:$0xff] }
  0x10   :  { %v149_v2 = vld [vmem:[%s1231_s3 + $0xb0] sm:$0xff]  ;;  %v211_v3 = vld [vmem:[%s1231_s3 + $0x2a0] sm:$0xff]  ;;  %v624_v4 = vpack.c.bf16 %v214_v61, %v212_v60  ;;  %v152_v6 = vld [vmem:[%s1231_s3 + $0xc8] sm:$0xff]  ;;  %v958_v60 = vshrl.u32 %v37_v47, 7 }
  0x11   :  { %555 = vmatpush1.bf16.msra.mxu1 %v554_v50  ;;  %v213_v5 = vld [vmem:[%s1231_s3 + $0x2b0] sm:$0xff]  ;;  %v154_v7 = vld [vmem:[%s1231_s3 + $0xd8] sm:$0xff]  ;;  %v216_v8 = vld [vmem:[%s1231_s3 + $0x2c8] sm:$0xff]  ;;  %v562_v10 = vpack.c.bf16 %v149_v2, %v147_v1 }
  0x12   :  { %619 = vmatpush1.bf16.msra.mxu0 %v618_v51  ;;  %557 = vmatprep.subr.bf16.mxu1 %v556_v52  ;;  %v218_v9 = vld [vmem:[%s1231_s3 + $0x2d8] sm:$0xff]  ;;  %v626_v11 = vpack.c.bf16 %v213_v5, %v211_v3  ;;  %v564_v12 = vpack.c.bf16 %v154_v7, %v152_v6  ;;  %v151_v13 = vld [vmem:[%s1231_s3 + $0xc0] sm:$0xff]  ;;  %v153_v14 = vld [vmem:[%s1231_s3 + $0xd0] sm:$0xff] }
  0x13   :  { %621 = vmatprep.subr.bf16.mxu0 %v620_v56  ;;  %v215_v15 = vld [vmem:[%s1231_s3 + $0x2c0] sm:$0xff]  ;;  %v628_v16 = vpack.c.bf16 %v218_v9, %v216_v8  ;;  %v217_v17 = vld [vmem:[%s1231_s3 + $0x2d0] sm:$0xff]  ;;  %v156_v18 = vld [vmem:[%s1231_s3 + $0xe8] sm:$0xff]  ;;  %v566_v22 = vpack.c.bf16 %v153_v14, %v151_v13  ;;  %v51_v13 = vsub.s32 3, %v958_v60 }
  0x14   :  { %v158_v19 = vld [vmem:[%s1231_s3 + $0xf8] sm:$0xff]  ;;  %v220_v20 = vld [vmem:[%s1231_s3 + $0x2e8] sm:$0xff]  ;;  %v630_v23 = vpack.c.bf16 %v217_v17, %v215_v15  ;;  %v155_v25 = vld [vmem:[%s1231_s3 + $0xe0] sm:$0xff] }
  0x15   :  { %559 = vmatpush1.bf16.msra.mxu1 %v558_v62  ;;  %v222_v21 = vld [vmem:[%s1231_s3 + $0x2f8] sm:$0xff]  ;;  %v568_v24 = vpack.c.bf16 %v158_v19, %v156_v18  ;;  %v157_v26 = vld [vmem:[%s1231_s3 + $0xf0] sm:$0xff]  ;;  %v219_v27 = vld [vmem:[%s1231_s3 + $0x2e0] sm:$0xff] }
  0x16   :  { %623 = vmatpush1.bf16.msra.mxu0 %v622_v63  ;;  %561 = vmatprep.subr.bf16.mxu1 %v560_v0  ;;  %v632_v28 = vpack.c.bf16 %v222_v21, %v220_v20  ;;  %v221_v29 = vld [vmem:[%s1231_s3 + $0x2f0] sm:$0xff]  ;;  %v160_v30 = vld [vmem:[%s1231_s3 + $0x108] sm:$0xff]  ;;  %v162_v31 = vld [vmem:[%s1231_s3 + $0x118] sm:$0xff]  ;;  %v570_v34 = vpack.c.bf16 %v157_v26, %v155_v25 }
  0x17   :  { %625 = vmatprep.subr.bf16.mxu0 %v624_v4  ;;  %v224_v32 = vld [vmem:[%s1231_s3 + $0x308] sm:$0xff]  ;;  %v226_v33 = vld [vmem:[%s1231_s3 + $0x318] sm:$0xff]  ;;  %v634_v35 = vpack.c.bf16 %v221_v29, %v219_v27  ;;  %v572_v36 = vpack.c.bf16 %v162_v31, %v160_v30  ;;  %v159_v37 = vld [vmem:[%s1231_s3 + $0x100] sm:$0xff] }
  0x18   :  { %v161_v38 = vld [vmem:[%s1231_s3 + $0x110] sm:$0xff]  ;;  %v223_v39 = vld [vmem:[%s1231_s3 + $0x300] sm:$0xff]  ;;  %v636_v40 = vpack.c.bf16 %v226_v33, %v224_v32  ;;  %v164_v42 = vld [vmem:[%s1231_s3 + $0x128] sm:$0xff] }
  0x19   :  { %563 = vmatpush1.bf16.msra.mxu1 %v562_v10  ;;  %v225_v41 = vld [vmem:[%s1231_s3 + $0x310] sm:$0xff]  ;;  %v166_v43 = vld [vmem:[%s1231_s3 + $0x138] sm:$0xff]  ;;  %v228_v44 = vld [vmem:[%s1231_s3 + $0x328] sm:$0xff]  ;;  %v574_v46 = vpack.c.bf16 %v161_v38, %v159_v37 }
  0x1a   :  { %627 = vmatpush1.bf16.msra.mxu0 %v626_v11  ;;  %565 = vmatprep.subr.bf16.mxu1 %v564_v12  ;;  %v230_v45 = vld [vmem:[%s1231_s3 + $0x338] sm:$0xff]  ;;  %v638_v48 = vpack.c.bf16 %v225_v41, %v223_v39  ;;  %v576_v49 = vpack.c.bf16 %v166_v43, %v164_v42  ;;  %v163_v50 = vld [vmem:[%s1231_s3 + $0x120] sm:$0xff]  ;;  %v165_v51 = vld [vmem:[%s1231_s3 + $0x130] sm:$0xff]  ;;  %v43_v12 = vsub.s32 1, %v958_v60 }
  0x1b   :  { %629 = vmatprep.subr.bf16.mxu0 %v628_v16  ;;  %v227_v52 = vld [vmem:[%s1231_s3 + $0x320] sm:$0xff]  ;;  %v640_v53 = vpack.c.bf16 %v230_v45, %v228_v44  ;;  %v229_v54 = vld [vmem:[%s1231_s3 + $0x330] sm:$0xff]  ;;  %v168_v55 = vld [vmem:[%s1231_s3 + $0x148] sm:$0xff]  ;;  %v578_v59 = vpack.c.bf16 %v165_v51, %v163_v50  ;;  %v39_v44 = vsub.s32 0, %v958_v60 }
  0x1c   :  { %v170_v56 = vld [vmem:[%s1231_s3 + $0x158] sm:$0xff]  ;;  %v232_v57 = vld [vmem:[%s1231_s3 + $0x348] sm:$0xff]  ;;  %v642_v61 = vpack.c.bf16 %v229_v54, %v227_v52  ;;  %v167_v63 = vld [vmem:[%s1231_s3 + $0x140] sm:$0xff] }
  0x1d   :  { %567 = vmatpush1.bf16.msra.mxu1 %v566_v22  ;;  %v234_v58 = vld [vmem:[%s1231_s3 + $0x358] sm:$0xff]  ;;  %v580_v62 = vpack.c.bf16 %v170_v56, %v168_v55  ;;  %v169_v0 = vld [vmem:[%s1231_s3 + $0x150] sm:$0xff]  ;;  %v231_v1 = vld [vmem:[%s1231_s3 + $0x340] sm:$0xff] }
  0x1e   :  { %631 = vmatpush1.bf16.msra.mxu0 %v630_v23  ;;  %569 = vmatprep.subr.bf16.mxu1 %v568_v24  ;;  %v644_v2 = vpack.c.bf16 %v234_v58, %v232_v57  ;;  %v233_v3 = vld [vmem:[%s1231_s3 + $0x350] sm:$0xff]  ;;  %v172_v4 = vld [vmem:[%s1231_s3 + $0x168] sm:$0xff]  ;;  %v174_v5 = vld [vmem:[%s1231_s3 + $0x178] sm:$0xff]  ;;  %v582_v8 = vpack.c.bf16 %v169_v0, %v167_v63 }
  0x1f   :  { %633 = vmatprep.subr.bf16.mxu0 %v632_v28  ;;  %v236_v6 = vld [vmem:[%s1231_s3 + $0x368] sm:$0xff]  ;;  %v238_v7 = vld [vmem:[%s1231_s3 + $0x378] sm:$0xff]  ;;  %v171_v9 = vld [vmem:[%s1231_s3 + $0x160] sm:$0xff]  ;;  %v646_v14 = vpack.c.bf16 %v233_v3, %v231_v1  ;;  %v584_v15 = vpack.c.bf16 %v174_v5, %v172_v4 }
  0x20   :  { %v173_v10 = vld [vmem:[%s1231_s3 + $0x170] sm:$0xff]  ;;  %v235_v11 = vld [vmem:[%s1231_s3 + $0x360] sm:$0xff]  ;;  %v176_v17 = vld [vmem:[%s1231_s3 + $0x188] sm:$0xff]  ;;  %v648_v19 = vpack.c.bf16 %v238_v7, %v236_v6 }
  0x21   :  { %571 = vmatpush1.bf16.msra.mxu1 %v570_v34  ;;  %v237_v16 = vld [vmem:[%s1231_s3 + $0x370] sm:$0xff]  ;;  %v178_v18 = vld [vmem:[%s1231_s3 + $0x198] sm:$0xff]  ;;  %v240_v20 = vld [vmem:[%s1231_s3 + $0x388] sm:$0xff]  ;;  %v586_v23 = vpack.c.bf16 %v173_v10, %v171_v9 }
  0x22   :  { %635 = vmatpush1.bf16.msra.mxu0 %v634_v35  ;;  %573 = vmatprep.subr.bf16.mxu1 %v572_v36  ;;  %v242_v21 = vld [vmem:[%s1231_s3 + $0x398] sm:$0xff]  ;;  %v20_v22 = vld [vmem:[%s1232_s0 + $0x8] sm:$0xff]  ;;  %v35_v24 = vld [vmem:[%s1233_s1] sm:$0xf]  ;;  %v650_v31 = vpack.c.bf16 %v237_v16, %v235_v11  ;;  %v588_v32 = vpack.c.bf16 %v178_v18, %v176_v17 }
  0x23   :  { %637 = vmatprep.subr.bf16.mxu0 %v636_v40  ;;  %v1019_v25 = vld [vmem:[%s1234_s2] sm:$0xf]  ;;  %v22_v26 = vld [vmem:[%s1232_s0 + $0x18] sm:$0xff]  ;;  %v1024_v27 = vrot.slane %v35_v24, %v43_v12  ;;  %v1029_v29 = vrot.slane %v35_v24, %v51_v13  ;;  %v177_v34 = vld [vmem:[%s1231_s3 + $0x190] sm:$0xff]  ;;  %v652_v36 = vpack.c.bf16 %v242_v21, %v240_v20 }
  0x24   :  { %v1027_v28 = vrot.slane %v1019_v25, %v43_v12  ;;  %v1032_v30 = vrot.slane %v1019_v25, %v51_v13  ;;  %v175_v33 = vld [vmem:[%s1231_s3 + $0x180] sm:$0xff]  ;;  %v241_v37 = vld [vmem:[%s1231_s3 + $0x390] sm:$0xff]  ;;  %v180_v38 = vld [vmem:[%s1231_s3 + $0x1a8] sm:$0xff]  ;;  %v1131_v18 = vrot.slane %v1019_v25, %v39_v44 }
  0x25   :  { %575 = vmatpush1.bf16.msra.mxu1 %v574_v46  ;;  %v239_v35 = vld [vmem:[%s1231_s3 + $0x380] sm:$0xff]  ;;  %v182_v39 = vld [vmem:[%s1231_s3 + $0x1b8] sm:$0xff]  ;;  %v58_v40 = vmul.f32 %v1024_v27, %v20_v22  ;;  %v60_v41 = vmul.f32 %v1029_v29, %v22_v26  ;;  %v244_v42 = vld [vmem:[%s1231_s3 + $0x3a8] sm:$0xff]  ;;  %v590_v45 = vpack.c.bf16 %v177_v34, %v175_v33 }
  0x26   :  { %639 = vmatpush1.bf16.msra.mxu0 %v638_v48  ;;  %577 = vmatprep.subr.bf16.mxu1 %v576_v49  ;;  %v246_v43 = vld [vmem:[%s1231_s3 + $0x3b8] sm:$0xff]  ;;  %v47_v48 = vsub.s32 2, %v958_v60  ;;  %v654_v49 = vpack.c.bf16 %v241_v37, %v239_v35  ;;  %v592_v50 = vpack.c.bf16 %v182_v39, %v180_v38  ;;  %v179_v51 = vld [vmem:[%s1231_s3 + $0x1a0] sm:$0xff]  ;;  %v181_v52 = vld [vmem:[%s1231_s3 + $0x1b0] sm:$0xff] }
  0x27   :  { %641 = vmatprep.subr.bf16.mxu0 %v640_v53  ;;  %v96_v46 = vadd.f32 %v1027_v28, %v58_v40  ;;  %v98_v47 = vadd.f32 %v1032_v30, %v60_v41  ;;  %v243_v53 = vld [vmem:[%s1231_s3 + $0x3a0] sm:$0xff]  ;;  %v656_v54 = vpack.c.bf16 %v246_v43, %v244_v42  ;;  %v245_v55 = vld [vmem:[%s1231_s3 + $0x3b0] sm:$0xff]  ;;  %v184_v56 = vld [vmem:[%s1231_s3 + $0x1c8] sm:$0xff]  ;;  %v594_v0 = vpack.c.bf16 %v181_v52, %v179_v51 }
  0x28   :  { %v186_v57 = vld [vmem:[%s1231_s3 + $0x1d8] sm:$0xff]  ;;  %v248_v60 = vld [vmem:[%s1231_s3 + $0x3c8] sm:$0xff]  ;;  %v183_v1 = vld [vmem:[%s1231_s3 + $0x1c0] sm:$0xff]  ;;  %v1102_v4 = vrot.slane %v35_v24, %v47_v48  ;;  %v658_v5 = vpack.c.bf16 %v245_v55, %v243_v53  ;;  %v1135_v21 = vrot.slane %v1019_v25, %v47_v48 }
  0x29   :  { %579 = vmatpush1.bf16.msra.mxu1 %v578_v59  ;;  %v112_v58 = vmax.f32 %v96_v46, 0.0  ;;  %v114_v59 = vmax.f32 %v98_v47, 0.0  ;;  %v24_v63 = vld [vmem:[%s1232_s0 + $0x28] sm:$0xff]  ;;  %v19_v3 = vld [vmem:[%s1232_s0] sm:$0xff]  ;;  %v596_v6 = vpack.c.bf16 %v186_v57, %v184_v56  ;;  %v21_v9 = vld [vmem:[%s1232_s0 + $0x10] sm:$0xff] }
  0x2a   :  { %643 = vmatpush1.bf16.msra.mxu0 %v642_v61  ;;  %581 = vmatprep.subr.bf16.mxu1 %v580_v62  ;;  %v250_v61 = vld [vmem:[%s1231_s3 + $0x3d8] sm:$0xff]  ;;  %v1088_v62 = vrot.slane %v35_v24, %v39_v44  ;;  %v247_v7 = vld [vmem:[%s1231_s3 + $0x3c0] sm:$0xff]  ;;  %v188_v11 = vld [vmem:[%s1231_s3 + $0x1e8] sm:$0xff]  ;;  %v62_v13 = vmul.f32 %v1024_v27, %v24_v63  ;;  %v59_v20 = vmul.f32 %v1102_v4, %v21_v9 }
  0x2b   :  { %645 = vmatprep.subr.bf16.mxu0 %v644_v2  ;;  %v185_v2 = vld [vmem:[%s1231_s3 + $0x1d0] sm:$0xff]  ;;  %319 = vmatprep.mubr.f32.mxu1 %v112_v58  ;;  %v660_v10 = vpack.c.bf16 %v250_v61, %v248_v60  ;;  %v190_v12 = vld [vmem:[%s1231_s3 + $0x1f8] sm:$0xff]  ;;  %v23_v22 = vld [vmem:[%s1232_s0 + $0x20] sm:$0xff] }
  0x2c   :  { %408 = vmatprep.mubr.f32.mxu0 %v114_v59  ;;  %v254_v16 = vld [vmem:[%s1231_s3 + $0x3f8] sm:$0xff]  ;;  %v57_v17 = vmul.f32 %v1088_v62, %v19_v3  ;;  %v600_v26 = vpack.c.bf16 %v190_v12, %v188_v11  ;;  %v189_v25 = vld [vmem:[%s1231_s3 + $0x1f0] sm:$0xff]  ;;  %v28_v33 = vld [vmem:[%s1232_s0 + $0x48] sm:$0xff]  ;;  %v100_v37 = vadd.f32 %v1027_v28, %v62_v13  ;;  %v61_v40 = vmul.f32 %v1088_v62, %v23_v22 }
  0x2d   :  { %583 = vmatpush1.bf16.msra.mxu1 %v582_v8  ;;  %v249_v8 = vld [vmem:[%s1231_s3 + $0x3d0] sm:$0xff]  ;;  %v251_v35 = vld [vmem:[%s1231_s3 + $0x3e0] sm:$0xff]  ;;  %v30_v38 = vld [vmem:[%s1232_s0 + $0x58] sm:$0xff]  ;;  %v97_v43 = vadd.f32 %v1135_v21, %v59_v20  ;;  %v66_v44 = vmul.f32 %v1024_v27, %v28_v33 }
  0x2e   :  { %647 = vmatpush1.bf16.msra.mxu0 %v646_v14  ;;  %585 = vmatprep.subr.bf16.mxu1 %v584_v15  ;;  %v26_v14 = vld [vmem:[%s1232_s0 + $0x38] sm:$0xff]  ;;  %v252_v15 = vld [vmem:[%s1231_s3 + $0x3e8] sm:$0xff]  ;;  %v662_v24 = vpack.c.bf16 %v249_v8, %v247_v7  ;;  %v95_v39 = vadd.f32 %v1131_v18, %v57_v17  ;;  %v68_v48 = vmul.f32 %v1029_v29, %v30_v38  ;;  %v116_v51 = vmax.f32 %v100_v37, 0.0  ;;  %v31_v61 = vld [vmem:[%s1232_s0 + $0x60] sm:$0xff] }
  0x2f   :  { %649 = vmatprep.subr.bf16.mxu0 %v648_v19  ;;  %v598_v19 = vpack.c.bf16 %v185_v2, %v183_v1  ;;  %v664_v34 = vpack.c.bf16 %v254_v16, %v252_v15  ;;  %v34_v52 = vld [vmem:[%s1232_s0 + $0x78] sm:$0xff]  ;;  %v113_v57 = vmax.f32 %v97_v43, 0.0  ;;  %v104_v58 = vadd.f32 %v1027_v28, %v66_v44  ;;  %v33_v2 = vld [vmem:[%s1232_s0 + $0x70] sm:$0xff] }
  0x30   :  { %v111_v53 = vmax.f32 %v95_v39, 0.0  ;;  %v72_v1 = vmul.f32 %v1029_v29, %v34_v52 }
  0x31   :  { %587 = vmatpush1.bf16.msra.mxu1 %v586_v23  ;;  %v25_v23 = vld [vmem:[%s1232_s0 + $0x30] sm:$0xff]  ;;  %v120_v7 = vmax.f32 %v104_v58, 0.0 }
  0x32   :  { %651 = vmatpush1.bf16.msra.mxu0 %v650_v31  ;;  %589 = vmatprep.subr.bf16.mxu1 %v588_v32  ;;  %v187_v31 = vld [vmem:[%s1231_s3 + $0x1e0] sm:$0xff]  ;;  %v64_v32 = vmul.f32 %v1029_v29, %v26_v14  ;;  %v63_v41 = vmul.f32 %v1102_v4, %v25_v23  ;;  %v71_v29 = vmul.f32 %v1102_v4, %v33_v2 }
  0x33   :  { %653 = vmatprep.subr.bf16.mxu0 %v652_v36  ;;  %v253_v36 = vld [vmem:[%s1231_s3 + $0x3f0] sm:$0xff]  ;;  %v602_v42 = vpack.c.bf16 %v189_v25, %v187_v31  ;;  %v110_v11 = vadd.f32 %v1032_v30, %v72_v1 }
  0x34   :  { %v666_v46 = vpack.c.bf16 %v253_v36, %v251_v35  ;;  %v102_v47 = vadd.f32 %v1032_v30, %v64_v32  ;;  %v101_v55 = vadd.f32 %v1135_v21, %v63_v41  ;;  %v109_v15 = vadd.f32 %v1135_v21, %v71_v29 }
  0x35   :  { %591 = vmatpush1.bf16.msra.mxu1 %v590_v45  ;;  %v27_v45 = vld [vmem:[%s1232_s0 + $0x40] sm:$0xff]  ;;  %v126_v16 = vmax.f32 %v110_v11, 0.0 }
  0x36   :  { %655 = vmatpush1.bf16.msra.mxu0 %v654_v49  ;;  %593 = vmatprep.subr.bf16.mxu1 %v592_v50  ;;  %v29_v49 = vld [vmem:[%s1232_s0 + $0x50] sm:$0xff]  ;;  %v32_v50 = vld [vmem:[%s1232_s0 + $0x68] sm:$0xff]  ;;  %v65_v56 = vmul.f32 %v1088_v62, %v27_v45  ;;  %v118_v63 = vmax.f32 %v102_v47, 0.0 }
  0x37   :  { %657 = vmatprep.subr.bf16.mxu0 %v656_v54  ;;  %v99_v54 = vadd.f32 %v1131_v18, %v61_v40  ;;  %v67_v59 = vmul.f32 %v1102_v4, %v29_v49  ;;  %v70_v60 = vmul.f32 %v1024_v27, %v32_v50  ;;  %v69_v27 = vmul.f32 %v1088_v62, %v31_v61 }
  0x38   :  { %v125_v4 = vmax.f32 %v109_v15, 0.0 }
  0x39   :  { %595 = vmatpush1.bf16.msra.mxu1 %v594_v0  ;;  %v106_v0 = vadd.f32 %v1032_v30, %v68_v48  ;;  %v115_v3 = vmax.f32 %v99_v54, 0.0  ;;  %v105_v8 = vadd.f32 %v1135_v21, %v67_v59  ;;  %v108_v9 = vadd.f32 %v1027_v28, %v70_v60 }
  0x3a   :  { %659 = vmatpush1.bf16.msra.mxu0 %v658_v5  ;;  %597 = vmatprep.subr.bf16.mxu1 %v596_v6  ;;  %v117_v5 = vmax.f32 %v101_v55, 0.0  ;;  %v103_v6 = vadd.f32 %v1131_v18, %v65_v56  ;;  %v107_v13 = vadd.f32 %v1131_v18, %v69_v27 }
  0x3b   :  { %661 = vmatprep.subr.bf16.mxu0 %v660_v10  ;;  %v122_v10 = vmax.f32 %v106_v0, 0.0  ;;  %v121_v62 = vmax.f32 %v105_v8, 0.0  ;;  %v124_v14 = vmax.f32 %v108_v9, 0.0 }
  0x3c   :  { %v119_v12 = vmax.f32 %v103_v6, 0.0  ;;  %v123_v28 = vmax.f32 %v107_v13, 0.0 }
  0x3d   :  { %599 = vmatpush1.bf16.msra.mxu1 %v598_v19 }
  0x3e   :  { %663 = vmatpush1.bf16.msra.mxu0 %v662_v24  ;;  %601 = vmatprep.subr.bf16.mxu1 %v600_v26 }
  0x3f   :  { %665 = vmatprep.subr.bf16.mxu0 %v664_v34 }
  0x41   :  { %603 = vmatpush1.bf16.msra.mxu1 %v602_v42 }
  0x42   :  { %667 = vmatpush1.bf16.msra.mxu0 %v666_v46 }
  0x44   :  { %320 = vmatmul.mubr.f32.vlgmr.msra.gmra.mrb[0].mxu1 %v111_v53 }
  0x45   :  { %409 = vmatmul.mubr.f32.vlgmr.msra.gmra.mrb[0].mxu0 %v113_v57  ;;  %325 = vmatprep.mubr.f32.mxu1 %v116_v51 }
  0x46   :  { %414 = vmatprep.mubr.f32.mxu0 %v118_v63 }
  0x48   :  { %326 = vmatmul.mubr.f32.gmra.mrb[2].mxu1 %v115_v3 }
  0x49   :  { %415 = vmatmul.mubr.f32.gmra.mrb[2].mxu0 %v117_v5  ;;  %331 = vmatprep.mubr.f32.mxu1 %v120_v7 }
  0x4a   :  { %420 = vmatprep.mubr.f32.mxu0 %v122_v10 }
  0x4c   :  { %332 = vmatmul.mubr.f32.gmra.mrb[4].mxu1 %v119_v12 }
  0x4d   :  { %421 = vmatmul.mubr.f32.gmra.mrb[4].mxu0 %v121_v62  ;;  %337 = vmatprep.mubr.f32.mxu1 %v124_v14 }
  0x4e   :  { %426 = vmatprep.mubr.f32.mxu0 %v126_v16 }
  0x50   :  { %338 = vmatmul.mubr.f32.gmra.mrb[6].mxu1 %v123_v28 }
  0x51   :  { %427 = vmatmul.mubr.f32.gmra.mrb[6].mxu0 %v125_v4 }
 0x117   :  { %v321_v30 = vpop.f32.mrb[0].mxu1 }
 0x118   :  { %v410_v17 = vpop.f32.mrb[0].mxu0  ;;  %v323_v19 = vpop.f32.mrb[1].mxu1 }
 0x119   :  { %v411_v18 = vadd.f32 %v410_v17, %v321_v30  ;;  %v412_v20 = vpop.f32.mrb[1].mxu0 }
 0x11a   :  { %v413_v22 = vadd.f32 %v412_v20, %v323_v19 }
 0x11b   :  { %433 = vst [vmem:[%s1235_s4] sm:$0xff] %v411_v18  ;;  %v327_v21 = vpop.f32.mrb[2].mxu1  ;;  %v490_v32 = vmul.f32 %v411_v18, %v411_v18 }
 0x11c   :  { %434 = vst [vmem:[%s1235_s4 + $0x8] sm:$0xff] %v413_v22  ;;  %v416_v23 = vpop.f32.mrb[2].mxu0  ;;  %v329_v24 = vpop.f32.mrb[3].mxu1  ;;  %v491_v36 = vmul.f32 %v413_v22, %v413_v22 }
 0x11d   :  { %v417_v26 = vadd.f32 %v416_v23, %v327_v21  ;;  %v418_v31 = vpop.f32.mrb[3].mxu0 }
 0x11e   :  { %v419_v25 = vadd.f32 %v418_v31, %v329_v24 }
 0x11f   :  { %435 = vst [vmem:[%s1235_s4 + $0x10] sm:$0xff] %v417_v26  ;;  %v472_v33 = vadd.f32 %v417_v26, %v411_v18  ;;  %v492_v34 = vmul.f32 %v417_v26, %v417_v26  ;;  %v333_v35 = vpop.f32.mrb[4].mxu1 }
 0x120   :  { %436 = vst [vmem:[%s1235_s4 + $0x18] sm:$0xff] %v419_v25  ;;  %v481_v37 = vadd.f32 %v419_v25, %v413_v22  ;;  %v493_v38 = vmul.f32 %v419_v25, %v419_v25  ;;  %v422_v39 = vpop.f32.mrb[4].mxu0  ;;  %v335_v40 = vpop.f32.mrb[5].mxu1 }
 0x121   :  { %v498_v41 = vadd.f32 %v492_v34, %v490_v32  ;;  %v423_v42 = vadd.f32 %v422_v39, %v333_v35  ;;  %v424_v43 = vpop.f32.mrb[5].mxu0 }
 0x122   :  { %v507_v44 = vadd.f32 %v493_v38, %v491_v36  ;;  %v425_v45 = vadd.f32 %v424_v43, %v335_v40 }
 0x123   :  { %437 = vst [vmem:[%s1235_s4 + $0x20] sm:$0xff] %v423_v42  ;;  %v473_v46 = vadd.f32 %v472_v33, %v423_v42  ;;  %v494_v47 = vmul.f32 %v423_v42, %v423_v42  ;;  %v339_v48 = vpop.f32.mrb[6].mxu1 }
 0x124   :  { %438 = vst [vmem:[%s1235_s4 + $0x28] sm:$0xff] %v425_v45  ;;  %v482_v49 = vadd.f32 %v481_v37, %v425_v45  ;;  %v495_v50 = vmul.f32 %v425_v45, %v425_v45  ;;  %v428_v51 = vpop.f32.mrb[6].mxu0  ;;  %v341_v52 = vpop.f32.mrb[7].mxu1 }
 0x125   :  { %v499_v53 = vadd.f32 %v498_v41, %v494_v47  ;;  %v429_v54 = vadd.f32 %v428_v51, %v339_v48  ;;  %v430_v55 = vpop.f32.mrb[7].mxu0 }
 0x126   :  { %v508_v56 = vadd.f32 %v507_v44, %v495_v50  ;;  %v431_v57 = vadd.f32 %v430_v55, %v341_v52 }
 0x127   :  { %439 = vst [vmem:[%s1235_s4 + $0x30] sm:$0xff] %v429_v54  ;;  %v474_v58 = vadd.f32 %v473_v46, %v429_v54  ;;  %v496_v59 = vmul.f32 %v429_v54, %v429_v54 }
 0x128   :  { %440 = vst [vmem:[%s1235_s4 + $0x38] sm:$0xff] %v431_v57  ;;  %v483_v60 = vadd.f32 %v482_v49, %v431_v57  ;;  %v497_v61 = vmul.f32 %v431_v57, %v431_v57 }
 0x129   :  { %v475_v63 = vrot.slane %v474_v58, 4  ;;  %v500_v0 = vadd.f32 %v499_v53, %v496_v59 }
 0x12a   :  { %v484_v1 = vrot.slane %v483_v60, 4  ;;  %v509_v2 = vadd.f32 %v508_v56, %v497_v61 }
 0x12b   :  { %v476_v3 = vadd.f32 %v475_v63, %v474_v58  ;;  %v501_v5 = vrot.slane %v500_v0, 4 }
 0x12c   :  { %v485_v6 = vadd.f32 %v484_v1, %v483_v60  ;;  %v510_v27 = vrot.slane %v509_v2, 4 }
 0x12d   :  { %v477_v7 = vrot.slane %v476_v3, 2  ;;  %v502_v8 = vadd.f32 %v501_v5, %v500_v0 }
 0x12e   :  { %v486_v9 = vrot.slane %v485_v6, 2  ;;  %v511_v29 = vadd.f32 %v510_v27, %v509_v2 }
 0x12f   :  { %v478_v10 = vadd.f32 %v477_v7, %v476_v3  ;;  %v503_v11 = vrot.slane %v502_v8, 2 }
 0x130   :  { %v487_v12 = vadd.f32 %v486_v9, %v485_v6  ;;  %v512_v13 = vrot.slane %v511_v29, 2 }
 0x131   :  { %v479_v62 = vrot.slane %v478_v10, 1  ;;  %v504_v14 = vadd.f32 %v503_v11, %v502_v8 }
 0x132   :  { %v488_v15 = vrot.slane %v487_v12, 1  ;;  %v513_v16 = vadd.f32 %v512_v13, %v511_v29 }
 0x133   :  { %v505_v28 = vrot.slane %v504_v14, 1  ;;  %v480_v30 = vadd.f32 %v479_v62, %v478_v10 }
 0x134   :  { %v514_v4 = vrot.slane %v513_v16, 1  ;;  %v489_v19 = vadd.f32 %v488_v15, %v487_v12 }
 0x135   :  { %v506_v17 = vadd.f32 %v505_v28, %v504_v14 }
 0x136   :  { %v515_v18 = vadd.f32 %v514_v4, %v513_v16 }
 0x137   :  { %v517_v20 = vsel %vm516_vm0, %v480_v30, %v506_v17 }
 0x138   :  { %v518_v22 = vsel %vm516_vm0, %v489_v19, %v515_v18 }
 0x139   :  { %v521_v21 = vcombine.low %v517_v20, %v518_v22 }
 0x13b   :  { %539 = vst.sshfl [vmem:[%s1236_s5] sm:$0x33 pattern:$0x76325410] %v521_v21 }

// kernel: segmentation_network.11
= control target key start
LH: loop header
LB: loop body
LE: loop exit
PB: predicated region body
PF: predicated region fallthrough
CT: control target
= control target key end

     0   :  { %vm44_vm0 = vcmask 31744   ;;  %s105_s0 = inlined_call_operand.vmem [shape: f32[32,4], index: 0, kind: input, shape index: {}]   ;;  %s106_s1 = inlined_call_operand.vmem [shape: f32[1,4], index: 1, kind: input, shape index: {}]   ;;  %s107_s2 = inlined_call_operand.vmem [shape: f32[1,4], index: 2, kind: input, shape index: {}]   ;;  %s108_s3 = inlined_call_operand.vmem [shape: f32[32,4], index: 3, kind: output, shape index: {}]  }
   0x1   :  { %v14_v0 = vld [vmem:[%s105_s0] sm:$0xff]  ;;  %v15_v4 = vld [vmem:[%s105_s0 + $0x8] sm:$0xff]  ;;  %v16_v5 = vld [vmem:[%s105_s0 + $0x10] sm:$0xff] }
   0x2   :  { %v53_v1 = vld [vmem:[%s106_s1] ss:$0 sm:$0xff]  ;;  %v17_v6 = vld [vmem:[%s105_s0 + $0x18] sm:$0xff] }
   0x3   :  { %v54_v2 = vld [vmem:[%s107_s2] ss:$0 sm:$0xff]  ;;  %v25_v3 = vmul.f32 %v53_v1, %v14_v0  ;;  %v26_v7 = vmul.f32 %v53_v1, %v15_v4  ;;  %v27_v8 = vmul.f32 %v53_v1, %v16_v5  ;;  %v28_v9 = vmul.f32 %v53_v1, %v17_v6 }
   0x5   :  { %v36_v10 = vadd.f32 %v54_v2, %v25_v3  ;;  %v37_v11 = vadd.f32 %v54_v2, %v26_v7  ;;  %v38_v12 = vadd.f32 %v54_v2, %v27_v8  ;;  %v39_v13 = vadd.f32 %v54_v2, %v28_v9 }
   0x7   :  { %v40_v14 = vmax.f32 %v36_v10, 0.0  ;;  %v41_v15 = vmax.f32 %v37_v11, 0.0  ;;  %v42_v16 = vmax.f32 %v38_v12, 0.0  ;;  %v43_v17 = vmax.f32 %v39_v13, 0.0 }
   0x9   :  { %45 = vst.msk [vmem:[%s108_s3] sm:$0xff] %vm44_vm0, %v40_v14  ;;  %46 = vst.msk [vmem:[%s108_s3 + $0x8] sm:$0xff] %vm44_vm0, %v41_v15 }
   0xa   :  { %47 = vst.msk [vmem:[%s108_s3 + $0x10] sm:$0xff] %vm44_vm0, %v42_v16  ;;  %48 = vst.msk [vmem:[%s108_s3 + $0x18] sm:$0xff] %vm44_vm0, %v43_v17 }

// kernel: segmentation_network.10
= control target key start
LH: loop header
LB: loop body
LE: loop exit
PB: predicated region body
PF: predicated region fallthrough
CT: control target
= control target key end

     0   :  { %vm150_vm0 = vcmask 31744   ;;  %vm212_vm1 = vcmask 1040384   ;;  %vm214_vm2 = vcmask 25600   ;;  %s455_s3 = inlined_call_operand.vmem [shape: f32[128,4], index: 3, kind: input, shape index: {}]   ;;  %s456_s0 = inlined_call_operand.vmem [shape: f32[32,128], index: 0, kind: input, shape index: {}]   ;;  %s457_s1 = inlined_call_operand.vmem [shape: f32[1,128], index: 1, kind: input, shape index: {}]   ;;  %s458_s2 = inlined_call_operand.vmem [shape: f32[1,128], index: 2, kind: input, shape index: {}]   ;;  %s459_s4 = inlined_call_operand.vmem [shape: f32[32,4], index: 4, kind: output, shape index: {0}]   ;;  %s460_s5 = inlined_call_operand.vmem [shape: f32[1,2,4], index: 5, kind: output, shape index: {1}]  }
   0x1   :  { %v49_v0 = vld [vmem:[%s455_s3] sm:$0xff]  ;;  %v50_v1 = vld [vmem:[%s455_s3 + $0x8] sm:$0xff]  ;;  %v51_v2 = vld [vmem:[%s455_s3 + $0x10] sm:$0xff] }
   0x2   :  { %v284_v3 = vpack.c.bf16 %v50_v1, %v49_v0  ;;  %v52_v4 = vld [vmem:[%s455_s3 + $0x18] sm:$0xff]  ;;  %v53_v6 = vld [vmem:[%s455_s3 + $0x20] sm:$0xff]  ;;  %v54_v7 = vld [vmem:[%s455_s3 + $0x28] sm:$0xff] }
   0x3   :  { %v288_v5 = vpack.c.bf16 %v52_v4, %v51_v2  ;;  %v292_v8 = vpack.c.bf16 %v54_v7, %v53_v6  ;;  %v55_v9 = vld [vmem:[%s455_s3 + $0x30] sm:$0xff]  ;;  %v19_v10 = vld [vmem:[%s456_s0] sm:$0xff]  ;;  %v56_v12 = vld [vmem:[%s455_s3 + $0x38] sm:$0xff] }
   0x4   :  { %285 = vmatprep.subr.bf16.mxu0 %v284_v3  ;;  %316 = vmatprep.subr.bf16.mxu1 %v284_v3  ;;  %v224_v11 = vld [vmem:[%s457_s1] ss:$0 sm:$0xff]  ;;  %v21_v15 = vld [vmem:[%s456_s0 + $0x10] sm:$0xff]  ;;  %v296_v18 = vpack.c.bf16 %v56_v12, %v55_v9  ;;  %v58_v21 = vld [vmem:[%s455_s3 + $0x48] sm:$0xff] }
   0x5   :  { %287 = vmatpush3.bf16.msra.mxu0 %v284_v3  ;;  %324 = vmatpush3.bf16.msra.mxu1 %v284_v3  ;;  %v30_v13 = vmul.f32 %v224_v11, %v19_v10  ;;  %v225_v14 = vld [vmem:[%s458_s2] ss:$0 sm:$0xff]  ;;  %v32_v16 = vmul.f32 %v224_v11, %v21_v15  ;;  %v59_v25 = vld [vmem:[%s455_s3 + $0x50] sm:$0xff]  ;;  %v60_v26 = vld [vmem:[%s455_s3 + $0x58] sm:$0xff] }
   0x6   :  { %289 = vmatprep.subr.bf16.mxu0 %v288_v5  ;;  %317 = vmatprep.subr.bf16.mxu1 %v288_v5  ;;  %v57_v20 = vld [vmem:[%s455_s3 + $0x40] sm:$0xff]  ;;  %v304_v27 = vpack.c.bf16 %v60_v26, %v59_v25  ;;  %v62_v29 = vld [vmem:[%s455_s3 + $0x68] sm:$0xff]  ;;  %v22_v31 = vld [vmem:[%s456_s0 + $0x18] sm:$0xff] }
   0x7   :  { %v41_v17 = vadd.f32 %v225_v14, %v30_v13  ;;  %v43_v19 = vadd.f32 %v225_v14, %v32_v16  ;;  %v300_v24 = vpack.c.bf16 %v58_v21, %v57_v20  ;;  %v61_v28 = vld [vmem:[%s455_s3 + $0x60] sm:$0xff]  ;;  %v20_v30 = vld [vmem:[%s456_s0 + $0x8] sm:$0xff]  ;;  %v63_v33 = vld [vmem:[%s455_s3 + $0x70] sm:$0xff]  ;;  %v33_v36 = vmul.f32 %v224_v11, %v22_v31 }
   0x8   :  { %v308_v32 = vpack.c.bf16 %v62_v29, %v61_v28  ;;  %v64_v34 = vld [vmem:[%s455_s3 + $0x78] sm:$0xff]  ;;  %v31_v35 = vmul.f32 %v224_v11, %v20_v30 }
   0x9   :  { %291 = vmatpush3.bf16.msra.mxu0 %v288_v5  ;;  %325 = vmatpush3.bf16.msra.mxu1 %v288_v5  ;;  %v45_v22 = vmax.f32 %v41_v17, 0.0  ;;  %v47_v23 = vmax.f32 %v43_v19, 0.0  ;;  %v312_v37 = vpack.c.bf16 %v64_v34, %v63_v33  ;;  %v44_v39 = vadd.f32 %v225_v14, %v33_v36 }
   0xa   :  { %293 = vmatprep.subr.bf16.mxu0 %v292_v8  ;;  %318 = vmatprep.subr.bf16.mxu1 %v292_v8  ;;  %v42_v38 = vadd.f32 %v225_v14, %v31_v35 }
   0xb   :  { %278 = vmatprep.mubr.f32.mxu0 %v45_v22  ;;  %281 = vmatprep.mubr.f32.mxu1 %v47_v23  ;;  %v48_v41 = vmax.f32 %v44_v39, 0.0 }
   0xc   :  { %v46_v40 = vmax.f32 %v42_v38, 0.0 }
   0xd   :  { %295 = vmatpush3.bf16.msra.mxu0 %v292_v8  ;;  %326 = vmatpush3.bf16.msra.mxu1 %v292_v8 }
   0xe   :  { %297 = vmatprep.subr.bf16.mxu0 %v296_v18  ;;  %319 = vmatprep.subr.bf16.mxu1 %v296_v18 }
  0x11   :  { %299 = vmatpush3.bf16.msra.mxu0 %v296_v18  ;;  %327 = vmatpush3.bf16.msra.mxu1 %v296_v18 }
  0x12   :  { %301 = vmatprep.subr.bf16.mxu0 %v300_v24  ;;  %320 = vmatprep.subr.bf16.mxu1 %v300_v24 }
  0x15   :  { %303 = vmatpush3.bf16.msra.mxu0 %v300_v24  ;;  %328 = vmatpush3.bf16.msra.mxu1 %v300_v24 }
  0x16   :  { %305 = vmatprep.subr.bf16.mxu0 %v304_v27  ;;  %321 = vmatprep.subr.bf16.mxu1 %v304_v27 }
  0x19   :  { %307 = vmatpush3.bf16.msra.mxu0 %v304_v27  ;;  %329 = vmatpush3.bf16.msra.mxu1 %v304_v27 }
  0x1a   :  { %309 = vmatprep.subr.bf16.mxu0 %v308_v32  ;;  %322 = vmatprep.subr.bf16.mxu1 %v308_v32 }
  0x1d   :  { %311 = vmatpush3.bf16.msra.mxu0 %v308_v32  ;;  %330 = vmatpush3.bf16.msra.mxu1 %v308_v32 }
  0x1e   :  { %313 = vmatprep.subr.bf16.mxu0 %v312_v37  ;;  %323 = vmatprep.subr.bf16.mxu1 %v312_v37 }
  0x21   :  { %315 = vmatpush3.bf16.msra.mxu0 %v312_v37  ;;  %331 = vmatpush3.bf16.msra.mxu1 %v312_v37 }
  0x24   :  { %279 = vmatmul.mubr.f32.vlgmr.msra.gmra.mrb[0].mxu0 %v46_v40  ;;  %282 = vmatmul.mubr.f32.vlgmr.msra.gmra.mrb[0].mxu1 %v48_v41 }
  0xf7   :  { %v280_v42 = vpop.f32.mrb[0].mxu0  ;;  %v283_v43 = vpop.f32.mrb[0].mxu1 }
  0xf8   :  { %152 = vst.msk [vmem:[%s459_s4 + $0x8] sm:$0xff] %vm150_vm0, %v280_v42  ;;  %v183_v44 = vsel %vm150_vm0, %v280_v42, 0.0  ;;  %v196_v45 = vmul.f32 %v280_v42, %v280_v42  ;;  %v131_v46 = vpop.f32.mrb[1].mxu0  ;;  %154 = vst.msk [vmem:[%s459_s4 + $0x18] sm:$0xff] %vm150_vm0, %v283_v43  ;;  %v141_v47 = vpop.f32.mrb[1].mxu1  ;;  %v198_v55 = vmul.f32 %v283_v43, %v283_v43  ;;  %v187_v59 = vsel %vm150_vm0, %v283_v43, 0.0 }
  0xf9   :  { %151 = vst.msk [vmem:[%s459_s4] sm:$0xff] %vm150_vm0, %v131_v46  ;;  %v182_v48 = vsel %vm150_vm0, %v131_v46, 0.0  ;;  %v195_v49 = vmul.f32 %v131_v46, %v131_v46  ;;  %153 = vst.msk [vmem:[%s459_s4 + $0x10] sm:$0xff] %vm150_vm0, %v141_v47  ;;  %v185_v50 = vsel %vm150_vm0, %v141_v47, 0.0  ;;  %v197_v51 = vmul.f32 %v141_v47, %v141_v47 }
  0xfa   :  { %v200_v52 = vsel %vm150_vm0, %v196_v45, 0.0  ;;  %v184_v53 = vadd.f32 %v183_v44, %v182_v48  ;;  %v204_v62 = vsel %vm150_vm0, %v198_v55, 0.0 }
  0xfb   :  { %v199_v54 = vsel %vm150_vm0, %v195_v49, 0.0  ;;  %v202_v56 = vsel %vm150_vm0, %v197_v51, 0.0 }
  0xfc   :  { %v201_v57 = vadd.f32 %v200_v52, %v199_v54  ;;  %v186_v58 = vadd.f32 %v185_v50, %v184_v53 }
  0xfe   :  { %v188_v60 = vadd.f32 %v187_v59, %v186_v58  ;;  %v203_v61 = vadd.f32 %v202_v56, %v201_v57 }
 0x100   :  { %v189_v63 = vrot.slane %v188_v60, 4  ;;  %v205_v0 = vadd.f32 %v204_v62, %v203_v61 }
 0x102   :  { %v190_v1 = vadd.f32 %v189_v63, %v188_v60  ;;  %v206_v2 = vrot.slane %v205_v0, 4 }
 0x104   :  { %v191_v3 = vrot.slane %v190_v1, 2  ;;  %v207_v4 = vadd.f32 %v206_v2, %v205_v0 }
 0x106   :  { %v192_v5 = vadd.f32 %v191_v3, %v190_v1  ;;  %v208_v6 = vrot.slane %v207_v4, 2 }
 0x108   :  { %v193_v7 = vrot.slane %v192_v5, 1  ;;  %v209_v8 = vadd.f32 %v208_v6, %v207_v4 }
 0x10a   :  { %v210_v9 = vrot.slane %v209_v8, 1  ;;  %v194_v10 = vadd.f32 %v193_v7, %v192_v5 }
 0x10c   :  { %v211_v11 = vadd.f32 %v210_v9, %v209_v8 }
 0x10e   :  { %v213_v12 = vsel %vm212_vm1, %v194_v10, %v211_v11 }
 0x10f   :  { %215 = vst.msk [vmem:[%s460_s5] sm:$0x3] %vm214_vm2, %v213_v12 }

// kernel: segmentation_network.6
= control target key start
LH: loop header
LB: loop body
LE: loop exit
PB: predicated region body
PF: predicated region fallthrough
CT: control target
= control target key end

     0   :  { %9 = vsyncpa [#allocation3], 0  ;;  %s2497_s0 = inlined_call_operand.hbm [shape: f32[32,1088], index: 0, kind: input, shape index: {}]   ;;  %s2498_s1 = inlined_call_operand.hbm [shape: f32[1088,512], index: 1, kind: input, shape index: {}]   ;;  %s2499_s2 = inlined_call_operand.vmem [shape: f32[32,512], index: 2, kind: output, shape index: {0}]   ;;  %s2500_s3 = inlined_call_operand.vmem [shape: f32[1,2,512], index: 3, kind: output, shape index: {1}]  }
   0x1   :  { %10 = vsyncpa [#allocation5], 0  ;;  %s2377_s12 = smov [#allocation2]   ;;  %s2329_s16 = scalar_lea.hbm %s2497_s0, 4608 }
   0x2   :  { %s16_s13 = sshll.u32 %s2377_s12, 4  ;;  %p2330_p0 = scmp.ne.s32.totalorder %s2497_s0, %s2329_s16  ;;  %s17_s13 = int_to_ptr.vmem [resolvable:$true] %s16_s13 }
   0x3   :  { %p2333_p1 = scmp.lt.u32.totalorder %s2329_s16, %s2497_s0 }
   0x5   :  { %p2335_p2 = pnand %p2333_p1, %p2330_p0 }
   0x7   :  { %2338 = shalt.err (!%p2335_p2)
}
   0x8   :  { %s2339_s21 = scalar_lea.vmem %s17_s13, 4608  ;;  %p2344_p4 = scmp.lt.s32.totalorder %s17_s13, %s17_s13 }
   0x9   :  { %p2340_p3 = scmp.ne.s32.totalorder %s17_s13, %s2339_s21  ;;  %p2345_p5 = scmp.lt.s32.totalorder %s2339_s21, %s2339_s21 }
   0xb   :  { %p2346_p6 = por %p2345_p5, %p2344_p4 }
   0xd   :  { %p2347_p7 = pnand %p2346_p6, %p2340_p3 }
   0xf   :  { %2350 = shalt.err (!%p2347_p7)
}
  0x10   :  { %s2378_s22 = smov 1152   ;;  %s2379_s23 = smov 72  }
  0x11   :  { %22 = dma.hbm_to_vmem [thread:$0]  %s2497_s0, 4608, %s17_s13, [#allocation3], %s2378_s22, %s2378_s22, %s2379_s23  }
  0x12   :  { %s2380_s26 = smov [#allocation4]   ;;  %s2351_s30 = scalar_lea.hbm %s2498_s1, 69632 }
  0x13   :  { %s28_s27 = sshll.u32 %s2380_s26, 4  ;;  %p2352_p8 = scmp.ne.s32.totalorder %s2498_s1, %s2351_s30  ;;  %s29_s27 = int_to_ptr.vmem [resolvable:$true] %s28_s27 }
  0x14   :  { %p2355_p9 = scmp.lt.u32.totalorder %s2351_s30, %s2498_s1 }
  0x16   :  { %p2357_p10 = pnand %p2355_p9, %p2352_p8 }
  0x18   :  { %2360 = shalt.err (!%p2357_p10)
}
  0x19   :  { %s2361_s8 = scalar_lea.vmem %s29_s27, 69632  ;;  %p2366_p12 = scmp.lt.s32.totalorder %s29_s27, %s29_s27 }
  0x1a   :  { %p2362_p11 = scmp.ne.s32.totalorder %s29_s27, %s2361_s8  ;;  %p2367_p13 = scmp.lt.s32.totalorder %s2361_s8, %s2361_s8 }
  0x1c   :  { %p2368_p0 = por %p2367_p13, %p2366_p12 }
  0x1e   :  { %p2369_p1 = pnand %p2368_p0, %p2362_p11 }
  0x20   :  { %2372 = shalt.err (!%p2369_p1)
}
  0x21   :  { %s2381_s0 = smov 512   ;;  %s2382_s9 = smov 32  }
  0x22   :  { %34 = dma.hbm_to_vmem [thread:$0]  %s2498_s1, 69632, %s29_s27, [#allocation5], %s2381_s0, %s2381_s0, %s2382_s9  }
  0x23   :  { %2373 = dma.done.wait [#allocation3], 4608  }
  0x24   :  { %2374 = vsyncadd [#allocation3], 4294962688 }
  0x25   :  { %2375 = dma.done.wait [#allocation5], 69632  }
  0x26   :  { %2376 = vsyncadd [#allocation5], 4294897664  ;;  %v78_v0 = vld [vmem:[#allocation4 + $0x8] sm:$0xff]  ;;  %v80_v2 = vld [vmem:[#allocation4 + $0x18] sm:$0xff]  ;;  %vm621_vm0 = vcmask 523264   ;;  %vm1667_vm1 = vcmask 1040384  }
  0x27   :  { %v82_v1 = vld [vmem:[#allocation4 + $0x28] sm:$0xff]  ;;  %v84_v4 = vld [vmem:[#allocation4 + $0x38] sm:$0xff]  ;;  %v77_v5 = vld [vmem:[#allocation4] sm:$0xff] }
  0x28   :  { %v1713_v3 = vpack.c.bf16 %v82_v1, %v78_v0  ;;  %v81_v6 = vld [vmem:[#allocation4 + $0x20] sm:$0xff]  ;;  %v1985_v7 = vpack.c.bf16 %v84_v4, %v80_v2  ;;  %v79_v9 = vld [vmem:[#allocation4 + $0x10] sm:$0xff]  ;;  %v86_v11 = vld [vmem:[#allocation4 + $0x48] sm:$0xff] }
  0x29   :  { %v1715_v8 = vpack.c.bf16 %v81_v6, %v77_v5  ;;  %v83_v10 = vld [vmem:[#allocation4 + $0x30] sm:$0xff]  ;;  %v90_v13 = vld [vmem:[#allocation4 + $0x68] sm:$0xff]  ;;  %v88_v14 = vld [vmem:[#allocation4 + $0x58] sm:$0xff] }
  0x2a   :  { %1714 = vmatprep.subr.bf16.mxu0 %v1713_v3  ;;  %v1987_v12 = vpack.c.bf16 %v83_v10, %v79_v9  ;;  %v92_v15 = vld [vmem:[#allocation4 + $0x78] sm:$0xff]  ;;  %1986 = vmatprep.subr.bf16.mxu1 %v1985_v7  ;;  %v1717_v16 = vpack.c.bf16 %v90_v13, %v86_v11  ;;  %v85_v18 = vld [vmem:[#allocation4 + $0x40] sm:$0xff]  ;;  %v87_v20 = vld [vmem:[#allocation4 + $0x50] sm:$0xff] }
  0x2b   :  { %1716 = vmatpush1.bf16.msra.mxu0 %v1715_v8  ;;  %v1989_v17 = vpack.c.bf16 %v92_v15, %v88_v14  ;;  %v89_v19 = vld [vmem:[#allocation4 + $0x60] sm:$0xff]  ;;  %v91_v22 = vld [vmem:[#allocation4 + $0x70] sm:$0xff]  ;;  %v94_v23 = vld [vmem:[#allocation4 + $0x88] sm:$0xff] }
  0x2c   :  { %1988 = vmatpush1.bf16.msra.mxu1 %v1987_v12  ;;  %v1719_v21 = vpack.c.bf16 %v89_v19, %v85_v18  ;;  %v98_v24 = vld [vmem:[#allocation4 + $0xa8] sm:$0xff]  ;;  %1718 = vmatprep.subr.bf16.mxu0 %v1717_v16  ;;  %v1991_v25 = vpack.c.bf16 %v91_v22, %v87_v20  ;;  %v96_v27 = vld [vmem:[#allocation4 + $0x98] sm:$0xff]  ;;  %v93_v29 = vld [vmem:[#allocation4 + $0x80] sm:$0xff] }
  0x2d   :  { %1990 = vmatprep.subr.bf16.mxu1 %v1989_v17  ;;  %v1721_v26 = vpack.c.bf16 %v98_v24, %v94_v23  ;;  %v100_v28 = vld [vmem:[#allocation4 + $0xb8] sm:$0xff]  ;;  %v97_v31 = vld [vmem:[#allocation4 + $0xa0] sm:$0xff]  ;;  %v95_v32 = vld [vmem:[#allocation4 + $0x90] sm:$0xff] }
  0x2e   :  { %v1993_v30 = vpack.c.bf16 %v100_v28, %v96_v27  ;;  %v99_v33 = vld [vmem:[#allocation4 + $0xb0] sm:$0xff]  ;;  %v1723_v34 = vpack.c.bf16 %v97_v31, %v93_v29  ;;  %v102_v35 = vld [vmem:[#allocation4 + $0xc8] sm:$0xff]  ;;  %v104_v37 = vld [vmem:[#allocation4 + $0xd8] sm:$0xff] }
  0x2f   :  { %1720 = vmatpush1.bf16.msra.mxu0 %v1719_v21  ;;  %v106_v36 = vld [vmem:[#allocation4 + $0xe8] sm:$0xff]  ;;  %v1995_v38 = vpack.c.bf16 %v99_v33, %v95_v32  ;;  %v108_v40 = vld [vmem:[#allocation4 + $0xf8] sm:$0xff]  ;;  %v101_v41 = vld [vmem:[#allocation4 + $0xc0] sm:$0xff] }
  0x30   :  { %1992 = vmatpush1.bf16.msra.mxu1 %v1991_v25  ;;  %1722 = vmatprep.subr.bf16.mxu0 %v1721_v26  ;;  %v1725_v39 = vpack.c.bf16 %v106_v36, %v102_v35  ;;  %v105_v42 = vld [vmem:[#allocation4 + $0xe0] sm:$0xff]  ;;  %v1997_v43 = vpack.c.bf16 %v108_v40, %v104_v37  ;;  %v103_v44 = vld [vmem:[#allocation4 + $0xd0] sm:$0xff]  ;;  %v110_v46 = vld [vmem:[#allocation4 + $0x108] sm:$0xff] }
  0x31   :  { %1994 = vmatprep.subr.bf16.mxu1 %v1993_v30  ;;  %v107_v45 = vld [vmem:[#allocation4 + $0xf0] sm:$0xff]  ;;  %v114_v47 = vld [vmem:[#allocation4 + $0x128] sm:$0xff]  ;;  %v112_v48 = vld [vmem:[#allocation4 + $0x118] sm:$0xff]  ;;  %v1727_v50 = vpack.c.bf16 %v105_v42, %v101_v41 }
  0x32   :  { %v116_v49 = vld [vmem:[#allocation4 + $0x138] sm:$0xff]  ;;  %v1999_v51 = vpack.c.bf16 %v107_v45, %v103_v44  ;;  %v1729_v52 = vpack.c.bf16 %v114_v47, %v110_v46  ;;  %v109_v53 = vld [vmem:[#allocation4 + $0x100] sm:$0xff]  ;;  %v111_v55 = vld [vmem:[#allocation4 + $0x110] sm:$0xff] }
  0x33   :  { %1724 = vmatpush1.bf16.msra.mxu0 %v1723_v34  ;;  %v113_v54 = vld [vmem:[#allocation4 + $0x120] sm:$0xff]  ;;  %v2001_v56 = vpack.c.bf16 %v116_v49, %v112_v48  ;;  %v115_v57 = vld [vmem:[#allocation4 + $0x130] sm:$0xff]  ;;  %v118_v58 = vld [vmem:[#allocation4 + $0x148] sm:$0xff] }
  0x34   :  { %1996 = vmatpush1.bf16.msra.mxu1 %v1995_v38  ;;  %1726 = vmatprep.subr.bf16.mxu0 %v1725_v39  ;;  %v122_v59 = vld [vmem:[#allocation4 + $0x168] sm:$0xff]  ;;  %v120_v60 = vld [vmem:[#allocation4 + $0x158] sm:$0xff]  ;;  %v1731_v62 = vpack.c.bf16 %v113_v54, %v109_v53  ;;  %v2003_v63 = vpack.c.bf16 %v115_v57, %v111_v55  ;;  %v117_v1 = vld [vmem:[#allocation4 + $0x140] sm:$0xff] }
  0x35   :  { %1998 = vmatprep.subr.bf16.mxu1 %v1997_v43  ;;  %v124_v61 = vld [vmem:[#allocation4 + $0x178] sm:$0xff]  ;;  %v1733_v0 = vpack.c.bf16 %v122_v59, %v118_v58  ;;  %v121_v2 = vld [vmem:[#allocation4 + $0x160] sm:$0xff]  ;;  %v119_v3 = vld [vmem:[#allocation4 + $0x150] sm:$0xff] }
  0x36   :  { %v2005_v4 = vpack.c.bf16 %v124_v61, %v120_v60  ;;  %v123_v5 = vld [vmem:[#allocation4 + $0x170] sm:$0xff]  ;;  %v126_v6 = vld [vmem:[#allocation4 + $0x188] sm:$0xff]  ;;  %v128_v8 = vld [vmem:[#allocation4 + $0x198] sm:$0xff]  ;;  %v1735_v10 = vpack.c.bf16 %v121_v2, %v117_v1 }
  0x37   :  { %1728 = vmatpush1.bf16.msra.mxu0 %v1727_v50  ;;  %v130_v7 = vld [vmem:[#allocation4 + $0x1a8] sm:$0xff]  ;;  %v132_v9 = vld [vmem:[#allocation4 + $0x1b8] sm:$0xff]  ;;  %v2007_v11 = vpack.c.bf16 %v123_v5, %v119_v3  ;;  %v125_v13 = vld [vmem:[#allocation4 + $0x180] sm:$0xff] }
  0x38   :  { %2000 = vmatpush1.bf16.msra.mxu1 %v1999_v51  ;;  %1730 = vmatprep.subr.bf16.mxu0 %v1729_v52  ;;  %v1737_v12 = vpack.c.bf16 %v130_v7, %v126_v6  ;;  %v129_v14 = vld [vmem:[#allocation4 + $0x1a0] sm:$0xff]  ;;  %v127_v15 = vld [vmem:[#allocation4 + $0x190] sm:$0xff]  ;;  %v2009_v16 = vpack.c.bf16 %v132_v9, %v128_v8  ;;  %v134_v18 = vld [vmem:[#allocation4 + $0x1c8] sm:$0xff] }
  0x39   :  { %2002 = vmatprep.subr.bf16.mxu1 %v2001_v56  ;;  %v131_v17 = vld [vmem:[#allocation4 + $0x1b0] sm:$0xff]  ;;  %v138_v19 = vld [vmem:[#allocation4 + $0x1e8] sm:$0xff]  ;;  %v136_v20 = vld [vmem:[#allocation4 + $0x1d8] sm:$0xff]  ;;  %v1739_v22 = vpack.c.bf16 %v129_v14, %v125_v13 }
  0x3a   :  { %v140_v21 = vld [vmem:[#allocation4 + $0x1f8] sm:$0xff]  ;;  %v2011_v23 = vpack.c.bf16 %v131_v17, %v127_v15  ;;  %v1741_v24 = vpack.c.bf16 %v138_v19, %v134_v18  ;;  %v133_v25 = vld [vmem:[#allocation4 + $0x1c0] sm:$0xff]  ;;  %v135_v27 = vld [vmem:[#allocation4 + $0x1d0] sm:$0xff] }
  0x3b   :  { %1732 = vmatpush1.bf16.msra.mxu0 %v1731_v62  ;;  %v137_v26 = vld [vmem:[#allocation4 + $0x1e0] sm:$0xff]  ;;  %v2013_v28 = vpack.c.bf16 %v140_v21, %v136_v20  ;;  %v139_v29 = vld [vmem:[#allocation4 + $0x1f0] sm:$0xff]  ;;  %v142_v30 = vld [vmem:[#allocation4 + $0x208] sm:$0xff] }
  0x3c   :  { %2004 = vmatpush1.bf16.msra.mxu1 %v2003_v63  ;;  %1734 = vmatprep.subr.bf16.mxu0 %v1733_v0  ;;  %v146_v31 = vld [vmem:[#allocation4 + $0x228] sm:$0xff]  ;;  %v144_v32 = vld [vmem:[#allocation4 + $0x218] sm:$0xff]  ;;  %v1743_v34 = vpack.c.bf16 %v137_v26, %v133_v25  ;;  %v2015_v35 = vpack.c.bf16 %v139_v29, %v135_v27  ;;  %v141_v37 = vld [vmem:[#allocation4 + $0x200] sm:$0xff] }
  0x3d   :  { %2006 = vmatprep.subr.bf16.mxu1 %v2005_v4  ;;  %v148_v33 = vld [vmem:[#allocation4 + $0x238] sm:$0xff]  ;;  %v1745_v36 = vpack.c.bf16 %v146_v31, %v142_v30  ;;  %v145_v38 = vld [vmem:[#allocation4 + $0x220] sm:$0xff]  ;;  %v143_v39 = vld [vmem:[#allocation4 + $0x210] sm:$0xff] }
  0x3e   :  { %v2017_v40 = vpack.c.bf16 %v148_v33, %v144_v32  ;;  %v147_v41 = vld [vmem:[#allocation4 + $0x230] sm:$0xff]  ;;  %v150_v42 = vld [vmem:[#allocation4 + $0x248] sm:$0xff]  ;;  %v152_v44 = vld [vmem:[#allocation4 + $0x258] sm:$0xff]  ;;  %v1747_v46 = vpack.c.bf16 %v145_v38, %v141_v37 }
  0x3f   :  { %1736 = vmatpush1.bf16.msra.mxu0 %v1735_v10  ;;  %v154_v43 = vld [vmem:[#allocation4 + $0x268] sm:$0xff]  ;;  %v156_v45 = vld [vmem:[#allocation4 + $0x278] sm:$0xff]  ;;  %v2019_v47 = vpack.c.bf16 %v147_v41, %v143_v39  ;;  %v149_v49 = vld [vmem:[#allocation4 + $0x240] sm:$0xff] }
  0x40   :  { %2008 = vmatpush1.bf16.msra.mxu1 %v2007_v11  ;;  %1738 = vmatprep.subr.bf16.mxu0 %v1737_v12  ;;  %v1749_v48 = vpack.c.bf16 %v154_v43, %v150_v42  ;;  %v153_v50 = vld [vmem:[#allocation4 + $0x260] sm:$0xff]  ;;  %v151_v51 = vld [vmem:[#allocation4 + $0x250] sm:$0xff]  ;;  %v2021_v52 = vpack.c.bf16 %v156_v45, %v152_v44  ;;  %v158_v54 = vld [vmem:[#allocation4 + $0x288] sm:$0xff] }
  0x41   :  { %2010 = vmatprep.subr.bf16.mxu1 %v2009_v16  ;;  %v155_v53 = vld [vmem:[#allocation4 + $0x270] sm:$0xff]  ;;  %v162_v55 = vld [vmem:[#allocation4 + $0x2a8] sm:$0xff]  ;;  %v160_v56 = vld [vmem:[#allocation4 + $0x298] sm:$0xff]  ;;  %v1751_v58 = vpack.c.bf16 %v153_v50, %v149_v49 }
  0x42   :  { %v164_v57 = vld [vmem:[#allocation4 + $0x2b8] sm:$0xff]  ;;  %v2023_v59 = vpack.c.bf16 %v155_v53, %v151_v51  ;;  %v1753_v60 = vpack.c.bf16 %v162_v55, %v158_v54  ;;  %v157_v61 = vld [vmem:[#allocation4 + $0x280] sm:$0xff]  ;;  %v159_v63 = vld [vmem:[#allocation4 + $0x290] sm:$0xff] }
  0x43   :  { %1740 = vmatpush1.bf16.msra.mxu0 %v1739_v22  ;;  %v161_v62 = vld [vmem:[#allocation4 + $0x2a0] sm:$0xff]  ;;  %v2025_v0 = vpack.c.bf16 %v164_v57, %v160_v56  ;;  %v163_v1 = vld [vmem:[#allocation4 + $0x2b0] sm:$0xff]  ;;  %v166_v2 = vld [vmem:[#allocation4 + $0x2c8] sm:$0xff] }
  0x44   :  { %2012 = vmatpush1.bf16.msra.mxu1 %v2011_v23  ;;  %1742 = vmatprep.subr.bf16.mxu0 %v1741_v24  ;;  %v170_v3 = vld [vmem:[#allocation4 + $0x2e8] sm:$0xff]  ;;  %v168_v4 = vld [vmem:[#allocation4 + $0x2d8] sm:$0xff]  ;;  %v1755_v6 = vpack.c.bf16 %v161_v62, %v157_v61  ;;  %v165_v7 = vld [vmem:[#allocation4 + $0x2c0] sm:$0xff]  ;;  %v2027_v8 = vpack.c.bf16 %v163_v1, %v159_v63 }
  0x45   :  { %2014 = vmatprep.subr.bf16.mxu1 %v2013_v28  ;;  %v172_v5 = vld [vmem:[#allocation4 + $0x2f8] sm:$0xff]  ;;  %v1757_v9 = vpack.c.bf16 %v170_v3, %v166_v2  ;;  %v169_v10 = vld [vmem:[#allocation4 + $0x2e0] sm:$0xff]  ;;  %v167_v11 = vld [vmem:[#allocation4 + $0x2d0] sm:$0xff] }
  0x46   :  { %v171_v12 = vld [vmem:[#allocation4 + $0x2f0] sm:$0xff]  ;;  %v2029_v13 = vpack.c.bf16 %v172_v5, %v168_v4  ;;  %v174_v14 = vld [vmem:[#allocation4 + $0x308] sm:$0xff]  ;;  %v176_v17 = vld [vmem:[#allocation4 + $0x318] sm:$0xff]  ;;  %v1759_v19 = vpack.c.bf16 %v169_v10, %v165_v7 }
  0x47   :  { %1744 = vmatpush1.bf16.msra.mxu0 %v1743_v34  ;;  %v178_v15 = vld [vmem:[#allocation4 + $0x328] sm:$0xff]  ;;  %v180_v18 = vld [vmem:[#allocation4 + $0x338] sm:$0xff]  ;;  %v2031_v20 = vpack.c.bf16 %v171_v12, %v167_v11  ;;  %v173_v22 = vld [vmem:[#allocation4 + $0x300] sm:$0xff] }
  0x48   :  { %2016 = vmatpush1.bf16.msra.mxu1 %v2015_v35  ;;  %1746 = vmatprep.subr.bf16.mxu0 %v1745_v36  ;;  %v42_v16 = vld [vmem:[#allocation2 + $0x8] sm:$0xff]  ;;  %v1761_v21 = vpack.c.bf16 %v178_v15, %v174_v14  ;;  %v177_v23 = vld [vmem:[#allocation4 + $0x320] sm:$0xff]  ;;  %v175_v24 = vld [vmem:[#allocation4 + $0x310] sm:$0xff]  ;;  %v2033_v25 = vpack.c.bf16 %v180_v18, %v176_v17 }
  0x49   :  { %2018 = vmatprep.subr.bf16.mxu1 %v2017_v40  ;;  %698 = vmatprep.mubr.f32.mxu0 %v42_v16  ;;  %v179_v26 = vld [vmem:[#allocation4 + $0x330] sm:$0xff]  ;;  %v182_v27 = vld [vmem:[#allocation4 + $0x348] sm:$0xff]  ;;  %v184_v29 = vld [vmem:[#allocation4 + $0x358] sm:$0xff]  ;;  %v1763_v31 = vpack.c.bf16 %v177_v23, %v173_v22 }
  0x4a   :  { %1143 = vmatprep.mubr.f32.mxu1 %v42_v16  ;;  %v186_v28 = vld [vmem:[#allocation4 + $0x368] sm:$0xff]  ;;  %v188_v30 = vld [vmem:[#allocation4 + $0x378] sm:$0xff]  ;;  %v2035_v32 = vpack.c.bf16 %v179_v26, %v175_v24  ;;  %v181_v34 = vld [vmem:[#allocation4 + $0x340] sm:$0xff] }
  0x4b   :  { %1748 = vmatpush1.bf16.msra.mxu0 %v1747_v46  ;;  %v1765_v33 = vpack.c.bf16 %v186_v28, %v182_v27  ;;  %v185_v35 = vld [vmem:[#allocation4 + $0x360] sm:$0xff]  ;;  %v183_v36 = vld [vmem:[#allocation4 + $0x350] sm:$0xff]  ;;  %v2037_v37 = vpack.c.bf16 %v188_v30, %v184_v29  ;;  %v190_v39 = vld [vmem:[#allocation4 + $0x388] sm:$0xff] }
  0x4c   :  { %2020 = vmatpush1.bf16.msra.mxu1 %v2019_v47  ;;  %1750 = vmatprep.subr.bf16.mxu0 %v1749_v48  ;;  %v187_v38 = vld [vmem:[#allocation4 + $0x370] sm:$0xff]  ;;  %v194_v40 = vld [vmem:[#allocation4 + $0x3a8] sm:$0xff]  ;;  %v192_v41 = vld [vmem:[#allocation4 + $0x398] sm:$0xff]  ;;  %v1767_v43 = vpack.c.bf16 %v185_v35, %v181_v34 }
  0x4d   :  { %2022 = vmatprep.subr.bf16.mxu1 %v2021_v52  ;;  %v196_v42 = vld [vmem:[#allocation4 + $0x3b8] sm:$0xff]  ;;  %v2039_v44 = vpack.c.bf16 %v187_v38, %v183_v36  ;;  %v1769_v45 = vpack.c.bf16 %v194_v40, %v190_v39  ;;  %v189_v46 = vld [vmem:[#allocation4 + $0x380] sm:$0xff]  ;;  %v191_v48 = vld [vmem:[#allocation4 + $0x390] sm:$0xff] }
  0x4e   :  { %v193_v47 = vld [vmem:[#allocation4 + $0x3a0] sm:$0xff]  ;;  %v2041_v49 = vpack.c.bf16 %v196_v42, %v192_v41  ;;  %v195_v50 = vld [vmem:[#allocation4 + $0x3b0] sm:$0xff]  ;;  %v198_v51 = vld [vmem:[#allocation4 + $0x3c8] sm:$0xff] }
  0x4f   :  { %1752 = vmatpush1.bf16.msra.mxu0 %v1751_v58  ;;  %v202_v52 = vld [vmem:[#allocation4 + $0x3e8] sm:$0xff]  ;;  %v200_v53 = vld [vmem:[#allocation4 + $0x3d8] sm:$0xff]  ;;  %v1771_v55 = vpack.c.bf16 %v193_v47, %v189_v46  ;;  %v2043_v56 = vpack.c.bf16 %v195_v50, %v191_v48  ;;  %v197_v58 = vld [vmem:[#allocation4 + $0x3c0] sm:$0xff] }
  0x50   :  { %2024 = vmatpush1.bf16.msra.mxu1 %v2023_v59  ;;  %1754 = vmatprep.subr.bf16.mxu0 %v1753_v60  ;;  %v204_v54 = vld [vmem:[#allocation4 + $0x3f8] sm:$0xff]  ;;  %v1773_v57 = vpack.c.bf16 %v202_v52, %v198_v51  ;;  %v201_v59 = vld [vmem:[#allocation4 + $0x3e0] sm:$0xff]  ;;  %v199_v60 = vld [vmem:[#allocation4 + $0x3d0] sm:$0xff] }
  0x51   :  { %2026 = vmatprep.subr.bf16.mxu1 %v2025_v0  ;;  %v2045_v61 = vpack.c.bf16 %v204_v54, %v200_v53  ;;  %v203_v62 = vld [vmem:[#allocation4 + $0x3f0] sm:$0xff]  ;;  %v206_v63 = vld [vmem:[#allocation4 + $0x408] sm:$0xff]  ;;  %v208_v1 = vld [vmem:[#allocation4 + $0x418] sm:$0xff]  ;;  %v1775_v3 = vpack.c.bf16 %v201_v59, %v197_v58 }
  0x52   :  { %v210_v0 = vld [vmem:[#allocation4 + $0x428] sm:$0xff]  ;;  %v212_v2 = vld [vmem:[#allocation4 + $0x438] sm:$0xff]  ;;  %v2047_v4 = vpack.c.bf16 %v203_v62, %v199_v60  ;;  %v209_v7 = vld [vmem:[#allocation4 + $0x420] sm:$0xff] }
  0x53   :  { %1756 = vmatpush1.bf16.msra.mxu0 %v1755_v6  ;;  %v1777_v5 = vpack.c.bf16 %v210_v0, %v206_v63  ;;  %v205_v6 = vld [vmem:[#allocation4 + $0x400] sm:$0xff]  ;;  %v211_v10 = vld [vmem:[#allocation4 + $0x430] sm:$0xff]  ;;  %v214_v11 = vld [vmem:[#allocation4 + $0x448] sm:$0xff] }
  0x54   :  { %2028 = vmatpush1.bf16.msra.mxu1 %v2027_v8  ;;  %1758 = vmatprep.subr.bf16.mxu0 %v1757_v9  ;;  %v207_v8 = vld [vmem:[#allocation4 + $0x410] sm:$0xff]  ;;  %v2049_v9 = vpack.c.bf16 %v212_v2, %v208_v1  ;;  %v218_v12 = vld [vmem:[#allocation4 + $0x468] sm:$0xff]  ;;  %v220_v14 = vld [vmem:[#allocation4 + $0x478] sm:$0xff]  ;;  %v1779_v16 = vpack.c.bf16 %v209_v7, %v205_v6 }
  0x55   :  { %2030 = vmatprep.subr.bf16.mxu1 %v2029_v13  ;;  %v216_v13 = vld [vmem:[#allocation4 + $0x458] sm:$0xff]  ;;  %v41_v15 = vld [vmem:[#allocation2] sm:$0xff]  ;;  %v2051_v17 = vpack.c.bf16 %v211_v10, %v207_v8  ;;  %v1781_v18 = vpack.c.bf16 %v218_v12, %v214_v11  ;;  %v219_v23 = vld [vmem:[#allocation4 + $0x470] sm:$0xff] }
  0x56   :  { %v2053_v22 = vpack.c.bf16 %v220_v14, %v216_v13  ;;  %v222_v24 = vld [vmem:[#allocation4 + $0x488] sm:$0xff]  ;;  %v224_v26 = vld [vmem:[#allocation4 + $0x498] sm:$0xff]  ;;  %v227_v35 = vld [vmem:[#allocation4 + $0x4b0] sm:$0xff] }
  0x57   :  { %1760 = vmatpush1.bf16.msra.mxu0 %v1759_v19  ;;  %v213_v19 = vld [vmem:[#allocation4 + $0x440] sm:$0xff]  ;;  %v228_v27 = vld [vmem:[#allocation4 + $0x4b8] sm:$0xff]  ;;  %v230_v36 = vld [vmem:[#allocation4 + $0x4c8] sm:$0xff] }
  0x58   :  { %2032 = vmatpush1.bf16.msra.mxu1 %v2031_v20  ;;  %1762 = vmatprep.subr.bf16.mxu0 %v1761_v21  ;;  %v217_v20 = vld [vmem:[#allocation4 + $0x460] sm:$0xff]  ;;  %v215_v21 = vld [vmem:[#allocation4 + $0x450] sm:$0xff]  ;;  %v2057_v34 = vpack.c.bf16 %v228_v27, %v224_v26  ;;  %v232_v38 = vld [vmem:[#allocation4 + $0x4d8] sm:$0xff] }
  0x59   :  { %2034 = vmatprep.subr.bf16.mxu1 %v2033_v25  ;;  %v226_v25 = vld [vmem:[#allocation4 + $0x4a8] sm:$0xff]  ;;  %v1783_v28 = vpack.c.bf16 %v217_v20, %v213_v19  ;;  %v2055_v29 = vpack.c.bf16 %v219_v23, %v215_v21  ;;  %v236_v39 = vld [vmem:[#allocation4 + $0x4f8] sm:$0xff]  ;;  %v235_v47 = vld [vmem:[#allocation4 + $0x4f0] sm:$0xff] }
  0x5a   :  { %v1785_v30 = vpack.c.bf16 %v226_v25, %v222_v24  ;;  %v2061_v46 = vpack.c.bf16 %v236_v39, %v232_v38  ;;  %v238_v48 = vld [vmem:[#allocation4 + $0x508] sm:$0xff]  ;;  %v240_v50 = vld [vmem:[#allocation4 + $0x518] sm:$0xff]  ;;  %v237_v53 = vld [vmem:[#allocation4 + $0x500] sm:$0xff] }
  0x5b   :  { %1764 = vmatpush1.bf16.msra.mxu0 %v1763_v31  ;;  %v221_v31 = vld [vmem:[#allocation4 + $0x480] sm:$0xff]  ;;  %v244_v51 = vld [vmem:[#allocation4 + $0x538] sm:$0xff]  ;;  %v243_v58 = vld [vmem:[#allocation4 + $0x530] sm:$0xff] }
  0x5c   :  { %2036 = vmatpush1.bf16.msra.mxu1 %v2035_v32  ;;  %1766 = vmatprep.subr.bf16.mxu0 %v1765_v33  ;;  %v225_v32 = vld [vmem:[#allocation4 + $0x4a0] sm:$0xff]  ;;  %v223_v33 = vld [vmem:[#allocation4 + $0x490] sm:$0xff]  ;;  %v2065_v59 = vpack.c.bf16 %v244_v51, %v240_v50  ;;  %v246_v60 = vld [vmem:[#allocation4 + $0x548] sm:$0xff] }
  0x5d   :  { %2038 = vmatprep.subr.bf16.mxu1 %v2037_v37  ;;  %v234_v37 = vld [vmem:[#allocation4 + $0x4e8] sm:$0xff]  ;;  %v1787_v40 = vpack.c.bf16 %v225_v32, %v221_v31  ;;  %v2059_v41 = vpack.c.bf16 %v227_v35, %v223_v33  ;;  %v51_v62 = vld [vmem:[#allocation2 + $0x50] sm:$0xff]  ;;  %v248_v63 = vld [vmem:[#allocation4 + $0x558] sm:$0xff] }
  0x5e   :  { %v1789_v42 = vpack.c.bf16 %v234_v37, %v230_v36  ;;  %v252_v0 = vld [vmem:[#allocation4 + $0x578] sm:$0xff]  ;;  %v50_v1 = vld [vmem:[#allocation2 + $0x48] sm:$0xff]  ;;  %v249_v6 = vld [vmem:[#allocation4 + $0x560] sm:$0xff] }
  0x5f   :  { %1768 = vmatpush1.bf16.msra.mxu0 %v1767_v43  ;;  %v229_v43 = vld [vmem:[#allocation4 + $0x4c0] sm:$0xff]  ;;  %v247_v7 = vld [vmem:[#allocation4 + $0x550] sm:$0xff]  ;;  %v60_v8 = vld [vmem:[#allocation2 + $0x98] sm:$0xff] }
  0x60   :  { %2040 = vmatpush1.bf16.msra.mxu1 %v2039_v44  ;;  %1770 = vmatprep.subr.bf16.mxu0 %v1769_v45  ;;  %v233_v44 = vld [vmem:[#allocation4 + $0x4e0] sm:$0xff]  ;;  %v231_v45 = vld [vmem:[#allocation4 + $0x4d0] sm:$0xff]  ;;  %v254_v11 = vld [vmem:[#allocation4 + $0x588] sm:$0xff] }
  0x61   :  { %2042 = vmatprep.subr.bf16.mxu1 %v2041_v49  ;;  %v242_v49 = vld [vmem:[#allocation4 + $0x528] sm:$0xff]  ;;  %v1791_v52 = vpack.c.bf16 %v233_v44, %v229_v43  ;;  %v2063_v54 = vpack.c.bf16 %v235_v47, %v231_v45  ;;  %v251_v10 = vld [vmem:[#allocation4 + $0x570] sm:$0xff]  ;;  %v256_v13 = vld [vmem:[#allocation4 + $0x598] sm:$0xff] }
  0x62   :  { %v258_v12 = vld [vmem:[#allocation4 + $0x5a8] sm:$0xff]  ;;  %v260_v14 = vld [vmem:[#allocation4 + $0x5b8] sm:$0xff]  ;;  %v2071_v19 = vpack.c.bf16 %v251_v10, %v247_v7  ;;  %v257_v21 = vld [vmem:[#allocation4 + $0x5a0] sm:$0xff] }
  0x63   :  { %1772 = vmatpush1.bf16.msra.mxu0 %v1771_v55  ;;  %v1793_v55 = vpack.c.bf16 %v242_v49, %v238_v48  ;;  %v1801_v20 = vpack.c.bf16 %v258_v12, %v254_v11  ;;  %v259_v23 = vld [vmem:[#allocation4 + $0x5b0] sm:$0xff]  ;;  %v2073_v24 = vpack.c.bf16 %v260_v14, %v256_v13  ;;  %v262_v25 = vld [vmem:[#allocation4 + $0x5c8] sm:$0xff]  ;;  %v68_v27 = vld [vmem:[#allocation2 + $0xd8] sm:$0xff] }
  0x64   :  { %2044 = vmatpush1.bf16.msra.mxu1 %v2043_v56  ;;  %1774 = vmatprep.subr.bf16.mxu0 %v1773_v57  ;;  %v241_v56 = vld [vmem:[#allocation4 + $0x520] sm:$0xff]  ;;  %v239_v57 = vld [vmem:[#allocation4 + $0x510] sm:$0xff]  ;;  %v266_v26 = vld [vmem:[#allocation4 + $0x5e8] sm:$0xff] }
  0x65   :  { %2046 = vmatprep.subr.bf16.mxu1 %v2045_v61  ;;  %v250_v61 = vld [vmem:[#allocation4 + $0x568] sm:$0xff]  ;;  %v1795_v2 = vpack.c.bf16 %v241_v56, %v237_v53  ;;  %v44_v31 = vld [vmem:[#allocation2 + $0x18] sm:$0xff]  ;;  %v1805_v33 = vpack.c.bf16 %v266_v26, %v262_v25  ;;  %v265_v35 = vld [vmem:[#allocation4 + $0x5e0] sm:$0xff] }
  0x66   :  { %v263_v36 = vld [vmem:[#allocation4 + $0x5d0] sm:$0xff]  ;;  %v270_v39 = vld [vmem:[#allocation4 + $0x608] sm:$0xff]  ;;  %v273_v47 = vld [vmem:[#allocation4 + $0x620] sm:$0xff] }
  0x67   :  { %1776 = vmatpush1.bf16.msra.mxu0 %v1775_v3  ;;  %v245_v3 = vld [vmem:[#allocation4 + $0x540] sm:$0xff]  ;;  %v267_v38 = vld [vmem:[#allocation4 + $0x5f0] sm:$0xff]  ;;  %v278_v51 = vld [vmem:[#allocation4 + $0x648] sm:$0xff] }
  0x68   :  { %2048 = vmatpush1.bf16.msra.mxu1 %v2047_v4  ;;  %1778 = vmatprep.subr.bf16.mxu0 %v1777_v5  ;;  %v2067_v4 = vpack.c.bf16 %v243_v58, %v239_v57  ;;  %v1797_v5 = vpack.c.bf16 %v250_v61, %v246_v60  ;;  %v2079_v44 = vpack.c.bf16 %v267_v38, %v263_v36  ;;  %v271_v48 = vld [vmem:[#allocation4 + $0x610] sm:$0xff]  ;;  %v280_v53 = vld [vmem:[#allocation4 + $0x658] sm:$0xff]  ;;  %v277_v58 = vld [vmem:[#allocation4 + $0x640] sm:$0xff] }
  0x69   :  { %2050 = vmatprep.subr.bf16.mxu1 %v2049_v9  ;;  %v2069_v9 = vpack.c.bf16 %v252_v0, %v248_v63  ;;  %v275_v50 = vld [vmem:[#allocation4 + $0x630] sm:$0xff]  ;;  %v286_v63 = vld [vmem:[#allocation4 + $0x688] sm:$0xff]  ;;  %v289_v7 = vld [vmem:[#allocation4 + $0x6a0] sm:$0xff] }
  0x6a   :  { %699 = vmatmul.mubr.f32.vlgmr.msra.gmra.mrb[0].mxu0 %v41_v15  ;;  %v2083_v56 = vpack.c.bf16 %v275_v50, %v271_v48  ;;  %v279_v60 = vld [vmem:[#allocation4 + $0x650] sm:$0xff]  ;;  %v290_v0 = vld [vmem:[#allocation4 + $0x6a8] sm:$0xff]  ;;  %v296_v13 = vld [vmem:[#allocation4 + $0x6d8] sm:$0xff] }
  0x6b   :  { %1780 = vmatpush1.bf16.msra.mxu0 %v1779_v16  ;;  %1144 = vmatmul.mubr.f32.vlgmr.msra.gmra.mrb[0].mxu1 %v41_v15  ;;  %v59_v15 = vld [vmem:[#allocation2 + $0x90] sm:$0xff]  ;;  %v1799_v16 = vpack.c.bf16 %v249_v6, %v245_v3  ;;  %v285_v6 = vld [vmem:[#allocation4 + $0x680] sm:$0xff]  ;;  %v294_v11 = vld [vmem:[#allocation4 + $0x6c8] sm:$0xff] }
  0x6c   :  { %2052 = vmatpush1.bf16.msra.mxu1 %v2051_v17  ;;  %1782 = vmatprep.subr.bf16.mxu0 %v1781_v18  ;;  %v253_v17 = vld [vmem:[#allocation4 + $0x580] sm:$0xff]  ;;  %v291_v10 = vld [vmem:[#allocation4 + $0x6b0] sm:$0xff]  ;;  %v298_v12 = vld [vmem:[#allocation4 + $0x6e8] sm:$0xff] }
  0x6d   :  { %2054 = vmatprep.subr.bf16.mxu1 %v2053_v22  ;;  %704 = vmatprep.mubr.f32.mxu0 %v51_v62  ;;  %v69_v18 = vld [vmem:[#allocation2 + $0xe0] sm:$0xff]  ;;  %v255_v22 = vld [vmem:[#allocation4 + $0x590] sm:$0xff]  ;;  %v300_v14 = vld [vmem:[#allocation4 + $0x6f8] sm:$0xff] }
  0x6e   :  { %1149 = vmatprep.mubr.f32.mxu1 %v51_v62  ;;  %705 = vmatmul.mubr.f32.gmra.mrb[2].mxu0 %v50_v1  ;;  %v2075_v32 = vpack.c.bf16 %v259_v23, %v255_v22  ;;  %v283_v62 = vld [vmem:[#allocation4 + $0x670] sm:$0xff]  ;;  %v302_v23 = vld [vmem:[#allocation4 + $0x708] sm:$0xff]  ;;  %v304_v25 = vld [vmem:[#allocation4 + $0x718] sm:$0xff] }
  0x6f   :  { %1784 = vmatpush1.bf16.msra.mxu0 %v1783_v28  ;;  %1150 = vmatmul.mubr.f32.gmra.mrb[2].mxu1 %v50_v1  ;;  %v264_v28 = vld [vmem:[#allocation4 + $0x5d8] sm:$0xff]  ;;  %v299_v22 = vld [vmem:[#allocation4 + $0x6f0] sm:$0xff]  ;;  %v314_v36 = vld [vmem:[#allocation4 + $0x768] sm:$0xff] }
  0x70   :  { %2056 = vmatpush1.bf16.msra.mxu1 %v2055_v29  ;;  %1786 = vmatprep.subr.bf16.mxu0 %v1785_v30  ;;  %v268_v29 = vld [vmem:[#allocation4 + $0x5f8] sm:$0xff]  ;;  %v1803_v30 = vpack.c.bf16 %v257_v21, %v253_v17  ;;  %v1821_v17 = vpack.c.bf16 %v298_v12, %v294_v11  ;;  %v2093_v21 = vpack.c.bf16 %v300_v14, %v296_v13  ;;  %v322_v48 = vld [vmem:[#allocation4 + $0x7a8] sm:$0xff]  ;;  %v333_v14 = vld [vmem:[#allocation4 + $0x800] sm:$0xff] }
  0x71   :  { %2058 = vmatprep.subr.bf16.mxu1 %v2057_v34  ;;  %710 = vmatprep.mubr.f32.mxu0 %v60_v8  ;;  %v261_v34 = vld [vmem:[#allocation4 + $0x5c0] sm:$0xff]  ;;  %v2077_v37 = vpack.c.bf16 %v268_v29, %v264_v28  ;;  %v288_v1 = vld [vmem:[#allocation4 + $0x698] sm:$0xff] }
  0x72   :  { %1155 = vmatprep.mubr.f32.mxu1 %v60_v8  ;;  %711 = vmatmul.mubr.f32.gmra.mrb[4].mxu0 %v59_v15  ;;  %v1807_v43 = vpack.c.bf16 %v265_v35, %v261_v34  ;;  %v287_v8 = vld [vmem:[#allocation4 + $0x690] sm:$0xff]  ;;  %v308_v26 = vld [vmem:[#allocation4 + $0x738] sm:$0xff]  ;;  %v310_v35 = vld [vmem:[#allocation4 + $0x748] sm:$0xff] }
  0x73   :  { %1788 = vmatpush1.bf16.msra.mxu0 %v1787_v40  ;;  %1156 = vmatmul.mubr.f32.gmra.mrb[4].mxu1 %v59_v15  ;;  %v274_v40 = vld [vmem:[#allocation4 + $0x628] sm:$0xff]  ;;  %v1819_v15 = vpack.c.bf16 %v289_v7, %v285_v6  ;;  %v307_v34 = vld [vmem:[#allocation4 + $0x730] sm:$0xff]  ;;  %v316_v38 = vld [vmem:[#allocation4 + $0x778] sm:$0xff] }
  0x74   :  { %2060 = vmatpush1.bf16.msra.mxu1 %v2059_v41  ;;  %1790 = vmatprep.subr.bf16.mxu0 %v1789_v42  ;;  %v272_v41 = vld [vmem:[#allocation4 + $0x618] sm:$0xff]  ;;  %v1809_v45 = vpack.c.bf16 %v274_v40, %v270_v39  ;;  %v331_v6 = vld [vmem:[#allocation4 + $0x7f0] sm:$0xff]  ;;  %v334_v7 = vld [vmem:[#allocation4 + $0x808] sm:$0xff] }
  0x75   :  { %2062 = vmatprep.subr.bf16.mxu1 %v2061_v46  ;;  %716 = vmatprep.mubr.f32.mxu0 %v69_v18  ;;  %v276_v42 = vld [vmem:[#allocation4 + $0x638] sm:$0xff]  ;;  %v269_v46 = vld [vmem:[#allocation4 + $0x600] sm:$0xff] }
  0x76   :  { %1161 = vmatprep.mubr.f32.mxu1 %v69_v18  ;;  %717 = vmatmul.mubr.f32.gmra.mrb[6].mxu0 %v68_v27  ;;  %v2081_v49 = vpack.c.bf16 %v276_v42, %v272_v41  ;;  %v293_v18 = vld [vmem:[#allocation4 + $0x6c0] sm:$0xff]  ;;  %v1829_v41 = vpack.c.bf16 %v314_v36, %v310_v35  ;;  %v324_v50 = vld [vmem:[#allocation4 + $0x7b8] sm:$0xff] }
  0x77   :  { %1792 = vmatpush1.bf16.msra.mxu0 %v1791_v52  ;;  %1162 = vmatmul.mubr.f32.gmra.mrb[6].mxu1 %v68_v27  ;;  %v282_v52 = vld [vmem:[#allocation4 + $0x668] sm:$0xff]  ;;  %v309_v42 = vld [vmem:[#allocation4 + $0x740] sm:$0xff]  ;;  %v356_v35 = vld [vmem:[#allocation4 + $0x8b8] sm:$0xff] }
  0x78   :  { %2064 = vmatpush1.bf16.msra.mxu1 %v2063_v54  ;;  %1794 = vmatprep.subr.bf16.mxu0 %v1793_v55  ;;  %v284_v54 = vld [vmem:[#allocation4 + $0x678] sm:$0xff]  ;;  %v1811_v55 = vpack.c.bf16 %v273_v47, %v269_v46  ;;  %v1813_v57 = vpack.c.bf16 %v282_v52, %v278_v51  ;;  %v315_v46 = vld [vmem:[#allocation4 + $0x770] sm:$0xff]  ;;  %v318_v47 = vld [vmem:[#allocation4 + $0x788] sm:$0xff] }
  0x79   :  { %2066 = vmatprep.subr.bf16.mxu1 %v2065_v59  ;;  %787 = vmatprep.mubr.f32.mxu0 %v44_v31  ;;  %v281_v59 = vld [vmem:[#allocation4 + $0x660] sm:$0xff]  ;;  %v2085_v61 = vpack.c.bf16 %v284_v54, %v280_v53  ;;  %v1833_v53 = vpack.c.bf16 %v322_v48, %v318_v47  ;;  %v362_v47 = vld [vmem:[#allocation4 + $0x8e8] sm:$0xff]  ;;  %v360_v48 = vld [vmem:[#allocation4 + $0x8d8] sm:$0xff] }
  0x7a   :  { %1232 = vmatprep.mubr.f32.mxu1 %v44_v31  ;;  %v1815_v3 = vpack.c.bf16 %v281_v59, %v277_v58  ;;  %v305_v31 = vld [vmem:[#allocation4 + $0x720] sm:$0xff]  ;;  %v323_v58 = vld [vmem:[#allocation4 + $0x7b0] sm:$0xff]  ;;  %v326_v59 = vld [vmem:[#allocation4 + $0x7c8] sm:$0xff] }
  0x7b   :  { %1796 = vmatpush1.bf16.msra.mxu0 %v1795_v2  ;;  %v292_v2 = vld [vmem:[#allocation4 + $0x6b8] sm:$0xff]  ;;  %v317_v54 = vld [vmem:[#allocation4 + $0x780] sm:$0xff] }
  0x7c   :  { %2068 = vmatpush1.bf16.msra.mxu1 %v2067_v4  ;;  %1798 = vmatprep.subr.bf16.mxu0 %v1797_v5  ;;  %v2087_v4 = vpack.c.bf16 %v283_v62, %v279_v60  ;;  %v1817_v5 = vpack.c.bf16 %v290_v0, %v286_v63  ;;  %v330_v60 = vld [vmem:[#allocation4 + $0x7e8] sm:$0xff]  ;;  %v332_v62 = vld [vmem:[#allocation4 + $0x7f8] sm:$0xff]  ;;  %v53_v36 = vld [vmem:[#allocation2 + $0x60] sm:$0xff] }
  0x7d   :  { %2070 = vmatprep.subr.bf16.mxu1 %v2069_v9  ;;  %v2089_v9 = vpack.c.bf16 %v292_v2, %v288_v1  ;;  %v1837_v1 = vpack.c.bf16 %v330_v60, %v326_v59  ;;  %v325_v2 = vld [vmem:[#allocation4 + $0x7c0] sm:$0xff]  ;;  %v363_v59 = vld [vmem:[#allocation4 + $0x8f0] sm:$0xff]  ;;  %v366_v60 = vld [vmem:[#allocation4 + $0x908] sm:$0xff] }
  0x7f   :  { %1800 = vmatpush1.bf16.msra.mxu0 %v1799_v16  ;;  %v2091_v16 = vpack.c.bf16 %v291_v10, %v287_v8  ;;  %v338_v8 = vld [vmem:[#allocation4 + $0x828] sm:$0xff]  ;;  %v340_v10 = vld [vmem:[#allocation4 + $0x838] sm:$0xff] }
  0x80   :  { %2072 = vmatpush1.bf16.msra.mxu1 %v2071_v19  ;;  %1802 = vmatprep.subr.bf16.mxu0 %v1801_v20  ;;  %v297_v19 = vld [vmem:[#allocation4 + $0x6e0] sm:$0xff]  ;;  %v295_v20 = vld [vmem:[#allocation4 + $0x6d0] sm:$0xff]  ;;  %v1841_v13 = vpack.c.bf16 %v338_v8, %v334_v7 }
  0x81   :  { %2074 = vmatprep.subr.bf16.mxu1 %v2073_v24  ;;  %v306_v24 = vld [vmem:[#allocation4 + $0x728] sm:$0xff]  ;;  %v1823_v27 = vpack.c.bf16 %v297_v19, %v293_v18  ;;  %v2095_v28 = vpack.c.bf16 %v299_v22, %v295_v20  ;;  %v339_v18 = vld [vmem:[#allocation4 + $0x830] sm:$0xff]  ;;  %v348_v22 = vld [vmem:[#allocation4 + $0x878] sm:$0xff] }
  0x82   :  { %v1825_v29 = vpack.c.bf16 %v306_v24, %v302_v23  ;;  %v342_v19 = vld [vmem:[#allocation4 + $0x848] sm:$0xff]  ;;  %v43_v23 = vld [vmem:[#allocation2 + $0x10] sm:$0xff] }
  0x83   :  { %1804 = vmatpush1.bf16.msra.mxu0 %v1803_v30  ;;  %v301_v30 = vld [vmem:[#allocation4 + $0x700] sm:$0xff]  ;;  %v346_v20 = vld [vmem:[#allocation4 + $0x868] sm:$0xff]  ;;  %v367_v7 = vld [vmem:[#allocation4 + $0x910] sm:$0xff] }
  0x84   :  { %2076 = vmatpush1.bf16.msra.mxu1 %v2075_v32  ;;  %1806 = vmatprep.subr.bf16.mxu0 %v1805_v33  ;;  %v303_v32 = vld [vmem:[#allocation4 + $0x710] sm:$0xff]  ;;  %v2097_v33 = vpack.c.bf16 %v308_v26, %v304_v25  ;;  %v1827_v39 = vpack.c.bf16 %v305_v31, %v301_v30  ;;  %v1845_v26 = vpack.c.bf16 %v346_v20, %v342_v19  ;;  %v377_v19 = vld [vmem:[#allocation4 + $0x960] sm:$0xff] }
  0x85   :  { %2078 = vmatprep.subr.bf16.mxu1 %v2077_v37  ;;  %v312_v37 = vld [vmem:[#allocation4 + $0x758] sm:$0xff]  ;;  %v2099_v40 = vpack.c.bf16 %v307_v34, %v303_v32  ;;  %v347_v31 = vld [vmem:[#allocation4 + $0x870] sm:$0xff]  ;;  %v350_v32 = vld [vmem:[#allocation4 + $0x888] sm:$0xff] }
  0x86   :  { %v352_v34 = vld [vmem:[#allocation4 + $0x898] sm:$0xff]  ;;  %v375_v20 = vld [vmem:[#allocation4 + $0x950] sm:$0xff] }
  0x87   :  { %1808 = vmatpush1.bf16.msra.mxu0 %v1807_v43  ;;  %v313_v43 = vld [vmem:[#allocation4 + $0x760] sm:$0xff] }
  0x88   :  { %2080 = vmatpush1.bf16.msra.mxu1 %v2079_v44  ;;  %1810 = vmatprep.subr.bf16.mxu0 %v1809_v45  ;;  %v311_v44 = vld [vmem:[#allocation4 + $0x750] sm:$0xff]  ;;  %v2101_v45 = vpack.c.bf16 %v316_v38, %v312_v37  ;;  %v1831_v51 = vpack.c.bf16 %v313_v43, %v309_v42  ;;  %v52_v38 = vld [vmem:[#allocation2 + $0x58] sm:$0xff]  ;;  %v353_v42 = vld [vmem:[#allocation4 + $0x8a0] sm:$0xff] }
  0x89   :  { %2082 = vmatprep.subr.bf16.mxu1 %v2081_v49  ;;  %v320_v49 = vld [vmem:[#allocation4 + $0x798] sm:$0xff]  ;;  %v2103_v52 = vpack.c.bf16 %v315_v46, %v311_v44  ;;  %v351_v43 = vld [vmem:[#allocation4 + $0x890] sm:$0xff]  ;;  %v2121_v44 = vpack.c.bf16 %v356_v35, %v352_v34  ;;  %v358_v46 = vld [vmem:[#allocation4 + $0x8c8] sm:$0xff] }
  0x8a   :  { %v387_v34 = vld [vmem:[#allocation4 + $0x9b0] sm:$0xff]  ;;  %v390_v35 = vld [vmem:[#allocation4 + $0x9c8] sm:$0xff] }
  0x8b   :  { %1812 = vmatpush1.bf16.msra.mxu0 %v1811_v55  ;;  %v321_v55 = vld [vmem:[#allocation4 + $0x7a0] sm:$0xff] }
  0x8c   :  { %2084 = vmatpush1.bf16.msra.mxu1 %v2083_v56  ;;  %1814 = vmatprep.subr.bf16.mxu0 %v1813_v57  ;;  %v319_v56 = vld [vmem:[#allocation4 + $0x790] sm:$0xff]  ;;  %v2105_v57 = vpack.c.bf16 %v324_v50, %v320_v49  ;;  %v1835_v63 = vpack.c.bf16 %v321_v55, %v317_v54  ;;  %v364_v49 = vld [vmem:[#allocation4 + $0x8f8] sm:$0xff]  ;;  %v62_v50 = vld [vmem:[#allocation2 + $0xa8] sm:$0xff]  ;;  %v1853_v54 = vpack.c.bf16 %v362_v47, %v358_v46 }
  0x8d   :  { %2086 = vmatprep.subr.bf16.mxu1 %v2085_v61  ;;  %v328_v61 = vld [vmem:[#allocation4 + $0x7d8] sm:$0xff]  ;;  %v2107_v0 = vpack.c.bf16 %v323_v58, %v319_v56  ;;  %v357_v55 = vld [vmem:[#allocation4 + $0x8c0] sm:$0xff]  ;;  %v2125_v58 = vpack.c.bf16 %v364_v49, %v360_v48  ;;  %v395_v46 = vld [vmem:[#allocation4 + $0x9f0] sm:$0xff] }
  0x8e   :  { %v361_v56 = vld [vmem:[#allocation4 + $0x8e0] sm:$0xff]  ;;  %v398_v47 = vld [vmem:[#allocation4 + $0xa08] sm:$0xff]  ;;  %v400_v49 = vld [vmem:[#allocation4 + $0xa18] sm:$0xff] }
  0x8f   :  { %1816 = vmatpush1.bf16.msra.mxu0 %v1815_v3  ;;  %v329_v3 = vld [vmem:[#allocation4 + $0x7e0] sm:$0xff]  ;;  %v402_v48 = vld [vmem:[#allocation4 + $0xa28] sm:$0xff] }
  0x90   :  { %2088 = vmatpush1.bf16.msra.mxu1 %v2087_v4  ;;  %1818 = vmatprep.subr.bf16.mxu0 %v1817_v5  ;;  %v327_v4 = vld [vmem:[#allocation4 + $0x7d0] sm:$0xff]  ;;  %v2109_v5 = vpack.c.bf16 %v332_v62, %v328_v61  ;;  %v1839_v11 = vpack.c.bf16 %v329_v3, %v325_v2  ;;  %v370_v61 = vld [vmem:[#allocation4 + $0x928] sm:$0xff]  ;;  %v368_v62 = vld [vmem:[#allocation4 + $0x918] sm:$0xff] }
  0x91   :  { %2090 = vmatprep.subr.bf16.mxu1 %v2089_v9  ;;  %v336_v9 = vld [vmem:[#allocation4 + $0x818] sm:$0xff]  ;;  %v2111_v12 = vpack.c.bf16 %v331_v6, %v327_v4  ;;  %v70_v2 = vld [vmem:[#allocation2 + $0xe8] sm:$0xff]  ;;  %v1857_v4 = vpack.c.bf16 %v370_v61, %v366_v60  ;;  %v369_v6 = vld [vmem:[#allocation4 + $0x920] sm:$0xff] }
  0x92   :  { %v410_v60 = vld [vmem:[#allocation4 + $0xa68] sm:$0xff]  ;;  %v408_v61 = vld [vmem:[#allocation4 + $0xa58] sm:$0xff] }
  0x93   :  { %1820 = vmatpush1.bf16.msra.mxu0 %v1819_v15  ;;  %v337_v15 = vld [vmem:[#allocation4 + $0x820] sm:$0xff] }
  0x94   :  { %2092 = vmatpush1.bf16.msra.mxu1 %v2091_v16  ;;  %1822 = vmatprep.subr.bf16.mxu0 %v1821_v17  ;;  %v335_v16 = vld [vmem:[#allocation4 + $0x810] sm:$0xff]  ;;  %v2113_v17 = vpack.c.bf16 %v340_v10, %v336_v9  ;;  %v1843_v24 = vpack.c.bf16 %v337_v15, %v333_v14  ;;  %v374_v10 = vld [vmem:[#allocation4 + $0x948] sm:$0xff] }
  0x95   :  { %2094 = vmatprep.subr.bf16.mxu1 %v2093_v21  ;;  %v344_v21 = vld [vmem:[#allocation4 + $0x858] sm:$0xff]  ;;  %v2115_v25 = vpack.c.bf16 %v339_v18, %v335_v16  ;;  %v371_v9 = vld [vmem:[#allocation4 + $0x930] sm:$0xff]  ;;  %v46_v14 = vld [vmem:[#allocation2 + $0x28] sm:$0xff] }
  0x96   :  { %v2117_v30 = vpack.c.bf16 %v348_v22, %v344_v21  ;;  %v2131_v16 = vpack.c.bf16 %v371_v9, %v367_v7  ;;  %v373_v18 = vld [vmem:[#allocation4 + $0x940] sm:$0xff]  ;;  %v379_v22 = vld [vmem:[#allocation4 + $0x970] sm:$0xff]  ;;  %v414_v7 = vld [vmem:[#allocation4 + $0xa88] sm:$0xff] }
  0x97   :  { %1824 = vmatpush1.bf16.msra.mxu0 %v1823_v27  ;;  %v341_v27 = vld [vmem:[#allocation4 + $0x840] sm:$0xff]  ;;  %v416_v9 = vld [vmem:[#allocation4 + $0xa98] sm:$0xff] }
  0x98   :  { %2096 = vmatpush1.bf16.msra.mxu1 %v2095_v28  ;;  %1826 = vmatprep.subr.bf16.mxu0 %v1825_v29  ;;  %v345_v28 = vld [vmem:[#allocation4 + $0x860] sm:$0xff]  ;;  %v343_v29 = vld [vmem:[#allocation4 + $0x850] sm:$0xff] }
  0x99   :  { %2098 = vmatprep.subr.bf16.mxu1 %v2097_v33  ;;  %v354_v33 = vld [vmem:[#allocation4 + $0x8a8] sm:$0xff]  ;;  %v1847_v37 = vpack.c.bf16 %v345_v28, %v341_v27  ;;  %v1863_v27 = vpack.c.bf16 %v377_v19, %v373_v18  ;;  %v2135_v28 = vpack.c.bf16 %v379_v22, %v375_v20  ;;  %v419_v18 = vld [vmem:[#allocation4 + $0xab0] sm:$0xff]  ;;  %v428_v22 = vld [vmem:[#allocation4 + $0xaf8] sm:$0xff] }
  0x9a   :  { %v422_v19 = vld [vmem:[#allocation4 + $0xac8] sm:$0xff] }
  0x9b   :  { %1828 = vmatpush1.bf16.msra.mxu0 %v1827_v39  ;;  %v2119_v39 = vpack.c.bf16 %v347_v31, %v343_v29  ;;  %v385_v31 = vld [vmem:[#allocation4 + $0x9a0] sm:$0xff]  ;;  %v426_v20 = vld [vmem:[#allocation4 + $0xae8] sm:$0xff] }
  0x9c   :  { %2100 = vmatpush1.bf16.msra.mxu1 %v2099_v40  ;;  %1830 = vmatprep.subr.bf16.mxu0 %v1829_v41  ;;  %v1849_v40 = vpack.c.bf16 %v354_v33, %v350_v32  ;;  %v349_v41 = vld [vmem:[#allocation4 + $0x880] sm:$0xff]  ;;  %v383_v32 = vld [vmem:[#allocation4 + $0x990] sm:$0xff] }
  0x9d   :  { %2102 = vmatprep.subr.bf16.mxu1 %v2101_v45  ;;  %v355_v45 = vld [vmem:[#allocation4 + $0x8b0] sm:$0xff] }
  0x9f   :  { %1832 = vmatpush1.bf16.msra.mxu0 %v1831_v51  ;;  %v1851_v51 = vpack.c.bf16 %v353_v42, %v349_v41  ;;  %v389_v42 = vld [vmem:[#allocation4 + $0x9c0] sm:$0xff] }
  0xa0   :  { %2104 = vmatpush1.bf16.msra.mxu1 %v2103_v52  ;;  %1834 = vmatprep.subr.bf16.mxu0 %v1833_v53  ;;  %v61_v52 = vld [vmem:[#allocation2 + $0xa0] sm:$0xff]  ;;  %v2123_v53 = vpack.c.bf16 %v355_v45, %v351_v43 }
  0xa1   :  { %2106 = vmatprep.subr.bf16.mxu1 %v2105_v57  ;;  %v359_v57 = vld [vmem:[#allocation4 + $0x8d0] sm:$0xff]  ;;  %v393_v43 = vld [vmem:[#allocation4 + $0x9e0] sm:$0xff] }
  0xa2   :  { %v2127_v3 = vpack.c.bf16 %v363_v59, %v359_v57  ;;  %v406_v59 = vld [vmem:[#allocation4 + $0xa48] sm:$0xff] }
  0xa3   :  { %1836 = vmatpush1.bf16.msra.mxu0 %v1835_v63  ;;  %v372_v63 = vld [vmem:[#allocation4 + $0x938] sm:$0xff] }
  0xa4   :  { %2108 = vmatpush1.bf16.msra.mxu1 %v2107_v0  ;;  %1838 = vmatprep.subr.bf16.mxu0 %v1837_v1  ;;  %v71_v0 = vld [vmem:[#allocation2 + $0xf0] sm:$0xff]  ;;  %v1855_v1 = vpack.c.bf16 %v361_v56, %v357_v55  ;;  %v2129_v8 = vpack.c.bf16 %v372_v63, %v368_v62  ;;  %v401_v55 = vld [vmem:[#allocation4 + $0xa20] sm:$0xff]  ;;  %v412_v62 = vld [vmem:[#allocation4 + $0xa78] sm:$0xff] }
  0xa5   :  { %2110 = vmatprep.subr.bf16.mxu1 %v2109_v5  ;;  %v365_v5 = vld [vmem:[#allocation4 + $0x900] sm:$0xff]  ;;  %v399_v56 = vld [vmem:[#allocation4 + $0xa10] sm:$0xff] }
  0xa6   :  { %v1859_v15 = vpack.c.bf16 %v369_v6, %v365_v5  ;;  %v2149_v5 = vpack.c.bf16 %v412_v62, %v408_v61  ;;  %v411_v6 = vld [vmem:[#allocation4 + $0xa70] sm:$0xff]  ;;  %v445_v62 = vld [vmem:[#allocation4 + $0xb80] sm:$0xff] }
  0xa7   :  { %1840 = vmatpush1.bf16.msra.mxu0 %v1839_v11  ;;  %v378_v11 = vld [vmem:[#allocation4 + $0x968] sm:$0xff] }
  0xa8   :  { %2112 = vmatpush1.bf16.msra.mxu1 %v2111_v12  ;;  %1842 = vmatprep.subr.bf16.mxu0 %v1841_v13  ;;  %v376_v12 = vld [vmem:[#allocation4 + $0x958] sm:$0xff] }
  0xa9   :  { %2114 = vmatprep.subr.bf16.mxu1 %v2113_v17  ;;  %v380_v13 = vld [vmem:[#allocation4 + $0x978] sm:$0xff]  ;;  %v1861_v17 = vpack.c.bf16 %v378_v11, %v374_v10 }
  0xaa   :  { %788 = vmatmul.mubr.f32.vlgmr.msra.gmra.mrb[0].mxu0 %v43_v23  ;;  %v2133_v21 = vpack.c.bf16 %v380_v13, %v376_v12  ;;  %v420_v10 = vld [vmem:[#allocation4 + $0xab8] sm:$0xff] }
  0xab   :  { %1844 = vmatpush1.bf16.msra.mxu0 %v1843_v24  ;;  %1233 = vmatmul.mubr.f32.vlgmr.msra.gmra.mrb[0].mxu1 %v43_v23  ;;  %v382_v23 = vld [vmem:[#allocation4 + $0x988] sm:$0xff] }
  0xac   :  { %2116 = vmatpush1.bf16.msra.mxu1 %v2115_v25  ;;  %1846 = vmatprep.subr.bf16.mxu0 %v1845_v26  ;;  %v386_v24 = vld [vmem:[#allocation4 + $0x9a8] sm:$0xff]  ;;  %v384_v25 = vld [vmem:[#allocation4 + $0x998] sm:$0xff] }
  0xad   :  { %2118 = vmatprep.subr.bf16.mxu1 %v2117_v30  ;;  %793 = vmatprep.mubr.f32.mxu0 %v53_v36  ;;  %v388_v26 = vld [vmem:[#allocation4 + $0x9b8] sm:$0xff]  ;;  %v1865_v29 = vpack.c.bf16 %v386_v24, %v382_v23  ;;  %v381_v30 = vld [vmem:[#allocation4 + $0x980] sm:$0xff] }
  0xae   :  { %1238 = vmatprep.mubr.f32.mxu1 %v53_v36  ;;  %794 = vmatmul.mubr.f32.gmra.mrb[2].mxu0 %v52_v38  ;;  %v2137_v33 = vpack.c.bf16 %v388_v26, %v384_v25  ;;  %v394_v36 = vld [vmem:[#allocation4 + $0x9e8] sm:$0xff]  ;;  %v1885_v25 = vpack.c.bf16 %v426_v20, %v422_v19  ;;  %v421_v26 = vld [vmem:[#allocation4 + $0xac0] sm:$0xff] }
  0xaf   :  { %1848 = vmatpush1.bf16.msra.mxu0 %v1847_v37  ;;  %1239 = vmatmul.mubr.f32.gmra.mrb[2].mxu1 %v52_v38  ;;  %v392_v37 = vld [vmem:[#allocation4 + $0x9d8] sm:$0xff]  ;;  %v1869_v41 = vpack.c.bf16 %v394_v36, %v390_v35 }
  0xb0   :  { %2120 = vmatpush1.bf16.msra.mxu1 %v2119_v39  ;;  %1850 = vmatprep.subr.bf16.mxu0 %v1849_v40  ;;  %v396_v38 = vld [vmem:[#allocation4 + $0x9f8] sm:$0xff]  ;;  %v1867_v39 = vpack.c.bf16 %v385_v31, %v381_v30  ;;  %v2139_v40 = vpack.c.bf16 %v387_v34, %v383_v32  ;;  %v427_v30 = vld [vmem:[#allocation4 + $0xaf0] sm:$0xff]  ;;  %v430_v31 = vld [vmem:[#allocation4 + $0xb08] sm:$0xff] }
  0xb1   :  { %2122 = vmatprep.subr.bf16.mxu1 %v2121_v44  ;;  %799 = vmatprep.mubr.f32.mxu0 %v62_v50  ;;  %v391_v44 = vld [vmem:[#allocation4 + $0x9d0] sm:$0xff]  ;;  %v2141_v45 = vpack.c.bf16 %v396_v38, %v392_v37  ;;  %v434_v32 = vld [vmem:[#allocation4 + $0xb28] sm:$0xff]  ;;  %v436_v34 = vld [vmem:[#allocation4 + $0xb38] sm:$0xff] }
  0xb2   :  { %1244 = vmatprep.mubr.f32.mxu1 %v62_v50  ;;  %800 = vmatmul.mubr.f32.gmra.mrb[4].mxu0 %v61_v52  ;;  %v404_v50 = vld [vmem:[#allocation4 + $0xa38] sm:$0xff]  ;;  %v1889_v37 = vpack.c.bf16 %v434_v32, %v430_v31  ;;  %v429_v38 = vld [vmem:[#allocation4 + $0xb00] sm:$0xff] }
  0xb3   :  { %1852 = vmatpush1.bf16.msra.mxu0 %v1851_v51  ;;  %1245 = vmatmul.mubr.f32.gmra.mrb[4].mxu1 %v61_v52  ;;  %v1871_v51 = vpack.c.bf16 %v393_v43, %v389_v42  ;;  %v2143_v52 = vpack.c.bf16 %v395_v46, %v391_v44  ;;  %v2145_v57 = vpack.c.bf16 %v404_v50, %v400_v49  ;;  %v435_v42 = vld [vmem:[#allocation4 + $0xb30] sm:$0xff]  ;;  %v438_v43 = vld [vmem:[#allocation4 + $0xb48] sm:$0xff]  ;;  %v444_v46 = vld [vmem:[#allocation4 + $0xb78] sm:$0xff] }
  0xb4   :  { %2124 = vmatpush1.bf16.msra.mxu1 %v2123_v53  ;;  %1854 = vmatprep.subr.bf16.mxu0 %v1853_v54  ;;  %v1873_v53 = vpack.c.bf16 %v402_v48, %v398_v47  ;;  %v397_v54 = vld [vmem:[#allocation4 + $0xa00] sm:$0xff]  ;;  %v442_v44 = vld [vmem:[#allocation4 + $0xb68] sm:$0xff] }
  0xb5   :  { %2126 = vmatprep.subr.bf16.mxu1 %v2125_v58  ;;  %805 = vmatprep.mubr.f32.mxu0 %v71_v0  ;;  %v403_v58 = vld [vmem:[#allocation4 + $0xa30] sm:$0xff]  ;;  %v1875_v63 = vpack.c.bf16 %v401_v55, %v397_v54  ;;  %v1893_v49 = vpack.c.bf16 %v442_v44, %v438_v43  ;;  %v437_v50 = vld [vmem:[#allocation4 + $0xb40] sm:$0xff]  ;;  %v446_v55 = vld [vmem:[#allocation4 + $0xb88] sm:$0xff] }
  0xb6   :  { %1250 = vmatprep.mubr.f32.mxu1 %v71_v0  ;;  %806 = vmatmul.mubr.f32.gmra.mrb[6].mxu0 %v70_v2  ;;  %v2147_v0 = vpack.c.bf16 %v403_v58, %v399_v56  ;;  %v443_v54 = vld [vmem:[#allocation4 + $0xb70] sm:$0xff]  ;;  %v450_v56 = vld [vmem:[#allocation4 + $0xba8] sm:$0xff]  ;;  %v452_v58 = vld [vmem:[#allocation4 + $0xbb8] sm:$0xff] }
  0xb7   :  { %1856 = vmatpush1.bf16.msra.mxu0 %v1855_v1  ;;  %1251 = vmatmul.mubr.f32.gmra.mrb[6].mxu1 %v70_v2  ;;  %v1877_v1 = vpack.c.bf16 %v410_v60, %v406_v59  ;;  %v405_v2 = vld [vmem:[#allocation4 + $0xa40] sm:$0xff]  ;;  %v1897_v61 = vpack.c.bf16 %v450_v56, %v446_v55  ;;  %v484_v43 = vld [vmem:[#allocation4 + $0xcb8] sm:$0xff]  ;;  %v55_v44 = vld [vmem:[#allocation2 + $0x70] sm:$0xff] }
  0xb8   :  { %2128 = vmatpush1.bf16.msra.mxu1 %v2127_v3  ;;  %1858 = vmatprep.subr.bf16.mxu0 %v1857_v4  ;;  %v409_v3 = vld [vmem:[#allocation4 + $0xa60] sm:$0xff]  ;;  %v407_v4 = vld [vmem:[#allocation4 + $0xa50] sm:$0xff]  ;;  %v490_v55 = vld [vmem:[#allocation4 + $0xce8] sm:$0xff] }
  0xb9   :  { %2130 = vmatprep.subr.bf16.mxu1 %v2129_v8  ;;  %876 = vmatprep.mubr.f32.mxu0 %v46_v14  ;;  %v418_v8 = vld [vmem:[#allocation4 + $0xaa8] sm:$0xff]  ;;  %v1879_v11 = vpack.c.bf16 %v409_v3, %v405_v2  ;;  %v2151_v12 = vpack.c.bf16 %v411_v6, %v407_v4  ;;  %v451_v2 = vld [vmem:[#allocation4 + $0xbb0] sm:$0xff]  ;;  %v460_v6 = vld [vmem:[#allocation4 + $0xbf8] sm:$0xff] }
  0xba   :  { %1321 = vmatprep.mubr.f32.mxu1 %v46_v14  ;;  %v1881_v13 = vpack.c.bf16 %v418_v8, %v414_v7  ;;  %v413_v14 = vld [vmem:[#allocation4 + $0xa80] sm:$0xff]  ;;  %v454_v3 = vld [vmem:[#allocation4 + $0xbc8] sm:$0xff]  ;;  %v488_v56 = vld [vmem:[#allocation4 + $0xcd8] sm:$0xff] }
  0xbb   :  { %1860 = vmatpush1.bf16.msra.mxu0 %v1859_v15  ;;  %v417_v15 = vld [vmem:[#allocation4 + $0xaa0] sm:$0xff]  ;;  %v458_v4 = vld [vmem:[#allocation4 + $0xbe8] sm:$0xff] }
  0xbc   :  { %2132 = vmatpush1.bf16.msra.mxu1 %v2131_v16  ;;  %1862 = vmatprep.subr.bf16.mxu0 %v1861_v17  ;;  %v415_v16 = vld [vmem:[#allocation4 + $0xa90] sm:$0xff]  ;;  %v2153_v17 = vpack.c.bf16 %v420_v10, %v416_v9  ;;  %v1883_v23 = vpack.c.bf16 %v417_v15, %v413_v14  ;;  %v1901_v9 = vpack.c.bf16 %v458_v4, %v454_v3  ;;  %v453_v10 = vld [vmem:[#allocation4 + $0xbc0] sm:$0xff]  ;;  %v462_v15 = vld [vmem:[#allocation4 + $0xc08] sm:$0xff] }
  0xbd   :  { %2134 = vmatprep.subr.bf16.mxu1 %v2133_v21  ;;  %v424_v21 = vld [vmem:[#allocation4 + $0xad8] sm:$0xff]  ;;  %v2155_v24 = vpack.c.bf16 %v419_v18, %v415_v16  ;;  %v459_v14 = vld [vmem:[#allocation4 + $0xbf0] sm:$0xff]  ;;  %v466_v16 = vld [vmem:[#allocation4 + $0xc28] sm:$0xff] }
  0xbe   :  { %v468_v18 = vld [vmem:[#allocation4 + $0xc38] sm:$0xff]  ;;  %v45_v31 = vld [vmem:[#allocation2 + $0x20] sm:$0xff]  ;;  %v491_v3 = vld [vmem:[#allocation4 + $0xcf0] sm:$0xff] }
  0xbf   :  { %1864 = vmatpush1.bf16.msra.mxu0 %v1863_v27  ;;  %v425_v27 = vld [vmem:[#allocation4 + $0xae0] sm:$0xff]  ;;  %v494_v4 = vld [vmem:[#allocation4 + $0xd08] sm:$0xff] }
  0xc0   :  { %2136 = vmatpush1.bf16.msra.mxu1 %v2135_v28  ;;  %1866 = vmatprep.subr.bf16.mxu0 %v1865_v29  ;;  %v423_v28 = vld [vmem:[#allocation4 + $0xad0] sm:$0xff]  ;;  %v2157_v29 = vpack.c.bf16 %v428_v22, %v424_v21  ;;  %v1887_v35 = vpack.c.bf16 %v425_v27, %v421_v26  ;;  %v1905_v21 = vpack.c.bf16 %v466_v16, %v462_v15  ;;  %v461_v22 = vld [vmem:[#allocation4 + $0xc00] sm:$0xff]  ;;  %v470_v27 = vld [vmem:[#allocation4 + $0xc48] sm:$0xff] }
  0xc1   :  { %2138 = vmatprep.subr.bf16.mxu1 %v2137_v33  ;;  %v432_v33 = vld [vmem:[#allocation4 + $0xb18] sm:$0xff]  ;;  %v2159_v36 = vpack.c.bf16 %v427_v30, %v423_v28  ;;  %v467_v26 = vld [vmem:[#allocation4 + $0xc30] sm:$0xff]  ;;  %v474_v28 = vld [vmem:[#allocation4 + $0xc68] sm:$0xff] }
  0xc2   :  { %v476_v30 = vld [vmem:[#allocation4 + $0xc78] sm:$0xff]  ;;  %v495_v15 = vld [vmem:[#allocation4 + $0xd10] sm:$0xff] }
  0xc3   :  { %1868 = vmatpush1.bf16.msra.mxu0 %v1867_v39  ;;  %v433_v39 = vld [vmem:[#allocation4 + $0xb20] sm:$0xff] }
  0xc4   :  { %2140 = vmatpush1.bf16.msra.mxu1 %v2139_v40  ;;  %1870 = vmatprep.subr.bf16.mxu0 %v1869_v41  ;;  %v431_v40 = vld [vmem:[#allocation4 + $0xb10] sm:$0xff]  ;;  %v2161_v41 = vpack.c.bf16 %v436_v34, %v432_v33  ;;  %v1891_v47 = vpack.c.bf16 %v433_v39, %v429_v38  ;;  %v1909_v34 = vpack.c.bf16 %v474_v28, %v470_v27  ;;  %v505_v27 = vld [vmem:[#allocation4 + $0xd60] sm:$0xff] }
  0xc5   :  { %2142 = vmatprep.subr.bf16.mxu1 %v2141_v45  ;;  %v440_v45 = vld [vmem:[#allocation4 + $0xb58] sm:$0xff]  ;;  %v2163_v48 = vpack.c.bf16 %v435_v42, %v431_v40  ;;  %v475_v39 = vld [vmem:[#allocation4 + $0xc70] sm:$0xff]  ;;  %v478_v40 = vld [vmem:[#allocation4 + $0xc88] sm:$0xff] }
  0xc6   :  { %v480_v42 = vld [vmem:[#allocation4 + $0xc98] sm:$0xff]  ;;  %v503_v28 = vld [vmem:[#allocation4 + $0xd50] sm:$0xff] }
  0xc7   :  { %1872 = vmatpush1.bf16.msra.mxu0 %v1871_v51  ;;  %v441_v51 = vld [vmem:[#allocation4 + $0xb60] sm:$0xff] }
  0xc8   :  { %2144 = vmatpush1.bf16.msra.mxu1 %v2143_v52  ;;  %1874 = vmatprep.subr.bf16.mxu0 %v1873_v53  ;;  %v439_v52 = vld [vmem:[#allocation4 + $0xb50] sm:$0xff]  ;;  %v2165_v53 = vpack.c.bf16 %v444_v46, %v440_v45  ;;  %v1895_v59 = vpack.c.bf16 %v441_v51, %v437_v50  ;;  %v54_v46 = vld [vmem:[#allocation2 + $0x68] sm:$0xff]  ;;  %v481_v50 = vld [vmem:[#allocation4 + $0xca0] sm:$0xff] }
  0xc9   :  { %2146 = vmatprep.subr.bf16.mxu1 %v2145_v57  ;;  %v448_v57 = vld [vmem:[#allocation4 + $0xb98] sm:$0xff]  ;;  %v2167_v60 = vpack.c.bf16 %v443_v54, %v439_v52  ;;  %v479_v51 = vld [vmem:[#allocation4 + $0xc90] sm:$0xff]  ;;  %v2185_v52 = vpack.c.bf16 %v484_v43, %v480_v42  ;;  %v486_v54 = vld [vmem:[#allocation4 + $0xcc8] sm:$0xff] }
  0xca   :  { %v515_v42 = vld [vmem:[#allocation4 + $0xdb0] sm:$0xff]  ;;  %v518_v43 = vld [vmem:[#allocation4 + $0xdc8] sm:$0xff] }
  0xcb   :  { %1876 = vmatpush1.bf16.msra.mxu0 %v1875_v63  ;;  %v449_v63 = vld [vmem:[#allocation4 + $0xba0] sm:$0xff] }
  0xcc   :  { %2148 = vmatpush1.bf16.msra.mxu1 %v2147_v0  ;;  %1878 = vmatprep.subr.bf16.mxu0 %v1877_v1  ;;  %v447_v0 = vld [vmem:[#allocation4 + $0xb90] sm:$0xff]  ;;  %v2169_v1 = vpack.c.bf16 %v452_v58, %v448_v57  ;;  %v1899_v7 = vpack.c.bf16 %v449_v63, %v445_v62  ;;  %v492_v57 = vld [vmem:[#allocation4 + $0xcf8] sm:$0xff]  ;;  %v1917_v62 = vpack.c.bf16 %v490_v55, %v486_v54  ;;  %v485_v63 = vld [vmem:[#allocation4 + $0xcc0] sm:$0xff] }
  0xcd   :  { %2150 = vmatprep.subr.bf16.mxu1 %v2149_v5  ;;  %v456_v5 = vld [vmem:[#allocation4 + $0xbd8] sm:$0xff]  ;;  %v2171_v8 = vpack.c.bf16 %v451_v2, %v447_v0  ;;  %v489_v0 = vld [vmem:[#allocation4 + $0xce0] sm:$0xff]  ;;  %v2189_v2 = vpack.c.bf16 %v492_v57, %v488_v56  ;;  %v523_v54 = vld [vmem:[#allocation4 + $0xdf0] sm:$0xff] }
  0xce   :  { %v64_v58 = vld [vmem:[#allocation2 + $0xb8] sm:$0xff]  ;;  %v526_v55 = vld [vmem:[#allocation4 + $0xe08] sm:$0xff] }
  0xcf   :  { %1880 = vmatpush1.bf16.msra.mxu0 %v1879_v11  ;;  %v457_v11 = vld [vmem:[#allocation4 + $0xbe0] sm:$0xff]  ;;  %v530_v56 = vld [vmem:[#allocation4 + $0xe28] sm:$0xff]  ;;  %v528_v57 = vld [vmem:[#allocation4 + $0xe18] sm:$0xff] }
  0xd0   :  { %2152 = vmatpush1.bf16.msra.mxu1 %v2151_v12  ;;  %1882 = vmatprep.subr.bf16.mxu0 %v1881_v13  ;;  %v455_v12 = vld [vmem:[#allocation4 + $0xbd0] sm:$0xff]  ;;  %v2173_v13 = vpack.c.bf16 %v460_v6, %v456_v5  ;;  %v1903_v19 = vpack.c.bf16 %v457_v11, %v453_v10  ;;  %v498_v5 = vld [vmem:[#allocation4 + $0xd28] sm:$0xff]  ;;  %v496_v6 = vld [vmem:[#allocation4 + $0xd18] sm:$0xff] }
  0xd1   :  { %2154 = vmatprep.subr.bf16.mxu1 %v2153_v17  ;;  %v464_v17 = vld [vmem:[#allocation4 + $0xc18] sm:$0xff]  ;;  %v2175_v20 = vpack.c.bf16 %v459_v14, %v455_v12  ;;  %v1921_v12 = vpack.c.bf16 %v498_v5, %v494_v4  ;;  %v497_v14 = vld [vmem:[#allocation4 + $0xd20] sm:$0xff]  ;;  %v538_v4 = vld [vmem:[#allocation4 + $0xe68] sm:$0xff] }
  0xd2   :  { %v72_v10 = vld [vmem:[#allocation2 + $0xf8] sm:$0xff] }
  0xd3   :  { %1884 = vmatpush1.bf16.msra.mxu0 %v1883_v23  ;;  %v465_v23 = vld [vmem:[#allocation4 + $0xc20] sm:$0xff]  ;;  %v536_v5 = vld [vmem:[#allocation4 + $0xe58] sm:$0xff] }
  0xd4   :  { %2156 = vmatpush1.bf16.msra.mxu1 %v2155_v24  ;;  %1886 = vmatprep.subr.bf16.mxu0 %v1885_v25  ;;  %v463_v24 = vld [vmem:[#allocation4 + $0xc10] sm:$0xff]  ;;  %v2177_v25 = vpack.c.bf16 %v468_v18, %v464_v17  ;;  %v1907_v32 = vpack.c.bf16 %v465_v23, %v461_v22  ;;  %v502_v18 = vld [vmem:[#allocation4 + $0xd48] sm:$0xff]  ;;  %v48_v22 = vld [vmem:[#allocation2 + $0x38] sm:$0xff] }
  0xd5   :  { %2158 = vmatprep.subr.bf16.mxu1 %v2157_v29  ;;  %v472_v29 = vld [vmem:[#allocation4 + $0xc58] sm:$0xff]  ;;  %v2179_v33 = vpack.c.bf16 %v467_v26, %v463_v24  ;;  %v499_v17 = vld [vmem:[#allocation4 + $0xd30] sm:$0xff]  ;;  %v501_v26 = vld [vmem:[#allocation4 + $0xd40] sm:$0xff] }
  0xd6   :  { %v2181_v38 = vpack.c.bf16 %v476_v30, %v472_v29  ;;  %v2195_v24 = vpack.c.bf16 %v499_v17, %v495_v15  ;;  %v507_v30 = vld [vmem:[#allocation4 + $0xd70] sm:$0xff]  ;;  %v542_v15 = vld [vmem:[#allocation4 + $0xe88] sm:$0xff]  ;;  %v544_v17 = vld [vmem:[#allocation4 + $0xe98] sm:$0xff] }
  0xd7   :  { %1888 = vmatpush1.bf16.msra.mxu0 %v1887_v35  ;;  %v469_v35 = vld [vmem:[#allocation4 + $0xc40] sm:$0xff] }
  0xd8   :  { %2160 = vmatpush1.bf16.msra.mxu1 %v2159_v36  ;;  %1890 = vmatprep.subr.bf16.mxu0 %v1889_v37  ;;  %v473_v36 = vld [vmem:[#allocation4 + $0xc60] sm:$0xff]  ;;  %v471_v37 = vld [vmem:[#allocation4 + $0xc50] sm:$0xff] }
  0xd9   :  { %2162 = vmatprep.subr.bf16.mxu1 %v2161_v41  ;;  %v482_v41 = vld [vmem:[#allocation4 + $0xca8] sm:$0xff]  ;;  %v1911_v45 = vpack.c.bf16 %v473_v36, %v469_v35  ;;  %v1927_v35 = vpack.c.bf16 %v505_v27, %v501_v26  ;;  %v2199_v36 = vpack.c.bf16 %v507_v30, %v503_v28  ;;  %v547_v26 = vld [vmem:[#allocation4 + $0xeb0] sm:$0xff]  ;;  %v556_v30 = vld [vmem:[#allocation4 + $0xef8] sm:$0xff] }
  0xda   :  { %v550_v27 = vld [vmem:[#allocation4 + $0xec8] sm:$0xff] }
  0xdb   :  { %1892 = vmatpush1.bf16.msra.mxu0 %v1891_v47  ;;  %v2183_v47 = vpack.c.bf16 %v475_v39, %v471_v37  ;;  %v513_v39 = vld [vmem:[#allocation4 + $0xda0] sm:$0xff]  ;;  %v554_v28 = vld [vmem:[#allocation4 + $0xee8] sm:$0xff] }
  0xdc   :  { %2164 = vmatpush1.bf16.msra.mxu1 %v2163_v48  ;;  %1894 = vmatprep.subr.bf16.mxu0 %v1893_v49  ;;  %v1913_v48 = vpack.c.bf16 %v482_v41, %v478_v40  ;;  %v477_v49 = vld [vmem:[#allocation4 + $0xc80] sm:$0xff]  ;;  %v511_v40 = vld [vmem:[#allocation4 + $0xd90] sm:$0xff] }
  0xdd   :  { %2166 = vmatprep.subr.bf16.mxu1 %v2165_v53  ;;  %v483_v53 = vld [vmem:[#allocation4 + $0xcb0] sm:$0xff] }
  0xdf   :  { %1896 = vmatpush1.bf16.msra.mxu0 %v1895_v59  ;;  %v1915_v59 = vpack.c.bf16 %v481_v50, %v477_v49  ;;  %v517_v50 = vld [vmem:[#allocation4 + $0xdc0] sm:$0xff] }
  0xe0   :  { %2168 = vmatpush1.bf16.msra.mxu1 %v2167_v60  ;;  %1898 = vmatprep.subr.bf16.mxu0 %v1897_v61  ;;  %v63_v60 = vld [vmem:[#allocation2 + $0xb0] sm:$0xff]  ;;  %v2187_v61 = vpack.c.bf16 %v483_v53, %v479_v51  ;;  %v521_v51 = vld [vmem:[#allocation4 + $0xde0] sm:$0xff] }
  0xe1   :  { %2170 = vmatprep.subr.bf16.mxu1 %v2169_v1  ;;  %v487_v1 = vld [vmem:[#allocation4 + $0xcd0] sm:$0xff] }
  0xe2   :  { %v2191_v11 = vpack.c.bf16 %v491_v3, %v487_v1  ;;  %v534_v3 = vld [vmem:[#allocation4 + $0xe48] sm:$0xff] }
  0xe3   :  { %1900 = vmatpush1.bf16.msra.mxu0 %v1899_v7  ;;  %v500_v7 = vld [vmem:[#allocation4 + $0xd38] sm:$0xff] }
  0xe4   :  { %2172 = vmatpush1.bf16.msra.mxu1 %v2171_v8  ;;  %1902 = vmatprep.subr.bf16.mxu0 %v1901_v9  ;;  %v73_v8 = vld [vmem:[#allocation2 + $0x100] sm:$0xff]  ;;  %v1919_v9 = vpack.c.bf16 %v489_v0, %v485_v63  ;;  %v2193_v16 = vpack.c.bf16 %v500_v7, %v496_v6  ;;  %v527_v0 = vld [vmem:[#allocation4 + $0xe10] sm:$0xff]  ;;  %v540_v6 = vld [vmem:[#allocation4 + $0xe78] sm:$0xff] }
  0xe5   :  { %2174 = vmatprep.subr.bf16.mxu1 %v2173_v13  ;;  %v493_v13 = vld [vmem:[#allocation4 + $0xd00] sm:$0xff] }
  0xe6   :  { %v1923_v23 = vpack.c.bf16 %v497_v14, %v493_v13  ;;  %v529_v63 = vld [vmem:[#allocation4 + $0xe20] sm:$0xff]  ;;  %v2213_v13 = vpack.c.bf16 %v540_v6, %v536_v5  ;;  %v539_v14 = vld [vmem:[#allocation4 + $0xe70] sm:$0xff] }
  0xe7   :  { %1904 = vmatpush1.bf16.msra.mxu0 %v1903_v19  ;;  %v506_v19 = vld [vmem:[#allocation4 + $0xd68] sm:$0xff]  ;;  %v573_v6 = vld [vmem:[#allocation4 + $0xf80] sm:$0xff] }
  0xe8   :  { %2176 = vmatpush1.bf16.msra.mxu1 %v2175_v20  ;;  %1906 = vmatprep.subr.bf16.mxu0 %v1905_v21  ;;  %v504_v20 = vld [vmem:[#allocation4 + $0xd58] sm:$0xff] }
  0xe9   :  { %2178 = vmatprep.subr.bf16.mxu1 %v2177_v25  ;;  %v508_v21 = vld [vmem:[#allocation4 + $0xd78] sm:$0xff]  ;;  %v1925_v25 = vpack.c.bf16 %v506_v19, %v502_v18 }
  0xea   :  { %877 = vmatmul.mubr.f32.vlgmr.msra.gmra.mrb[0].mxu0 %v45_v31  ;;  %v2197_v29 = vpack.c.bf16 %v508_v21, %v504_v20  ;;  %v548_v18 = vld [vmem:[#allocation4 + $0xeb8] sm:$0xff] }
  0xeb   :  { %1908 = vmatpush1.bf16.msra.mxu0 %v1907_v32  ;;  %1322 = vmatmul.mubr.f32.vlgmr.msra.gmra.mrb[0].mxu1 %v45_v31  ;;  %v510_v31 = vld [vmem:[#allocation4 + $0xd88] sm:$0xff] }
  0xec   :  { %2180 = vmatpush1.bf16.msra.mxu1 %v2179_v33  ;;  %1910 = vmatprep.subr.bf16.mxu0 %v1909_v34  ;;  %v514_v32 = vld [vmem:[#allocation4 + $0xda8] sm:$0xff]  ;;  %v512_v33 = vld [vmem:[#allocation4 + $0xd98] sm:$0xff] }
  0xed   :  { %2182 = vmatprep.subr.bf16.mxu1 %v2181_v38  ;;  %882 = vmatprep.mubr.f32.mxu0 %v55_v44  ;;  %v516_v34 = vld [vmem:[#allocation4 + $0xdb8] sm:$0xff]  ;;  %v1929_v37 = vpack.c.bf16 %v514_v32, %v510_v31  ;;  %v509_v38 = vld [vmem:[#allocation4 + $0xd80] sm:$0xff] }
  0xee   :  { %1327 = vmatprep.mubr.f32.mxu1 %v55_v44  ;;  %883 = vmatmul.mubr.f32.gmra.mrb[2].mxu0 %v54_v46  ;;  %v2201_v41 = vpack.c.bf16 %v516_v34, %v512_v33  ;;  %v522_v44 = vld [vmem:[#allocation4 + $0xde8] sm:$0xff]  ;;  %v1949_v33 = vpack.c.bf16 %v554_v28, %v550_v27  ;;  %v549_v34 = vld [vmem:[#allocation4 + $0xec0] sm:$0xff] }
  0xef   :  { %1912 = vmatpush1.bf16.msra.mxu0 %v1911_v45  ;;  %1328 = vmatmul.mubr.f32.gmra.mrb[2].mxu1 %v54_v46  ;;  %v520_v45 = vld [vmem:[#allocation4 + $0xdd8] sm:$0xff]  ;;  %v1933_v49 = vpack.c.bf16 %v522_v44, %v518_v43 }
  0xf0   :  { %2184 = vmatpush1.bf16.msra.mxu1 %v2183_v47  ;;  %1914 = vmatprep.subr.bf16.mxu0 %v1913_v48  ;;  %v524_v46 = vld [vmem:[#allocation4 + $0xdf8] sm:$0xff]  ;;  %v1931_v47 = vpack.c.bf16 %v513_v39, %v509_v38  ;;  %v2203_v48 = vpack.c.bf16 %v515_v42, %v511_v40  ;;  %v555_v38 = vld [vmem:[#allocation4 + $0xef0] sm:$0xff]  ;;  %v558_v39 = vld [vmem:[#allocation4 + $0xf08] sm:$0xff] }
  0xf1   :  { %2186 = vmatprep.subr.bf16.mxu1 %v2185_v52  ;;  %888 = vmatprep.mubr.f32.mxu0 %v64_v58  ;;  %v519_v52 = vld [vmem:[#allocation4 + $0xdd0] sm:$0xff]  ;;  %v2205_v53 = vpack.c.bf16 %v524_v46, %v520_v45  ;;  %v562_v40 = vld [vmem:[#allocation4 + $0xf28] sm:$0xff]  ;;  %v564_v42 = vld [vmem:[#allocation4 + $0xf38] sm:$0xff] }
  0xf2   :  { %1333 = vmatprep.mubr.f32.mxu1 %v64_v58  ;;  %889 = vmatmul.mubr.f32.gmra.mrb[4].mxu0 %v63_v60  ;;  %v532_v58 = vld [vmem:[#allocation4 + $0xe38] sm:$0xff]  ;;  %v1953_v45 = vpack.c.bf16 %v562_v40, %v558_v39  ;;  %v557_v46 = vld [vmem:[#allocation4 + $0xf00] sm:$0xff] }
  0xf3   :  { %1916 = vmatpush1.bf16.msra.mxu0 %v1915_v59  ;;  %1334 = vmatmul.mubr.f32.gmra.mrb[4].mxu1 %v63_v60  ;;  %v1935_v59 = vpack.c.bf16 %v521_v51, %v517_v50  ;;  %v2207_v60 = vpack.c.bf16 %v523_v54, %v519_v52  ;;  %v2209_v1 = vpack.c.bf16 %v532_v58, %v528_v57  ;;  %v563_v50 = vld [vmem:[#allocation4 + $0xf30] sm:$0xff]  ;;  %v566_v51 = vld [vmem:[#allocation4 + $0xf48] sm:$0xff]  ;;  %v572_v54 = vld [vmem:[#allocation4 + $0xf78] sm:$0xff] }
  0xf4   :  { %2188 = vmatpush1.bf16.msra.mxu1 %v2187_v61  ;;  %1918 = vmatprep.subr.bf16.mxu0 %v1917_v62  ;;  %v1937_v61 = vpack.c.bf16 %v530_v56, %v526_v55  ;;  %v525_v62 = vld [vmem:[#allocation4 + $0xe00] sm:$0xff]  ;;  %v570_v52 = vld [vmem:[#allocation4 + $0xf68] sm:$0xff]  ;;  %v600_v39 = vld [vmem:[#allocation4 + $0x1058] sm:$0xff] }
  0xf5   :  { %2190 = vmatprep.subr.bf16.mxu1 %v2189_v2  ;;  %894 = vmatprep.mubr.f32.mxu0 %v73_v8  ;;  %v531_v2 = vld [vmem:[#allocation4 + $0xe30] sm:$0xff]  ;;  %v1939_v7 = vpack.c.bf16 %v529_v63, %v525_v62  ;;  %v1957_v57 = vpack.c.bf16 %v570_v52, %v566_v51  ;;  %v565_v58 = vld [vmem:[#allocation4 + $0xf40] sm:$0xff]  ;;  %v574_v63 = vld [vmem:[#allocation4 + $0xf88] sm:$0xff] }
  0xf6   :  { %1339 = vmatprep.mubr.f32.mxu1 %v73_v8  ;;  %895 = vmatmul.mubr.f32.gmra.mrb[6].mxu0 %v72_v10  ;;  %v2211_v8 = vpack.c.bf16 %v531_v2, %v527_v0  ;;  %v571_v62 = vld [vmem:[#allocation4 + $0xf70] sm:$0xff]  ;;  %v578_v0 = vld [vmem:[#allocation4 + $0xfa8] sm:$0xff]  ;;  %v580_v2 = vld [vmem:[#allocation4 + $0xfb8] sm:$0xff] }
  0xf7   :  { %1920 = vmatpush1.bf16.msra.mxu0 %v1919_v9  ;;  %1340 = vmatmul.mubr.f32.gmra.mrb[6].mxu1 %v72_v10  ;;  %v1941_v9 = vpack.c.bf16 %v538_v4, %v534_v3  ;;  %v533_v10 = vld [vmem:[#allocation4 + $0xe40] sm:$0xff]  ;;  %v1961_v5 = vpack.c.bf16 %v578_v0, %v574_v63  ;;  %v604_v40 = vld [vmem:[#allocation4 + $0x1078] sm:$0xff]  ;;  %v614_v63 = vld [vmem:[#allocation4 + $0x10c8] sm:$0xff] }
  0xf8   :  { %2192 = vmatpush1.bf16.msra.mxu1 %v2191_v11  ;;  %1922 = vmatprep.subr.bf16.mxu0 %v1921_v12  ;;  %v537_v11 = vld [vmem:[#allocation4 + $0xe60] sm:$0xff]  ;;  %v535_v12 = vld [vmem:[#allocation4 + $0xe50] sm:$0xff]  ;;  %v56_v51 = vld [vmem:[#allocation2 + $0x78] sm:$0xff] }
  0xf9   :  { %2194 = vmatprep.subr.bf16.mxu1 %v2193_v16  ;;  %965 = vmatprep.mubr.f32.mxu0 %v48_v22  ;;  %v546_v16 = vld [vmem:[#allocation4 + $0xea8] sm:$0xff]  ;;  %v1943_v19 = vpack.c.bf16 %v537_v11, %v533_v10  ;;  %v2215_v20 = vpack.c.bf16 %v539_v14, %v535_v12  ;;  %v579_v10 = vld [vmem:[#allocation4 + $0xfb0] sm:$0xff]  ;;  %v588_v14 = vld [vmem:[#allocation4 + $0xff8] sm:$0xff] }
  0xfa   :  { %1410 = vmatprep.mubr.f32.mxu1 %v48_v22  ;;  %v1945_v21 = vpack.c.bf16 %v546_v16, %v542_v15  ;;  %v541_v22 = vld [vmem:[#allocation4 + $0xe80] sm:$0xff]  ;;  %v582_v11 = vld [vmem:[#allocation4 + $0xfc8] sm:$0xff] }
  0xfb   :  { %1924 = vmatpush1.bf16.msra.mxu0 %v1923_v23  ;;  %v545_v23 = vld [vmem:[#allocation4 + $0xea0] sm:$0xff]  ;;  %v586_v12 = vld [vmem:[#allocation4 + $0xfe8] sm:$0xff] }
  0xfc   :  { %2196 = vmatpush1.bf16.msra.mxu1 %v2195_v24  ;;  %1926 = vmatprep.subr.bf16.mxu0 %v1925_v25  ;;  %v543_v24 = vld [vmem:[#allocation4 + $0xe90] sm:$0xff]  ;;  %v2217_v25 = vpack.c.bf16 %v548_v18, %v544_v17  ;;  %v1947_v31 = vpack.c.bf16 %v545_v23, %v541_v22  ;;  %v1965_v17 = vpack.c.bf16 %v586_v12, %v582_v11  ;;  %v581_v18 = vld [vmem:[#allocation4 + $0xfc0] sm:$0xff]  ;;  %v590_v23 = vld [vmem:[#allocation4 + $0x1008] sm:$0xff] }
  0xfd   :  { %2198 = vmatprep.subr.bf16.mxu1 %v2197_v29  ;;  %v552_v29 = vld [vmem:[#allocation4 + $0xed8] sm:$0xff]  ;;  %v2219_v32 = vpack.c.bf16 %v547_v26, %v543_v24  ;;  %v587_v22 = vld [vmem:[#allocation4 + $0xff0] sm:$0xff]  ;;  %v594_v24 = vld [vmem:[#allocation4 + $0x1028] sm:$0xff] }
  0xfe   :  { %v596_v26 = vld [vmem:[#allocation4 + $0x1038] sm:$0xff]  ;;  %v618_v0 = vld [vmem:[#allocation4 + $0x10e8] sm:$0xff]  ;;  %v619_v11 = vld [vmem:[#allocation4 + $0x10f0] sm:$0xff] }
  0xff   :  { %1928 = vmatpush1.bf16.msra.mxu0 %v1927_v35  ;;  %v553_v35 = vld [vmem:[#allocation4 + $0xee0] sm:$0xff] }
 0x100   :  { %2200 = vmatpush1.bf16.msra.mxu1 %v2199_v36  ;;  %1930 = vmatprep.subr.bf16.mxu0 %v1929_v37  ;;  %v551_v36 = vld [vmem:[#allocation4 + $0xed0] sm:$0xff]  ;;  %v2221_v37 = vpack.c.bf16 %v556_v30, %v552_v29  ;;  %v1951_v43 = vpack.c.bf16 %v553_v35, %v549_v34  ;;  %v1969_v29 = vpack.c.bf16 %v594_v24, %v590_v23  ;;  %v589_v30 = vld [vmem:[#allocation4 + $0x1000] sm:$0xff]  ;;  %v598_v35 = vld [vmem:[#allocation4 + $0x1048] sm:$0xff] }
 0x101   :  { %2202 = vmatprep.subr.bf16.mxu1 %v2201_v41  ;;  %v560_v41 = vld [vmem:[#allocation4 + $0xf18] sm:$0xff]  ;;  %v2223_v44 = vpack.c.bf16 %v555_v38, %v551_v36  ;;  %v595_v34 = vld [vmem:[#allocation4 + $0x1030] sm:$0xff]  ;;  %v602_v36 = vld [vmem:[#allocation4 + $0x1068] sm:$0xff] }
 0x103   :  { %1932 = vmatpush1.bf16.msra.mxu0 %v1931_v47  ;;  %v561_v47 = vld [vmem:[#allocation4 + $0xf20] sm:$0xff] }
 0x104   :  { %2204 = vmatpush1.bf16.msra.mxu1 %v2203_v48  ;;  %1934 = vmatprep.subr.bf16.mxu0 %v1933_v49  ;;  %v559_v48 = vld [vmem:[#allocation4 + $0xf10] sm:$0xff]  ;;  %v2225_v49 = vpack.c.bf16 %v564_v42, %v560_v41  ;;  %v1955_v55 = vpack.c.bf16 %v561_v47, %v557_v46  ;;  %v597_v42 = vld [vmem:[#allocation4 + $0x1040] sm:$0xff] }
 0x105   :  { %2206 = vmatprep.subr.bf16.mxu1 %v2205_v53  ;;  %v568_v53 = vld [vmem:[#allocation4 + $0xf58] sm:$0xff]  ;;  %v2227_v56 = vpack.c.bf16 %v563_v50, %v559_v48  ;;  %v599_v46 = vld [vmem:[#allocation4 + $0x1050] sm:$0xff]  ;;  %v2245_v48 = vpack.c.bf16 %v604_v40, %v600_v39  ;;  %v610_v50 = vld [vmem:[#allocation4 + $0x10a8] sm:$0xff] }
 0x106   :  { %v603_v47 = vld [vmem:[#allocation4 + $0x1070] sm:$0xff] }
 0x107   :  { %1936 = vmatpush1.bf16.msra.mxu0 %v1935_v59  ;;  %v569_v59 = vld [vmem:[#allocation4 + $0xf60] sm:$0xff] }
 0x108   :  { %2208 = vmatpush1.bf16.msra.mxu1 %v2207_v60  ;;  %1938 = vmatprep.subr.bf16.mxu0 %v1937_v61  ;;  %v567_v60 = vld [vmem:[#allocation4 + $0xf50] sm:$0xff]  ;;  %v2229_v61 = vpack.c.bf16 %v572_v54, %v568_v53  ;;  %v1959_v3 = vpack.c.bf16 %v569_v59, %v565_v58  ;;  %v608_v53 = vld [vmem:[#allocation4 + $0x1098] sm:$0xff]  ;;  %v66_v58 = vld [vmem:[#allocation2 + $0xc8] sm:$0xff] }
 0x109   :  { %2210 = vmatprep.subr.bf16.mxu1 %v2209_v1  ;;  %v576_v1 = vld [vmem:[#allocation4 + $0xf98] sm:$0xff]  ;;  %v2231_v4 = vpack.c.bf16 %v571_v62, %v567_v60  ;;  %v607_v60 = vld [vmem:[#allocation4 + $0x1090] sm:$0xff] }
 0x10a   :  { %v612_v54 = vld [vmem:[#allocation4 + $0x10b8] sm:$0xff] }
 0x10b   :  { %1940 = vmatpush1.bf16.msra.mxu0 %v1939_v7  ;;  %v577_v7 = vld [vmem:[#allocation4 + $0xfa0] sm:$0xff]  ;;  %v2249_v62 = vpack.c.bf16 %v612_v54, %v608_v53 }
 0x10c   :  { %2212 = vmatpush1.bf16.msra.mxu1 %v2211_v8  ;;  %1942 = vmatprep.subr.bf16.mxu0 %v1941_v9  ;;  %v575_v8 = vld [vmem:[#allocation4 + $0xf90] sm:$0xff]  ;;  %v2233_v9 = vpack.c.bf16 %v580_v2, %v576_v1  ;;  %v1963_v15 = vpack.c.bf16 %v577_v7, %v573_v6  ;;  %v65_v1 = vld [vmem:[#allocation2 + $0xc0] sm:$0xff] }
 0x10d   :  { %2214 = vmatprep.subr.bf16.mxu1 %v2213_v13  ;;  %v584_v13 = vld [vmem:[#allocation4 + $0xfd8] sm:$0xff]  ;;  %v2235_v16 = vpack.c.bf16 %v579_v10, %v575_v8  ;;  %v613_v6 = vld [vmem:[#allocation4 + $0x10c0] sm:$0xff]  ;;  %v75_v8 = vld [vmem:[#allocation2 + $0x110] sm:$0xff] }
 0x10e   :  { %v617_v7 = vld [vmem:[#allocation4 + $0x10e0] sm:$0xff]  ;;  %v615_v10 = vld [vmem:[#allocation4 + $0x10d0] sm:$0xff] }
 0x10f   :  { %1944 = vmatpush1.bf16.msra.mxu0 %v1943_v19  ;;  %v585_v19 = vld [vmem:[#allocation4 + $0xfe0] sm:$0xff] }
 0x110   :  { %2216 = vmatpush1.bf16.msra.mxu1 %v2215_v20  ;;  %1946 = vmatprep.subr.bf16.mxu0 %v1945_v21  ;;  %v583_v20 = vld [vmem:[#allocation4 + $0xfd0] sm:$0xff]  ;;  %v2237_v21 = vpack.c.bf16 %v588_v14, %v584_v13  ;;  %v1967_v27 = vpack.c.bf16 %v585_v19, %v581_v18  ;;  %v74_v13 = vld [vmem:[#allocation2 + $0x108] sm:$0xff]  ;;  %v1983_v14 = vpack.c.bf16 %v617_v7, %v613_v6 }
 0x111   :  { %2218 = vmatprep.subr.bf16.mxu1 %v2217_v25  ;;  %v592_v25 = vld [vmem:[#allocation4 + $0x1018] sm:$0xff]  ;;  %v2239_v28 = vpack.c.bf16 %v587_v22, %v583_v20  ;;  %v58_v18 = vld [vmem:[#allocation2 + $0x88] sm:$0xff]  ;;  %v67_v19 = vld [vmem:[#allocation2 + $0xd0] sm:$0xff] }
 0x112   :  { %v76_v20 = vld [vmem:[#allocation2 + $0x118] sm:$0xff] }
 0x113   :  { %1948 = vmatpush1.bf16.msra.mxu0 %v1947_v31  ;;  %v593_v31 = vld [vmem:[#allocation4 + $0x1020] sm:$0xff] }
 0x114   :  { %2220 = vmatpush1.bf16.msra.mxu1 %v2219_v32  ;;  %1950 = vmatprep.subr.bf16.mxu0 %v1949_v33  ;;  %v2241_v32 = vpack.c.bf16 %v596_v26, %v592_v25  ;;  %v591_v33 = vld [vmem:[#allocation4 + $0x1010] sm:$0xff]  ;;  %v1971_v38 = vpack.c.bf16 %v593_v31, %v589_v30 }
 0x115   :  { %2222 = vmatprep.subr.bf16.mxu1 %v2221_v37  ;;  %v47_v37 = vld [vmem:[#allocation2 + $0x30] sm:$0xff]  ;;  %v2243_v41 = vpack.c.bf16 %v595_v34, %v591_v33 }
 0x117   :  { %1952 = vmatpush1.bf16.msra.mxu0 %v1951_v43  ;;  %v601_v43 = vld [vmem:[#allocation4 + $0x1060] sm:$0xff] }
 0x118   :  { %2224 = vmatpush1.bf16.msra.mxu1 %v2223_v44  ;;  %1954 = vmatprep.subr.bf16.mxu0 %v1953_v45  ;;  %v57_v44 = vld [vmem:[#allocation2 + $0x80] sm:$0xff]  ;;  %v1973_v45 = vpack.c.bf16 %v602_v36, %v598_v35  ;;  %v1975_v52 = vpack.c.bf16 %v601_v43, %v597_v42 }
 0x119   :  { %2226 = vmatprep.subr.bf16.mxu1 %v2225_v49  ;;  %v606_v49 = vld [vmem:[#allocation4 + $0x1088] sm:$0xff] }
 0x11a   :  { %v1977_v59 = vpack.c.bf16 %v610_v50, %v606_v49  ;;  %v2384_v50 = vmov 1983009808  }
 0x11b   :  { %1956 = vmatpush1.bf16.msra.mxu0 %v1955_v55  ;;  %v2247_v55 = vpack.c.bf16 %v603_v47, %v599_v46 }
 0x11c   :  { %2228 = vmatpush1.bf16.msra.mxu1 %v2227_v56  ;;  %1958 = vmatprep.subr.bf16.mxu0 %v1957_v57  ;;  %v605_v56 = vld [vmem:[#allocation4 + $0x1080] sm:$0xff] }
 0x11d   :  { %2230 = vmatprep.subr.bf16.mxu1 %v2229_v61  ;;  %v609_v57 = vld [vmem:[#allocation4 + $0x10a0] sm:$0xff]  ;;  %v611_v61 = vld [vmem:[#allocation4 + $0x10b0] sm:$0xff] }
 0x11e   :  { %v1979_v2 = vpack.c.bf16 %v609_v57, %v605_v56 }
 0x11f   :  { %1960 = vmatpush1.bf16.msra.mxu0 %v1959_v3  ;;  %v616_v3 = vld [vmem:[#allocation4 + $0x10d8] sm:$0xff] }
 0x120   :  { %2232 = vmatpush1.bf16.msra.mxu1 %v2231_v4  ;;  %1962 = vmatprep.subr.bf16.mxu0 %v1961_v5  ;;  %v620_v4 = vld [vmem:[#allocation4 + $0x10f8] sm:$0xff]  ;;  %v2251_v5 = vpack.c.bf16 %v611_v61, %v607_v60 }
 0x121   :  { %2234 = vmatprep.subr.bf16.mxu1 %v2233_v9  ;;  %v1981_v9 = vpack.c.bf16 %v618_v0, %v614_v63  ;;  %v2253_v12 = vpack.c.bf16 %v620_v4, %v616_v3  ;;  %v1681_v63 = vlaneseq }
 0x123   :  { %1964 = vmatpush1.bf16.msra.mxu0 %v1963_v15  ;;  %v2255_v15 = vpack.c.bf16 %v619_v11, %v615_v10 }
 0x124   :  { %2236 = vmatpush1.bf16.msra.mxu1 %v2235_v16  ;;  %1966 = vmatprep.subr.bf16.mxu0 %v1965_v17  ;;  %v49_v16 = vld [vmem:[#allocation2 + $0x40] sm:$0xff]  ;;  %v2383_v17 = vmov 0.0  }
 0x125   :  { %2238 = vmatprep.subr.bf16.mxu1 %v2237_v21 }
 0x127   :  { %1968 = vmatpush1.bf16.msra.mxu0 %v1967_v27 }
 0x128   :  { %2240 = vmatpush1.bf16.msra.mxu1 %v2239_v28  ;;  %1970 = vmatprep.subr.bf16.mxu0 %v1969_v29 }
 0x129   :  { %2242 = vmatprep.subr.bf16.mxu1 %v2241_v32 }
 0x12a   :  { %966 = vmatmul.mubr.f32.vlgmr.msra.gmra.mrb[0].mxu0 %v47_v37 }
 0x12b   :  { %1411 = vmatmul.mubr.f32.vlgmr.msra.gmra.mrb[0].mxu1 %v47_v37  ;;  %1972 = vmatpush1.bf16.msra.mxu0 %v1971_v38 }
 0x12c   :  { %2244 = vmatpush1.bf16.msra.mxu1 %v2243_v41  ;;  %971 = vmatprep.mubr.f32.mxu0 %v57_v44 }
 0x12d   :  { %1416 = vmatprep.mubr.f32.mxu1 %v57_v44  ;;  %1974 = vmatprep.subr.bf16.mxu0 %v1973_v45 }
 0x12e   :  { %972 = vmatmul.mubr.f32.gmra.mrb[2].mxu0 %v56_v51  ;;  %2246 = vmatprep.subr.bf16.mxu1 %v2245_v48 }
 0x12f   :  { %1417 = vmatmul.mubr.f32.gmra.mrb[2].mxu1 %v56_v51  ;;  %1976 = vmatpush1.bf16.msra.mxu0 %v1975_v52  ;;  %v2464_v51 = vunpack.c.l.s4 %v2384_v50 }
 0x130   :  { %2248 = vmatpush1.bf16.msra.mxu1 %v2247_v55  ;;  %977 = vmatprep.mubr.f32.mxu0 %v66_v58 }
 0x131   :  { %1422 = vmatprep.mubr.f32.mxu1 %v66_v58  ;;  %1978 = vmatprep.subr.bf16.mxu0 %v1977_v59 }
 0x132   :  { %978 = vmatmul.mubr.f32.gmra.mrb[4].mxu0 %v65_v1  ;;  %2250 = vmatprep.subr.bf16.mxu1 %v2249_v62 }
 0x133   :  { %1423 = vmatmul.mubr.f32.gmra.mrb[4].mxu1 %v65_v1  ;;  %1980 = vmatpush1.bf16.msra.mxu0 %v1979_v2 }
 0x134   :  { %2252 = vmatpush1.bf16.msra.mxu1 %v2251_v5  ;;  %983 = vmatprep.mubr.f32.mxu0 %v75_v8  ;;  %v1680_v5 = vunpack.c.0.s8 %v2464_v51 }
 0x135   :  { %1428 = vmatprep.mubr.f32.mxu1 %v75_v8  ;;  %1982 = vmatprep.subr.bf16.mxu0 %v1981_v9 }
 0x136   :  { %984 = vmatmul.mubr.f32.gmra.mrb[6].mxu0 %v74_v13  ;;  %2254 = vmatprep.subr.bf16.mxu1 %v2253_v12 }
 0x137   :  { %1429 = vmatmul.mubr.f32.gmra.mrb[6].mxu1 %v74_v13  ;;  %1984 = vmatpush1.bf16.msra.mxu0 %v1983_v14 }
 0x138   :  { %2256 = vmatpush1.bf16.msra.mxu1 %v2255_v15  ;;  %1054 = vmatprep.mubr.f32.mxu0 %v2383_v17 }
 0x139   :  { %1499 = vmatprep.mubr.f32.mxu1 %v2383_v17 }
 0x13a   :  { %1705 = vmatmul.mubr.msk.f32.vlgmr.msra.gmra.mrb[0].mxu0 %vm621_vm0, %v49_v16 }
 0x13b   :  { %1709 = vmatmul.mubr.msk.f32.vlgmr.msra.gmra.mrb[0].mxu1 %vm621_vm0, %v49_v16  ;;  %1060 = vmatprep.mubr.f32.mxu0 %v2383_v17 }
 0x13c   :  { %1505 = vmatprep.mubr.f32.mxu1 %v2383_v17 }
 0x13e   :  { %1706 = vmatmul.mubr.msk.f32.gmra.mrb[2].mxu0 %vm621_vm0, %v58_v18 }
 0x13f   :  { %1710 = vmatmul.mubr.msk.f32.gmra.mrb[2].mxu1 %vm621_vm0, %v58_v18  ;;  %1066 = vmatprep.mubr.f32.mxu0 %v2383_v17 }
 0x140   :  { %1511 = vmatprep.mubr.f32.mxu1 %v2383_v17 }
 0x142   :  { %1707 = vmatmul.mubr.msk.f32.gmra.mrb[4].mxu0 %vm621_vm0, %v67_v19 }
 0x143   :  { %1711 = vmatmul.mubr.msk.f32.gmra.mrb[4].mxu1 %vm621_vm0, %v67_v19  ;;  %1072 = vmatprep.mubr.f32.mxu0 %v2383_v17 }
 0x144   :  { %1517 = vmatprep.mubr.f32.mxu1 %v2383_v17 }
 0x146   :  { %1708 = vmatmul.mubr.msk.f32.gmra.mrb[6].mxu0 %vm621_vm0, %v76_v20 }
 0x147   :  { %1712 = vmatmul.mubr.msk.f32.gmra.mrb[6].mxu1 %vm621_vm0, %v76_v20 }
 0x20d   :  { %v1056_v21 = vpop.f32.mrb[0].mxu0 }
 0x20e   :  { %1524 = vst [vmem:[%s2499_s2] sm:$0xff] %v1056_v21  ;;  %v1501_v22 = vpop.f32.mrb[0].mxu1  ;;  %v1058_v23 = vpop.f32.mrb[1].mxu0  ;;  %v1615_v25 = vmul.f32 %v1056_v21, %v1056_v21 }
 0x20f   :  { %1526 = vst [vmem:[%s2499_s2 + $0x10] sm:$0xff] %v1501_v22  ;;  %1525 = vst [vmem:[%s2499_s2 + $0x8] sm:$0xff] %v1058_v23  ;;  %v1503_v24 = vpop.f32.mrb[1].mxu1  ;;  %v1617_v27 = vmul.f32 %v1501_v22, %v1501_v22  ;;  %v1616_v28 = vmul.f32 %v1058_v23, %v1058_v23 }
 0x210   :  { %1527 = vst [vmem:[%s2499_s2 + $0x18] sm:$0xff] %v1503_v24  ;;  %v1618_v38 = vmul.f32 %v1503_v24, %v1503_v24 }
 0x211   :  { %v1062_v26 = vpop.f32.mrb[2].mxu0 }
 0x212   :  { %1528 = vst [vmem:[%s2499_s2 + $0x20] sm:$0xff] %v1062_v26  ;;  %v1579_v29 = vadd.f32 %v1062_v26, %v1056_v21  ;;  %v1619_v30 = vmul.f32 %v1062_v26, %v1062_v26  ;;  %v1507_v31 = vpop.f32.mrb[2].mxu1  ;;  %v1064_v32 = vpop.f32.mrb[3].mxu0 }
 0x213   :  { %1530 = vst [vmem:[%s2499_s2 + $0x30] sm:$0xff] %v1507_v31  ;;  %v1597_v33 = vadd.f32 %v1507_v31, %v1501_v22  ;;  %v1621_v34 = vmul.f32 %v1507_v31, %v1507_v31  ;;  %1529 = vst [vmem:[%s2499_s2 + $0x28] sm:$0xff] %v1064_v32  ;;  %v1588_v35 = vadd.f32 %v1064_v32, %v1058_v23  ;;  %v1509_v37 = vpop.f32.mrb[3].mxu1 }
 0x214   :  { %v1620_v36 = vmul.f32 %v1064_v32, %v1064_v32  ;;  %v1631_v39 = vadd.f32 %v1619_v30, %v1615_v25  ;;  %1531 = vst [vmem:[%s2499_s2 + $0x38] sm:$0xff] %v1509_v37  ;;  %v1606_v40 = vadd.f32 %v1509_v37, %v1503_v24  ;;  %v1622_v41 = vmul.f32 %v1509_v37, %v1509_v37 }
 0x215   :  { %v1649_v42 = vadd.f32 %v1621_v34, %v1617_v27  ;;  %v1068_v44 = vpop.f32.mrb[4].mxu0 }
 0x216   :  { %v1640_v43 = vadd.f32 %v1620_v36, %v1616_v28  ;;  %v1658_v45 = vadd.f32 %v1622_v41, %v1618_v38  ;;  %1532 = vst [vmem:[%s2499_s2 + $0x40] sm:$0xff] %v1068_v44  ;;  %v1580_v46 = vadd.f32 %v1579_v29, %v1068_v44  ;;  %v1623_v47 = vmul.f32 %v1068_v44, %v1068_v44  ;;  %v1513_v48 = vpop.f32.mrb[4].mxu1  ;;  %v1070_v49 = vpop.f32.mrb[5].mxu0 }
 0x217   :  { %1534 = vst [vmem:[%s2499_s2 + $0x50] sm:$0xff] %v1513_v48  ;;  %v1598_v52 = vadd.f32 %v1597_v33, %v1513_v48  ;;  %v1625_v53 = vmul.f32 %v1513_v48, %v1513_v48  ;;  %1533 = vst [vmem:[%s2499_s2 + $0x48] sm:$0xff] %v1070_v49  ;;  %v1589_v54 = vadd.f32 %v1588_v35, %v1070_v49  ;;  %v1515_v56 = vpop.f32.mrb[5].mxu1 }
 0x218   :  { %v1624_v55 = vmul.f32 %v1070_v49, %v1070_v49  ;;  %v1632_v57 = vadd.f32 %v1631_v39, %v1623_v47  ;;  %1535 = vst [vmem:[%s2499_s2 + $0x58] sm:$0xff] %v1515_v56  ;;  %v1607_v58 = vadd.f32 %v1606_v40, %v1515_v56  ;;  %v1626_v59 = vmul.f32 %v1515_v56, %v1515_v56 }
 0x219   :  { %v1650_v60 = vadd.f32 %v1649_v42, %v1625_v53  ;;  %v1074_v62 = vpop.f32.mrb[6].mxu0  ;;  %v1682_v53 = vshrl.u32 %v1681_v63, 7 }
 0x21a   :  { %v1641_v61 = vadd.f32 %v1640_v43, %v1624_v55  ;;  %v1659_v0 = vadd.f32 %v1658_v45, %v1626_v59  ;;  %1536 = vst [vmem:[%s2499_s2 + $0x60] sm:$0xff] %v1074_v62  ;;  %v1581_v1 = vadd.f32 %v1580_v46, %v1074_v62  ;;  %v1627_v2 = vmul.f32 %v1074_v62, %v1074_v62  ;;  %v1519_v3 = vpop.f32.mrb[6].mxu1  ;;  %v1076_v4 = vpop.f32.mrb[7].mxu0 }
 0x21b   :  { %1538 = vst [vmem:[%s2499_s2 + $0x70] sm:$0xff] %v1519_v3  ;;  %v1599_v6 = vadd.f32 %v1598_v52, %v1519_v3  ;;  %v1629_v7 = vmul.f32 %v1519_v3, %v1519_v3  ;;  %1537 = vst [vmem:[%s2499_s2 + $0x68] sm:$0xff] %v1076_v4  ;;  %v1590_v8 = vadd.f32 %v1589_v54, %v1076_v4  ;;  %v1521_v10 = vpop.f32.mrb[7].mxu1 }
 0x21c   :  { %v1628_v9 = vmul.f32 %v1076_v4, %v1076_v4  ;;  %v1582_v11 = vrot.slane %v1581_v1, 4  ;;  %v1633_v12 = vadd.f32 %v1632_v57, %v1627_v2  ;;  %1539 = vst [vmem:[%s2499_s2 + $0x78] sm:$0xff] %v1521_v10  ;;  %v1608_v13 = vadd.f32 %v1607_v58, %v1521_v10 }
 0x21d   :  { %v1630_v14 = vmul.f32 %v1521_v10, %v1521_v10  ;;  %v1600_v15 = vrot.slane %v1599_v6, 4  ;;  %v1651_v16 = vadd.f32 %v1650_v60, %v1629_v7  ;;  %v1591_v17 = vrot.slane %v1590_v8, 4 }
 0x21e   :  { %v1642_v18 = vadd.f32 %v1641_v61, %v1628_v9  ;;  %v1583_v19 = vadd.f32 %v1582_v11, %v1581_v1  ;;  %v1634_v20 = vrot.slane %v1633_v12, 4  ;;  %v1609_v21 = vrot.slane %v1608_v13, 4 }
 0x21f   :  { %v1660_v22 = vadd.f32 %v1659_v0, %v1630_v14  ;;  %v1601_v23 = vadd.f32 %v1600_v15, %v1599_v6  ;;  %v1652_v24 = vrot.slane %v1651_v16, 4  ;;  %v1592_v25 = vadd.f32 %v1591_v17, %v1590_v8 }
 0x220   :  { %v1643_v26 = vrot.slane %v1642_v18, 4  ;;  %v1584_v27 = vrot.slane %v1583_v19, 2  ;;  %v1635_v28 = vadd.f32 %v1634_v20, %v1633_v12  ;;  %v1610_v29 = vadd.f32 %v1609_v21, %v1608_v13 }
 0x221   :  { %v1661_v30 = vrot.slane %v1660_v22, 4  ;;  %v1602_v31 = vrot.slane %v1601_v23, 2  ;;  %v1653_v32 = vadd.f32 %v1652_v24, %v1651_v16  ;;  %v1593_v33 = vrot.slane %v1592_v25, 2 }
 0x222   :  { %v1644_v34 = vadd.f32 %v1643_v26, %v1642_v18  ;;  %v1585_v35 = vadd.f32 %v1584_v27, %v1583_v19  ;;  %v1636_v36 = vrot.slane %v1635_v28, 2  ;;  %v1611_v37 = vrot.slane %v1610_v29, 2 }
 0x223   :  { %v1662_v38 = vadd.f32 %v1661_v30, %v1660_v22  ;;  %v1603_v39 = vadd.f32 %v1602_v31, %v1601_v23  ;;  %v1654_v40 = vrot.slane %v1653_v32, 2  ;;  %v1594_v41 = vadd.f32 %v1593_v33, %v1592_v25 }
 0x224   :  { %v1645_v42 = vrot.slane %v1644_v34, 2  ;;  %v1586_v43 = vrot.slane %v1585_v35, 1  ;;  %v1637_v44 = vadd.f32 %v1636_v36, %v1635_v28  ;;  %v1612_v45 = vadd.f32 %v1611_v37, %v1610_v29 }
 0x225   :  { %v1663_v46 = vrot.slane %v1662_v38, 2  ;;  %v1604_v47 = vrot.slane %v1603_v39, 1  ;;  %v1655_v48 = vadd.f32 %v1654_v40, %v1653_v32  ;;  %v1595_v49 = vrot.slane %v1594_v41, 1 }
 0x226   :  { %v1646_v50 = vadd.f32 %v1645_v42, %v1644_v34  ;;  %v1638_v52 = vrot.slane %v1637_v44, 1  ;;  %v1613_v54 = vrot.slane %v1612_v45, 1  ;;  %v1587_v58 = vadd.f32 %v1586_v43, %v1585_v35 }
 0x227   :  { %v1664_v55 = vadd.f32 %v1663_v46, %v1662_v38  ;;  %v1656_v56 = vrot.slane %v1655_v48, 1  ;;  %v1605_v61 = vadd.f32 %v1604_v47, %v1603_v39  ;;  %v1596_v0 = vadd.f32 %v1595_v49, %v1594_v41 }
 0x228   :  { %v1647_v57 = vrot.slane %v1646_v50, 1  ;;  %v1639_v59 = vadd.f32 %v1638_v52, %v1637_v44  ;;  %v1683_v3 = vsub.s32 %v1680_v5, %v1682_v53  ;;  %v1614_v4 = vadd.f32 %v1613_v54, %v1612_v45 }
 0x229   :  { %v1665_v60 = vrot.slane %v1664_v55, 1  ;;  %v1657_v62 = vadd.f32 %v1656_v56, %v1655_v48 }
 0x22a   :  { %v1648_v1 = vadd.f32 %v1647_v57, %v1646_v50  ;;  %v1668_v2 = vsel %vm1667_vm1, %v1587_v58, %v1639_v59 }
 0x22b   :  { %v1666_v6 = vadd.f32 %v1665_v60, %v1664_v55  ;;  %v1670_v63 = vsel %vm1667_vm1, %v1605_v61, %v1657_v62 }
 0x22c   :  { %v1669_v7 = vsel %vm1667_vm1, %v1596_v0, %v1648_v1 }
 0x22d   :  { %v1676_v8 = vcombine.low %v1668_v2, %v1669_v7  ;;  %v1671_v9 = vsel %vm1667_vm1, %v1614_v4, %v1666_v6 }
 0x22e   :  { %v1677_v10 = vcombine.low %v1670_v63, %v1671_v9 }
 0x22f   :  { %v1684_v11 = vrot.slane %v1676_v8, %v1683_v3 }
 0x230   :  { %v1691_v12 = vrot.slane %v1677_v10, %v1683_v3 }
 0x232   :  { %v1692_v13 = vcombine.low %v1684_v11, %v1691_v12 }
 0x234   :  { %1694 = vst [vmem:[%s2500_s3] sm:$0xff] %v1692_v13 }
 0x235   :  { %1703 = vsyncpa [#allocation3], 1 }
 0x236   :  { %1704 = vsyncpa [#allocation5], 1 }

</bundles_post_ra>
